<compile_context>
chip_gen: v7x
topology: tpu7x:2x2x1
jax: 0.10.0
libtpu: 0.0.40
codegen_flags: <defaults>
</compile_context>

<pallas_src>
import functools

import jax
import jax.numpy as jnp
from jax import lax
from jax.experimental import pallas as pl
from jax.experimental.pallas import tpu as pltpu


MATMUL_DTYPE = jnp.bfloat16     # MXU-native operands; accumulation stays f32
_ARBITRARY = pltpu.CompilerParams(dimension_semantics=("arbitrary",))


# ----------------------------------------------------------------------------
# In-kernel helpers
# ----------------------------------------------------------------------------

def _mm(a, b):
    """Matmul with bf16 operands and f32 accumulation."""
    return jnp.dot(a.astype(MATMUL_DTYPE), b.astype(MATMUL_DTYPE),
                   preferred_element_type=jnp.float32)


def _qkt(q, k, scale):
    """q @ k.T without materializing a transpose (contract last dims)."""
    return lax.dot_general(q.astype(MATMUL_DTYPE), k.astype(MATMUL_DTYPE),
                           (((1,), (1,)), ((), ())),
                           preferred_element_type=jnp.float32) * scale


def _ln_rows(x, g, b, eps=1e-5):
    """LayerNorm over the last dim; g/b are [1, D] and broadcast."""
    mu = jnp.mean(x, axis=-1, keepdims=True)
    var = jnp.mean(jnp.square(x - mu), axis=-1, keepdims=True)
    return (x - mu) * lax.rsqrt(var + eps) * g + b


def _softmax_rows(s):
    m = jnp.max(s, axis=-1, keepdims=True)
    e = jnp.exp(s - m)
    return e * pl.reciprocal(jnp.sum(e, axis=-1, keepdims=True), approx=True)


# ----------------------------------------------------------------------------
# Fused encoder stack: embed + depth x (pre-LN MHSA + pre-LN GELU MLP) + final LN
# ----------------------------------------------------------------------------

def _encoder_stack_kernel(emb_x_ref, emb_w_ref, emb_b_ref, pos_ref,
                          ln1g_ref, ln1b_ref, wqkv_ref, bqkv_ref, wo_ref, bo_ref,
                          ln2g_ref, ln2b_ref, w1_ref, b1_ref, w2_ref, b2_ref,
                          lnfg_ref, lnfb_ref,
                          o_ref, *, B, S, heads, dim_head, scale):
    l = pl.program_id(0)
    last = pl.num_programs(0) - 1
    inner = heads * dim_head

    # Layer 0: token embedding + positional embedding. The output block has a
    # constant index map, so it stays VMEM-resident and carries the residual
    # stream across the layer axis.
    @pl.when(l == 0)
    def _embed():
        tok = _mm(emb_x_ref[...], emb_w_ref[...]) + emb_b_ref[...]      # [B*S, D]
        for b in range(B):
            o_ref[b] = tok[b * S:(b + 1) * S, :] + pos_ref[0]

    x = jnp.concatenate([o_ref[b] for b in range(B)], axis=0)           # [B*S, D]

    # --- pre-LN + fused QKV projection ---
    h = _ln_rows(x, ln1g_ref[0], ln1b_ref[0])
    qkv = _mm(h, wqkv_ref[0]) + bqkv_ref[0]                             # [B*S, 3i]

    # --- self-attention per (batch, head); single fused output projection ---
    rows = []
    for b in range(B):
        r0 = b * S
        per_head = []
        for hd in range(heads):
            lo = hd * dim_head
            qh = qkv[r0:r0 + S, lo:lo + dim_head]
            kh = qkv[r0:r0 + S, inner + lo:inner + lo + dim_head]
            vh = qkv[r0:r0 + S, 2 * inner + lo:2 * inner + lo + dim_head]
            p = _softmax_rows(_qkt(qh, kh, scale))                      # [S, S]
            per_head.append(_mm(p, vh))                                 # [S, dh]
        rows.append(jnp.concatenate(per_head, axis=-1))                 # [S, inner]
    oh = jnp.concatenate(rows, axis=0)                                  # [B*S, inner]
    x = x + _mm(oh, wo_ref[0]) + bo_ref[0]

    # --- pre-LN + GELU MLP ---
    h2 = _ln_rows(x, ln2g_ref[0], ln2b_ref[0])
    mid = jax.nn.gelu(_mm(h2, w1_ref[0]) + b1_ref[0], approximate=True)
    x = x + _mm(mid, w2_ref[0]) + b2_ref[0]

    # --- write back the residual; fold the stack's trailing LN into last layer ---
    @pl.when(l == last)
    def _finalize():
        xf = _ln_rows(x, lnfg_ref[...], lnfb_ref[...])
        for b in range(B):
            o_ref[b] = xf[b * S:(b + 1) * S, :]

    @pl.when(l < last)
    def _carry():
        for b in range(B):
            o_ref[b] = x[b * S:(b + 1) * S, :]


def encoder_stack(emb_x, embed_p, pos, stack_p, lnf_g, lnf_b, *, B, S, D,
                  heads, dim_head):
    depth = stack_p["wqkv"].shape[0]
    inner = heads * dim_head
    hidden = stack_p["w1"].shape[-1]
    scale = float(dim_head) ** -0.5
    M = B * S
    K = emb_x.shape[1]

    def const(a):
        nd = a.ndim
        return pl.BlockSpec(a.shape, lambda *_: (0,) * nd)

    def per_layer(a):
        return pl.BlockSpec((1,) + a.shape[1:], lambda l: (l, 0, 0))

    layer_keys = ("ln1_g", "ln1_b", "wqkv", "bqkv", "wo", "bo",
                  "ln2_g", "ln2_b", "w1", "b1", "w2", "b2")
    inputs = [emb_x, embed_p["w"], embed_p["b"], pos] + \
             [stack_p[k] for k in layer_keys] + [lnf_g, lnf_b]
    in_specs = [const(emb_x), const(embed_p["w"]), const(embed_p["b"]),
                const(pos)] + \
               [per_layer(stack_p[k]) for k in layer_keys] + \
               [const(lnf_g), const(lnf_b)]

    flops = 2 * M * K * D + depth * (
        2 * M * D * 3 * inner + 4 * B * heads * S * S * dim_head
        + 2 * M * inner * D + 4 * M * D * hidden)
    ce = pl.CostEstimate(
        flops=flops,
        transcendentals=depth * (M * hidden + B * heads * S * S),
        bytes_accessed=4 * M * (K + 2 * D)
        + 2 * depth * (D * 3 * inner + inner * D + 2 * D * hidden))

    return pl.pallas_call(
        functools.partial(_encoder_stack_kernel, B=B, S=S, heads=heads,
                          dim_head=dim_head, scale=scale),
        out_shape=jax.ShapeDtypeStruct((B, S, D), jnp.float32),
        grid=(depth,),
        in_specs=in_specs,
        out_specs=pl.BlockSpec((B, S, D), lambda l: (0, 0, 0)),
        compiler_params=_ARBITRARY,
        cost_estimate=ce,
    )(*inputs)


# ----------------------------------------------------------------------------
# Fused cross-attention stack (mixer) + last-layer probs + projector(token 0)
# ----------------------------------------------------------------------------

def _cross_stack_kernel(ts_ref, ctx_ref,
                        lnqg_ref, lnqb_ref, lnkvg_ref, lnkvb_ref,
                        wq_ref, bq_ref, wkv_ref, bkv_ref, wo_ref, bo_ref,
                        ln2g_ref, ln2b_ref, w1_ref, b1_ref, w2_ref, b2_ref,
                        wp_ref, bp_ref,
                        y_ref, p_ref, t_acc,
                        *, B, St, Sc, heads, dim_head, scale):
    l = pl.program_id(0)
    last = pl.num_programs(0) - 1
    inner = heads * dim_head

    @pl.when(l == 0)
    def _init():
        t_acc[...] = jnp.concatenate([ts_ref[b] for b in range(B)], axis=0)

    t = t_acc[...]                                                      # [B*St, Dq]
    c = jnp.concatenate([ctx_ref[b] for b in range(B)], axis=0)         # [B*Sc, Dkv]

    hq = _ln_rows(t, lnqg_ref[0], lnqb_ref[0])
    hkv = _ln_rows(c, lnkvg_ref[0], lnkvb_ref[0])
    q = _mm(hq, wq_ref[0]) + bq_ref[0]                                  # [B*St, i]
    kv = _mm(hkv, wkv_ref[0]) + bkv_ref[0]                              # [B*Sc, 2i]

    rows = []
    for b in range(B):
        rq, rk = b * St, b * Sc
        per_head = []
        for hd in range(heads):
            lo = hd * dim_head
            qh = q[rq:rq + St, lo:lo + dim_head]
            kh = kv[rk:rk + Sc, lo:lo + dim_head]
            vh = kv[rk:rk + Sc, inner + lo:inner + lo + dim_head]
            probs = _softmax_rows(_qkt(qh, kh, scale))                  # [St, Sc]

            # Only the LAST cross block's attention maps are consumed.
            @pl.when(l == last)
            def _emit_probs(probs=probs, b=b, hd=hd):
                p_ref[b, hd] = probs

            per_head.append(_mm(probs, vh))                             # [St, dh]
        rows.append(jnp.concatenate(per_head, axis=-1))                 # [St, inner]
    oh = jnp.concatenate(rows, axis=0)                                  # [B*St, inner]
    t = t + _mm(oh, wo_ref[0]) + bo_ref[0]

    h2 = _ln_rows(t, ln2g_ref[0], ln2b_ref[0])
    mid = jax.nn.gelu(_mm(h2, w1_ref[0]) + b1_ref[0], approximate=True)
    t = t + _mm(mid, w2_ref[0]) + b2_ref[0]

    t_acc[...] = t

    # Projector folded in:  y = Linear(dim, ts_length)(latent_ts)[:, 0, :]
    # (permute(0,2,1)[:, :, 0] of the reference == projecting only token 0).
    @pl.when(l == last)
    def _project():
        tok0 = jnp.concatenate(
            [t[b * St:b * St + 1, :] for b in range(B)], axis=0)        # [B, Dq]
        y_ref[...] = _mm(tok0, wp_ref[...]) + bp_ref[...]


def cross_stack(latent_ts, latent_ctx, stack_p, proj_p, *, heads, dim_head,
                ts_length):
    B, St, Dq = latent_ts.shape
    _, Sc, Dkv = latent_ctx.shape
    depth = stack_p["wq"].shape[0]
    inner = heads * dim_head
    hidden = stack_p["w1"].shape[-1]
    scale = float(dim_head) ** -0.5

    def const(a):
        nd = a.ndim
        return pl.BlockSpec(a.shape, lambda *_: (0,) * nd)

    def per_layer(a):
        return pl.BlockSpec((1,) + a.shape[1:], lambda l: (l, 0, 0))

    layer_keys = ("lnq_g", "lnq_b", "lnkv_g", "lnkv_b", "wq", "bq", "wkv", "bkv",
                  "wo", "bo", "ln2_g", "ln2_b", "w1", "b1", "w2", "b2")
    inputs = [latent_ts, latent_ctx] + [stack_p[k] for k in layer_keys] + \
             [proj_p["w"], proj_p["b"]]
    in_specs = [const(latent_ts), const(latent_ctx)] + \
               [per_layer(stack_p[k]) for k in layer_keys] + \
               [const(proj_p["w"]), const(proj_p["b"])]

    flops = depth * (2 * B * St * Dq * inner + 4 * B * Sc * Dkv * inner
                     + 4 * B * heads * St * Sc * dim_head
                     + 2 * B * St * inner * Dq + 4 * B * St * Dq * hidden) \
        + 2 * B * Dq * ts_length
    ce = pl.CostEstimate(
        flops=flops,
        transcendentals=depth * (B * St * hidden + B * heads * St * Sc),
        bytes_accessed=4 * B * (St * Dq + Sc * Dkv + ts_length + heads * St * Sc)
        + 2 * depth * (Dq * inner + 2 * Dkv * inner + inner * Dq + 2 * Dq * hidden))

    return pl.pallas_call(
        functools.partial(_cross_stack_kernel, B=B, St=St, Sc=Sc, heads=heads,
                          dim_head=dim_head, scale=scale),
        out_shape=(jax.ShapeDtypeStruct((B, ts_length), jnp.float32),
                   jax.ShapeDtypeStruct((B, heads, St, Sc), jnp.float32)),
        grid=(depth,),
        in_specs=in_specs,
        out_specs=(pl.BlockSpec((B, ts_length), lambda l: (0, 0)),
                   pl.BlockSpec((B, heads, St, Sc), lambda l: (0, 0, 0, 0))),
        scratch_shapes=[pltpu.VMEM((B * St, Dq), jnp.float32)],
        compiler_params=_ARBITRARY,
        cost_estimate=ce,
    )(*inputs)


# ----------------------------------------------------------------------------
# Model forward (mirrors Model.forward with ctx/ts masking ratios = 0)
# ----------------------------------------------------------------------------

def model_forward(params, cfg, ctx, ctx_coords, ts, ts_coords, time_coords,
                  mask=True):
    # ctx_coords / ts_coords unused with pe_type='learned'; no masking path.
    del ctx_coords, ts_coords, mask
    B, T, C, H, W = ctx.shape
    tt = cfg["tubelet"]
    ph, pw = cfg["patch_size"]
    Tc, Hc, Wc = T // tt, H // ph, W // pw
    Np = Tc * Hc * Wc

    # ctx.permute(0,2,1,3,4) + tubelet PatchEmbed (Conv3d, stride==kernel) laid
    # out as one [B*Np, C*tt*ph*pw] matmul executed inside the ctx-stack kernel.
    x = jnp.transpose(ctx, (0, 2, 1, 3, 4))
    x = x.reshape(B, C, Tc, tt, Hc, ph, Wc, pw)
    x = jnp.transpose(x, (0, 2, 4, 6, 1, 3, 5, 7))
    patch_x = x.reshape(B * Np, C * tt * ph * pw)

    latent_ctx = encoder_stack(
        patch_x, params["ctx_embed"], params["ctx_pos"], params["ctx_stack"],
        params["ctx_lnf_g"], params["ctx_lnf_b"],
        B=B, S=Np, D=cfg["ctx_dim"], heads=cfg["ctx_heads"],
        dim_head=cfg["ctx_dim_head"])

    # ts encoder over station timeseries + time features (reference consumes
    # only the (0,0) pixel of the time encodings: time_coords[..., 0, 0]).
    time_feats = time_coords[..., 0, 0]
    Tt = ts.shape[1]
    feat = jnp.concatenate([ts, time_feats], axis=-1).reshape(B * Tt, -1)
    latent_ts = encoder_stack(
        feat, params["ts_embed"], params["ts_pos"], params["ts_stack"],
        params["ts_lnf_g"], params["ts_lnf_b"],
        B=B, S=Tt, D=cfg["dim"], heads=cfg["heads"], dim_head=cfg["dim_head"])

    # mixer (cross attention: ts queries attend to ctx tokens) + projector.
    y, cross_attention_scores = cross_stack(
        latent_ts, latent_ctx, params["mix_stack"], params["proj"],
        heads=cfg["mix_heads"], dim_head=cfg["mix_dim_head"],
        ts_length=cfg["ts_length"])

    quantile_mask = {}
    return y, quantile_mask, cross_attention_scores


# ----------------------------------------------------------------------------
# Deterministic parameter initialization (weights stored bf16, norms/bias f32)
# ----------------------------------------------------------------------------

def _lin(key, din, dout):
    return {"w": (jax.random.normal(key, (din, dout), jnp.float32) * 0.02
                  ).astype(MATMUL_DTYPE),
            "b": jnp.zeros((1, dout), jnp.float32)}


def _encoder_stack_params(key, depth, dim, heads, dim_head, mlp_ratio):
    inner = heads * dim_head
    hidden = dim * mlp_ratio
    ks = jax.random.split(key, 4)

    def w(k, shp):
        return (jax.random.normal(k, shp, jnp.float32) * 0.02).astype(MATMUL_DTYPE)

    return {
        "ln1_g": jnp.ones((depth, 1, dim), jnp.float32),
        "ln1_b": jnp.zeros((depth, 1, dim), jnp.float32),
        "ln2_g": jnp.ones((depth, 1, dim), jnp.float32),
        "ln2_b": jnp.zeros((depth, 1, dim), jnp.float32),
        "wqkv": w(ks[0], (depth, dim, 3 * inner)),
        "bqkv": jnp.zeros((depth, 1, 3 * inner), jnp.float32),
        "wo": w(ks[1], (depth, inner, dim)),
        "bo": jnp.zeros((depth, 1, dim), jnp.float32),
        "w1": w(ks[2], (depth, dim, hidden)),
        "b1": jnp.zeros((depth, 1, hidden), jnp.float32),
        "w2": w(ks[3], (depth, hidden, dim)),
        "b2": jnp.zeros((depth, 1, dim), jnp.float32),
    }


def _cross_stack_params(key, depth, dim_q, dim_kv, heads, dim_head, mlp_ratio):
    inner = heads * dim_head
    hidden = dim_q * mlp_ratio
    ks = jax.random.split(key, 5)

    def w(k, shp):
        return (jax.random.normal(k, shp, jnp.float32) * 0.02).astype(MATMUL_DTYPE)

    return {
        "lnq_g": jnp.ones((depth, 1, dim_q), jnp.float32),
        "lnq_b": jnp.zeros((depth, 1, dim_q), jnp.float32),
        "lnkv_g": jnp.ones((depth, 1, dim_kv), jnp.float32),
        "lnkv_b": jnp.zeros((depth, 1, dim_kv), jnp.float32),
        "ln2_g": jnp.ones((depth, 1, dim_q), jnp.float32),
        "ln2_b": jnp.zeros((depth, 1, dim_q), jnp.float32),
        "wq": w(ks[0], (depth, dim_q, inner)),
        "bq": jnp.zeros((depth, 1, inner), jnp.float32),
        "wkv": w(ks[1], (depth, dim_kv, 2 * inner)),
        "bkv": jnp.zeros((depth, 1, 2 * inner), jnp.float32),
        "wo": w(ks[2], (depth, inner, dim_q)),
        "bo": jnp.zeros((depth, 1, dim_q), jnp.float32),
        "w1": w(ks[3], (depth, dim_q, hidden)),
        "b1": jnp.zeros((depth, 1, hidden), jnp.float32),
        "w2": w(ks[4], (depth, hidden, dim_q)),
        "b2": jnp.zeros((depth, 1, dim_q), jnp.float32),
    }


def init_params(key, cfg, ctx_channels, ts_channels, time_channels, T, H, W):
    tt = cfg["tubelet"]
    ph, pw = cfg["patch_size"]
    Np = (T // tt) * (H // ph) * (W // pw)
    ks = jax.random.split(key, 8)
    return {
        "ctx_embed": _lin(ks[0], ctx_channels * tt * ph * pw, cfg["ctx_dim"]),
        "ctx_pos": jax.random.normal(ks[1], (1, Np, cfg["ctx_dim"]),
                                     jnp.float32) * 0.02,
        "ctx_stack": _encoder_stack_params(ks[2], cfg["ctx_depth"], cfg["ctx_dim"],
                                           cfg["ctx_heads"], cfg["ctx_dim_head"],
                                           cfg["mlp_ratio"]),
        "ctx_lnf_g": jnp.ones((1, cfg["ctx_dim"]), jnp.float32),
        "ctx_lnf_b": jnp.zeros((1, cfg["ctx_dim"]), jnp.float32),
        # ts embed + time embed fused into one matmul over concatenated features
        "ts_embed": _lin(ks[3], ts_channels + time_channels, cfg["dim"]),
        # TODO(synk): ts encoder uses no positional embedding in this port.
        "ts_pos": jnp.zeros((1, T, cfg["dim"]), jnp.float32),
        "ts_stack": _encoder_stack_params(ks[4], cfg["depth"], cfg["dim"],
                                          cfg["heads"], cfg["dim_head"],
                                          cfg["mlp_ratio"]),
        "ts_lnf_g": jnp.ones((1, cfg["dim"]), jnp.float32),
        "ts_lnf_b": jnp.zeros((1, cfg["dim"]), jnp.float32),
        "mix_stack": _cross_stack_params(ks[5], cfg["mix_depth"], cfg["mix_dim"],
                                         cfg["ctx_dim"], cfg["mix_heads"],
                                         cfg["mix_dim_head"],
                                         cfg["mix_mlp_ratio"]),
        "proj": _lin(ks[6], cfg["dim"], cfg["ts_length"]),
    }


# ----------------------------------------------------------------------------
# Driver
# ----------------------------------------------------------------------------

if __name__ == "__main__":
    B, T, H, W = 2, 4, 16, 16
    ctx_channels, ts_channels, time_channels = 5, 3, 3
    # Lane-dense small config: hidden dims are multiples of 128.
    cfg = dict(
        patch_size=(8, 8), tubelet=2,
        ctx_dim=128, ctx_depth=2, ctx_heads=2, ctx_dim_head=64,
        dim=128, depth=2, heads=2, dim_head=64, mlp_ratio=2,
        mix_dim=128, mix_depth=2, mix_heads=2, mix_dim_head=64, mix_mlp_ratio=2,
        ts_length=8,
    )

    params = init_params(jax.random.PRNGKey(0), cfg, ctx_channels, ts_channels,
                         time_channels, T, H, W)

    kin = jax.random.split(jax.random.PRNGKey(0), 5)
    ctx = jax.random.normal(kin[0], (B, T, ctx_channels, H, W), jnp.float32)
    ctx_coords = jax.random.normal(kin[1], (B, 2, H, W), jnp.float32)
    ts = jax.random.normal(kin[2], (B, T, ts_channels), jnp.float32)
    ts_coords = jax.random.normal(kin[3], (B, 2, 1, 1), jnp.float32)
    time_coords = jax.random.normal(kin[4], (B, T, time_channels, H, W),
                                    jnp.float32)

    fwd = jax.jit(lambda p, a, b, c, d, e: model_forward(p, cfg, a, b, c, d, e))
    y, quantile_mask, cross_scores = fwd(params, ctx, ctx_coords, ts, ts_coords,
                                         time_coords)
    jax.block_until_ready((y, cross_scores))

    num_patches = (T // cfg["tubelet"]) * (H // cfg["patch_size"][0]) \
        * (W // cfg["patch_size"][1])
    assert y.shape == (B, cfg["ts_length"]), y.shape
    assert cross_scores.shape == (B, cfg["mix_heads"], T, num_patches), \
        cross_scores.shape
    assert isinstance(quantile_mask, dict)
    assert bool(jnp.all(jnp.isfinite(y))) and bool(jnp.all(jnp.isfinite(cross_scores)))
    print("KERNEL_OK")
</pallas_src>

<mosaic_0001>
module attributes {stable_mosaic.version = 11 : i64} {
  func.func @_encoder_stack_kernel(%arg0: i32, %arg1: memref<16x640xf32, #tpu.memory_space<vmem>>, %arg2: memref<640x128xbf16, #tpu.memory_space<vmem>>, %arg3: memref<1x128xf32, #tpu.memory_space<vmem>>, %arg4: memref<1x8x128xf32, #tpu.memory_space<vmem>>, %arg5: memref<1x1x128xf32, #tpu.memory_space<vmem>>, %arg6: memref<1x1x128xf32, #tpu.memory_space<vmem>>, %arg7: memref<1x128x384xbf16, #tpu.memory_space<vmem>>, %arg8: memref<1x1x384xf32, #tpu.memory_space<vmem>>, %arg9: memref<1x128x128xbf16, #tpu.memory_space<vmem>>, %arg10: memref<1x1x128xf32, #tpu.memory_space<vmem>>, %arg11: memref<1x1x128xf32, #tpu.memory_space<vmem>>, %arg12: memref<1x1x128xf32, #tpu.memory_space<vmem>>, %arg13: memref<1x128x256xbf16, #tpu.memory_space<vmem>>, %arg14: memref<1x1x256xf32, #tpu.memory_space<vmem>>, %arg15: memref<1x256x128xbf16, #tpu.memory_space<vmem>>, %arg16: memref<1x1x128xf32, #tpu.memory_space<vmem>>, %arg17: memref<1x128xf32, #tpu.memory_space<vmem>>, %arg18: memref<1x128xf32, #tpu.memory_space<vmem>>, %arg19: memref<2x8x128xf32, #tpu.memory_space<vmem>>) attributes {dimension_semantics = [#tpu.dimension_semantics<arbitrary>], iteration_bounds = array<i64: 2>, scalar_prefetch = 0 : i64, scratch_operands = 0 : i64, tpu.core_type = #tpu.core_type<tc>, window_params = [{pipeline_mode = #tpu.pipeline_mode<synchronous>, transform_indices = @transform_0, window_bounds = array<i64: 16, 640>}, {pipeline_mode = #tpu.pipeline_mode<synchronous>, transform_indices = @transform_1, window_bounds = array<i64: 640, 128>}, {pipeline_mode = #tpu.pipeline_mode<synchronous>, transform_indices = @transform_2, window_bounds = array<i64: 1, 128>}, {pipeline_mode = #tpu.pipeline_mode<synchronous>, transform_indices = @transform_3, window_bounds = array<i64: 1, 8, 128>}, {transform_indices = @transform_4, window_bounds = array<i64: 1, 1, 128>}, {transform_indices = @transform_5, window_bounds = array<i64: 1, 1, 128>}, {transform_indices = @transform_6, window_bounds = array<i64: 1, 128, 384>}, {transform_indices = @transform_7, window_bounds = array<i64: 1, 1, 384>}, {transform_indices = @transform_8, window_bounds = array<i64: 1, 128, 128>}, {transform_indices = @transform_9, window_bounds = array<i64: 1, 1, 128>}, {transform_indices = @transform_10, window_bounds = array<i64: 1, 1, 128>}, {transform_indices = @transform_11, window_bounds = array<i64: 1, 1, 128>}, {transform_indices = @transform_12, window_bounds = array<i64: 1, 128, 256>}, {transform_indices = @transform_13, window_bounds = array<i64: 1, 1, 256>}, {transform_indices = @transform_14, window_bounds = array<i64: 1, 256, 128>}, {transform_indices = @transform_15, window_bounds = array<i64: 1, 1, 128>}, {pipeline_mode = #tpu.pipeline_mode<synchronous>, transform_indices = @transform_16, window_bounds = array<i64: 1, 128>}, {pipeline_mode = #tpu.pipeline_mode<synchronous>, transform_indices = @transform_17, window_bounds = array<i64: 1, 128>}, {pipeline_mode = #tpu.pipeline_mode<synchronous>, transform_indices = @transform_18, window_bounds = array<i64: 2, 8, 128>}]} {
    %c0_i32 = arith.constant 0 : i32
    %0 = arith.cmpi eq, %arg0, %c0_i32 : i32
    %1 = arith.extui %0 : i1 to i32
    %c0_i32_0 = arith.constant 0 : i32
    %2 = arith.cmpi ne, %1, %c0_i32_0 : i32
    scf.if %2 {
      %c0_81 = arith.constant 0 : index
      %c0_82 = arith.constant 0 : index
      %200 = vector.load %arg1[%c0_81, %c0_82] : memref<16x640xf32, #tpu.memory_space<vmem>>, vector<16x640xf32>
      %c0_83 = arith.constant 0 : index
      %c0_84 = arith.constant 0 : index
      %201 = vector.load %arg2[%c0_83, %c0_84] : memref<640x128xbf16, #tpu.memory_space<vmem>>, vector<640x128xbf16>
      %202 = arith.truncf %200 : vector<16x640xf32> to vector<16x640xbf16>
      %cst_85 = arith.constant dense<0.000000e+00> : vector<16x128xf32>
      %203 = tpu.matmul %202, %201, %cst_85 {dimension_numbers = #tpu.dot_dimension_numbers<[1], [0], [0], [1], [0, 0, 1, 1], [], []>} : vector<16x640xbf16>, vector<640x128xbf16>, vector<16x128xf32> -> vector<16x128xf32>
      %c0_86 = arith.constant 0 : index
      %c0_87 = arith.constant 0 : index
      %204 = vector.load %arg3[%c0_86, %c0_87] : memref<1x128xf32, #tpu.memory_space<vmem>>, vector<1x128xf32>
      %205 = vector.broadcast %204 : vector<1x128xf32> to vector<16x128xf32>
      %206 = arith.addf %203, %205 : vector<16x128xf32>
      %207 = vector.extract_strided_slice %206 {offsets = [0, 0], sizes = [8, 128], strides = [1, 1]} : vector<16x128xf32> to vector<8x128xf32>
      %c0_88 = arith.constant 0 : index
      %c0_89 = arith.constant 0 : index
      %c0_90 = arith.constant 0 : index
      %208 = vector.load %arg4[%c0_88, %c0_89, %c0_90] : memref<1x8x128xf32, #tpu.memory_space<vmem>>, vector<1x8x128xf32>
      %209 = vector.shape_cast %208 : vector<1x8x128xf32> to vector<8x128xf32>
      %210 = arith.addf %207, %209 : vector<8x128xf32>
      %c0_91 = arith.constant 0 : index
      %c0_92 = arith.constant 0 : index
      %c0_93 = arith.constant 0 : index
      %211 = vector.load %arg19[%c0_91, %c0_92, %c0_93] : memref<2x8x128xf32, #tpu.memory_space<vmem>>, vector<1x8x128xf32>
      %212 = vector.shape_cast %211 : vector<1x8x128xf32> to vector<8x128xf32>
      %213 = vector.shape_cast %210 : vector<8x128xf32> to vector<1x8x128xf32>
      tpu.vector_store %arg19[%c0_91, %c0_92, %c0_93], %213 {strides = array<i32>} : memref<2x8x128xf32, #tpu.memory_space<vmem>>, vector<1x8x128xf32>,
      %214 = vector.extract_strided_slice %206 {offsets = [8, 0], sizes = [8, 128], strides = [1, 1]} : vector<16x128xf32> to vector<8x128xf32>
      %c0_94 = arith.constant 0 : index
      %c0_95 = arith.constant 0 : index
      %c0_96 = arith.constant 0 : index
      %215 = vector.load %arg4[%c0_94, %c0_95, %c0_96] : memref<1x8x128xf32, #tpu.memory_space<vmem>>, vector<1x8x128xf32>
      %216 = vector.shape_cast %215 : vector<1x8x128xf32> to vector<8x128xf32>
      %217 = arith.addf %214, %216 : vector<8x128xf32>
      %c1_97 = arith.constant 1 : index
      %c0_98 = arith.constant 0 : index
      %c0_99 = arith.constant 0 : index
      %218 = vector.load %arg19[%c1_97, %c0_98, %c0_99] : memref<2x8x128xf32, #tpu.memory_space<vmem>>, vector<1x8x128xf32>
      %219 = vector.shape_cast %218 : vector<1x8x128xf32> to vector<8x128xf32>
      %220 = vector.shape_cast %217 : vector<8x128xf32> to vector<1x8x128xf32>
      tpu.vector_store %arg19[%c1_97, %c0_98, %c0_99], %220 {strides = array<i32>} : memref<2x8x128xf32, #tpu.memory_space<vmem>>, vector<1x8x128xf32>,
    } else {
    }
    %c0 = arith.constant 0 : index
    %c0_1 = arith.constant 0 : index
    %c0_2 = arith.constant 0 : index
    %3 = vector.load %arg19[%c0, %c0_1, %c0_2] : memref<2x8x128xf32, #tpu.memory_space<vmem>>, vector<1x8x128xf32>
    %4 = vector.shape_cast %3 : vector<1x8x128xf32> to vector<8x128xf32>
    %c1 = arith.constant 1 : index
    %c0_3 = arith.constant 0 : index
    %c0_4 = arith.constant 0 : index
    %5 = vector.load %arg19[%c1, %c0_3, %c0_4] : memref<2x8x128xf32, #tpu.memory_space<vmem>>, vector<1x8x128xf32>
    %6 = vector.shape_cast %5 : vector<1x8x128xf32> to vector<8x128xf32>
    %7 = tpu.concatenate %4, %6 in 0 : vector<8x128xf32>, vector<8x128xf32> -> vector<16x128xf32>
    %c0_5 = arith.constant 0 : index
    %c0_6 = arith.constant 0 : index
    %c0_7 = arith.constant 0 : index
    %8 = vector.load %arg5[%c0_5, %c0_6, %c0_7] : memref<1x1x128xf32, #tpu.memory_space<vmem>>, vector<1x1x128xf32>
    %9 = vector.shape_cast %8 : vector<1x1x128xf32> to vector<1x128xf32>
    %c0_8 = arith.constant 0 : index
    %c0_9 = arith.constant 0 : index
    %c0_10 = arith.constant 0 : index
    %10 = vector.load %arg6[%c0_8, %c0_9, %c0_10] : memref<1x1x128xf32, #tpu.memory_space<vmem>>, vector<1x1x128xf32>
    %11 = vector.shape_cast %10 : vector<1x1x128xf32> to vector<1x128xf32>
    %cst = arith.constant dense<0.000000e+00> : vector<16xf32>
    %12 = vector.multi_reduction <add>, %7, %cst [1] : vector<16x128xf32> to vector<16xf32>
    %13 = vector.shape_cast %12 : vector<16xf32> to vector<16x1xf32>
    %cst_11 = arith.constant 1.280000e+02 : f32
    %14 = vector.broadcast %cst_11 : f32 to vector<16x1xf32>
    %15 = arith.divf %13, %14 : vector<16x1xf32>
    %16 = vector.broadcast %15 : vector<16x1xf32> to vector<16x128xf32>
    %17 = arith.subf %7, %16 : vector<16x128xf32>
    %18 = arith.mulf %17, %17 : vector<16x128xf32>
    %cst_12 = arith.constant dense<0.000000e+00> : vector<16xf32>
    %19 = vector.multi_reduction <add>, %18, %cst_12 [1] : vector<16x128xf32> to vector<16xf32>
    %20 = vector.shape_cast %19 : vector<16xf32> to vector<16x1xf32>
    %cst_13 = arith.constant 1.280000e+02 : f32
    %21 = vector.broadcast %cst_13 : f32 to vector<16x1xf32>
    %22 = arith.divf %20, %21 : vector<16x1xf32>
    %23 = vector.broadcast %15 : vector<16x1xf32> to vector<16x128xf32>
    %24 = arith.subf %7, %23 : vector<16x128xf32>
    %cst_14 = arith.constant 9.99999974E-6 : f32
    %25 = vector.broadcast %cst_14 : f32 to vector<16x1xf32>
    %26 = arith.addf %22, %25 : vector<16x1xf32>
    %27 = math.rsqrt %26 : vector<16x1xf32>
    %28 = vector.broadcast %27 : vector<16x1xf32> to vector<16x128xf32>
    %29 = arith.mulf %24, %28 : vector<16x128xf32>
    %30 = vector.broadcast %9 : vector<1x128xf32> to vector<16x128xf32>
    %31 = arith.mulf %29, %30 : vector<16x128xf32>
    %32 = vector.broadcast %11 : vector<1x128xf32> to vector<16x128xf32>
    %33 = arith.addf %31, %32 : vector<16x128xf32>
    %c0_15 = arith.constant 0 : index
    %c0_16 = arith.constant 0 : index
    %c0_17 = arith.constant 0 : index
    %34 = vector.load %arg7[%c0_15, %c0_16, %c0_17] : memref<1x128x384xbf16, #tpu.memory_space<vmem>>, vector<1x128x384xbf16>
    %35 = vector.shape_cast %34 : vector<1x128x384xbf16> to vector<128x384xbf16>
    %36 = arith.truncf %33 : vector<16x128xf32> to vector<16x128xbf16>
    %cst_18 = arith.constant dense<0.000000e+00> : vector<16x384xf32>
    %37 = tpu.matmul %36, %35, %cst_18 {dimension_numbers = #tpu.dot_dimension_numbers<[1], [0], [0], [1], [0, 0, 1, 1], [], []>} : vector<16x128xbf16>, vector<128x384xbf16>, vector<16x384xf32> -> vector<16x384xf32>
    %c0_19 = arith.constant 0 : index
    %c0_20 = arith.constant 0 : index
    %c0_21 = arith.constant 0 : index
    %38 = vector.load %arg8[%c0_19, %c0_20, %c0_21] : memref<1x1x384xf32, #tpu.memory_space<vmem>>, vector<1x1x384xf32>
    %39 = vector.shape_cast %38 : vector<1x1x384xf32> to vector<1x384xf32>
    %40 = vector.broadcast %39 : vector<1x384xf32> to vector<16x384xf32>
    %41 = arith.addf %37, %40 : vector<16x384xf32>
    %42 = vector.extract_strided_slice %41 {offsets = [0, 0], sizes = [8, 64], strides = [1, 1]} : vector<16x384xf32> to vector<8x64xf32>
    %43 = vector.extract_strided_slice %41 {offsets = [0, 128], sizes = [8, 64], strides = [1, 1]} : vector<16x384xf32> to vector<8x64xf32>
    %44 = vector.extract_strided_slice %41 {offsets = [0, 256], sizes = [8, 64], strides = [1, 1]} : vector<16x384xf32> to vector<8x64xf32>
    %45 = arith.truncf %42 : vector<8x64xf32> to vector<8x64xbf16>
    %46 = arith.truncf %43 : vector<8x64xf32> to vector<8x64xbf16>
    %cst_22 = arith.constant dense<0.000000e+00> : vector<8x8xf32>
    %47 = tpu.matmul %45, %46, %cst_22 {dimension_numbers = #tpu.dot_dimension_numbers<[1], [1], [0], [0], [0, 0, 1, 0], [], []>} : vector<8x64xbf16>, vector<8x64xbf16>, vector<8x8xf32> -> vector<8x8xf32>
    %cst_23 = arith.constant 1.250000e-01 : f32
    %48 = vector.broadcast %cst_23 : f32 to vector<8x8xf32>
    %49 = arith.mulf %47, %48 : vector<8x8xf32>
    %cst_24 = arith.constant dense<0xFF800000> : vector<8xf32>
    %50 = vector.multi_reduction <maximumf>, %49, %cst_24 [1] : vector<8x8xf32> to vector<8xf32>
    %51 = vector.shape_cast %50 : vector<8xf32> to vector<8x1xf32>
    %52 = vector.broadcast %51 : vector<8x1xf32> to vector<8x8xf32>
    %53 = arith.subf %49, %52 : vector<8x8xf32>
    %54 = math.exp %53 : vector<8x8xf32>
    %cst_25 = arith.constant dense<0.000000e+00> : vector<8xf32>
    %55 = vector.multi_reduction <add>, %54, %cst_25 [1] : vector<8x8xf32> to vector<8xf32>
    %56 = vector.shape_cast %55 : vector<8xf32> to vector<8x1xf32>
    %57 = tpu.reciprocal %56 {approx = true} : vector<8x1xf32> -> vector<8x1xf32>
    %58 = vector.broadcast %57 : vector<8x1xf32> to vector<8x8xf32>
    %59 = arith.mulf %54, %58 : vector<8x8xf32>
    %60 = arith.truncf %59 : vector<8x8xf32> to vector<8x8xbf16>
    %61 = arith.truncf %44 : vector<8x64xf32> to vector<8x64xbf16>
    %cst_26 = arith.constant dense<0.000000e+00> : vector<8x64xf32>
    %62 = tpu.matmul %60, %61, %cst_26 {dimension_numbers = #tpu.dot_dimension_numbers<[1], [0], [0], [1], [0, 0, 1, 1], [], []>} : vector<8x8xbf16>, vector<8x64xbf16>, vector<8x64xf32> -> vector<8x64xf32>
    %63 = vector.extract_strided_slice %41 {offsets = [0, 64], sizes = [8, 64], strides = [1, 1]} : vector<16x384xf32> to vector<8x64xf32>
    %64 = vector.extract_strided_slice %41 {offsets = [0, 192], sizes = [8, 64], strides = [1, 1]} : vector<16x384xf32> to vector<8x64xf32>
    %65 = vector.extract_strided_slice %41 {offsets = [0, 320], sizes = [8, 64], strides = [1, 1]} : vector<16x384xf32> to vector<8x64xf32>
    %66 = arith.truncf %63 : vector<8x64xf32> to vector<8x64xbf16>
    %67 = arith.truncf %64 : vector<8x64xf32> to vector<8x64xbf16>
    %cst_27 = arith.constant dense<0.000000e+00> : vector<8x8xf32>
    %68 = tpu.matmul %66, %67, %cst_27 {dimension_numbers = #tpu.dot_dimension_numbers<[1], [1], [0], [0], [0, 0, 1, 0], [], []>} : vector<8x64xbf16>, vector<8x64xbf16>, vector<8x8xf32> -> vector<8x8xf32>
    %cst_28 = arith.constant 1.250000e-01 : f32
    %69 = vector.broadcast %cst_28 : f32 to vector<8x8xf32>
    %70 = arith.mulf %68, %69 : vector<8x8xf32>
    %cst_29 = arith.constant dense<0xFF800000> : vector<8xf32>
    %71 = vector.multi_reduction <maximumf>, %70, %cst_29 [1] : vector<8x8xf32> to vector<8xf32>
    %72 = vector.shape_cast %71 : vector<8xf32> to vector<8x1xf32>
    %73 = vector.broadcast %72 : vector<8x1xf32> to vector<8x8xf32>
    %74 = arith.subf %70, %73 : vector<8x8xf32>
    %75 = math.exp %74 : vector<8x8xf32>
    %cst_30 = arith.constant dense<0.000000e+00> : vector<8xf32>
    %76 = vector.multi_reduction <add>, %75, %cst_30 [1] : vector<8x8xf32> to vector<8xf32>
    %77 = vector.shape_cast %76 : vector<8xf32> to vector<8x1xf32>
    %78 = tpu.reciprocal %77 {approx = true} : vector<8x1xf32> -> vector<8x1xf32>
    %79 = vector.broadcast %78 : vector<8x1xf32> to vector<8x8xf32>
    %80 = arith.mulf %75, %79 : vector<8x8xf32>
    %81 = arith.truncf %80 : vector<8x8xf32> to vector<8x8xbf16>
    %82 = arith.truncf %65 : vector<8x64xf32> to vector<8x64xbf16>
    %cst_31 = arith.constant dense<0.000000e+00> : vector<8x64xf32>
    %83 = tpu.matmul %81, %82, %cst_31 {dimension_numbers = #tpu.dot_dimension_numbers<[1], [0], [0], [1], [0, 0, 1, 1], [], []>} : vector<8x8xbf16>, vector<8x64xbf16>, vector<8x64xf32> -> vector<8x64xf32>
    %84 = tpu.concatenate %62, %83 in 1 : vector<8x64xf32>, vector<8x64xf32> -> vector<8x128xf32>
    %85 = vector.extract_strided_slice %41 {offsets = [8, 0], sizes = [8, 64], strides = [1, 1]} : vector<16x384xf32> to vector<8x64xf32>
    %86 = vector.extract_strided_slice %41 {offsets = [8, 128], sizes = [8, 64], strides = [1, 1]} : vector<16x384xf32> to vector<8x64xf32>
    %87 = vector.extract_strided_slice %41 {offsets = [8, 256], sizes = [8, 64], strides = [1, 1]} : vector<16x384xf32> to vector<8x64xf32>
    %88 = arith.truncf %85 : vector<8x64xf32> to vector<8x64xbf16>
    %89 = arith.truncf %86 : vector<8x64xf32> to vector<8x64xbf16>
    %cst_32 = arith.constant dense<0.000000e+00> : vector<8x8xf32>
    %90 = tpu.matmul %88, %89, %cst_32 {dimension_numbers = #tpu.dot_dimension_numbers<[1], [1], [0], [0], [0, 0, 1, 0], [], []>} : vector<8x64xbf16>, vector<8x64xbf16>, vector<8x8xf32> -> vector<8x8xf32>
    %cst_33 = arith.constant 1.250000e-01 : f32
    %91 = vector.broadcast %cst_33 : f32 to vector<8x8xf32>
    %92 = arith.mulf %90, %91 : vector<8x8xf32>
    %cst_34 = arith.constant dense<0xFF800000> : vector<8xf32>
    %93 = vector.multi_reduction <maximumf>, %92, %cst_34 [1] : vector<8x8xf32> to vector<8xf32>
    %94 = vector.shape_cast %93 : vector<8xf32> to vector<8x1xf32>
    %95 = vector.broadcast %94 : vector<8x1xf32> to vector<8x8xf32>
    %96 = arith.subf %92, %95 : vector<8x8xf32>
    %97 = math.exp %96 : vector<8x8xf32>
    %cst_35 = arith.constant dense<0.000000e+00> : vector<8xf32>
    %98 = vector.multi_reduction <add>, %97, %cst_35 [1] : vector<8x8xf32> to vector<8xf32>
    %99 = vector.shape_cast %98 : vector<8xf32> to vector<8x1xf32>
    %100 = tpu.reciprocal %99 {approx = true} : vector<8x1xf32> -> vector<8x1xf32>
    %101 = vector.broadcast %100 : vector<8x1xf32> to vector<8x8xf32>
    %102 = arith.mulf %97, %101 : vector<8x8xf32>
    %103 = arith.truncf %102 : vector<8x8xf32> to vector<8x8xbf16>
    %104 = arith.truncf %87 : vector<8x64xf32> to vector<8x64xbf16>
    %cst_36 = arith.constant dense<0.000000e+00> : vector<8x64xf32>
    %105 = tpu.matmul %103, %104, %cst_36 {dimension_numbers = #tpu.dot_dimension_numbers<[1], [0], [0], [1], [0, 0, 1, 1], [], []>} : vector<8x8xbf16>, vector<8x64xbf16>, vector<8x64xf32> -> vector<8x64xf32>
    %106 = vector.extract_strided_slice %41 {offsets = [8, 64], sizes = [8, 64], strides = [1, 1]} : vector<16x384xf32> to vector<8x64xf32>
    %107 = vector.extract_strided_slice %41 {offsets = [8, 192], sizes = [8, 64], strides = [1, 1]} : vector<16x384xf32> to vector<8x64xf32>
    %108 = vector.extract_strided_slice %41 {offsets = [8, 320], sizes = [8, 64], strides = [1, 1]} : vector<16x384xf32> to vector<8x64xf32>
    %109 = arith.truncf %106 : vector<8x64xf32> to vector<8x64xbf16>
    %110 = arith.truncf %107 : vector<8x64xf32> to vector<8x64xbf16>
    %cst_37 = arith.constant dense<0.000000e+00> : vector<8x8xf32>
    %111 = tpu.matmul %109, %110, %cst_37 {dimension_numbers = #tpu.dot_dimension_numbers<[1], [1], [0], [0], [0, 0, 1, 0], [], []>} : vector<8x64xbf16>, vector<8x64xbf16>, vector<8x8xf32> -> vector<8x8xf32>
    %cst_38 = arith.constant 1.250000e-01 : f32
    %112 = vector.broadcast %cst_38 : f32 to vector<8x8xf32>
    %113 = arith.mulf %111, %112 : vector<8x8xf32>
    %cst_39 = arith.constant dense<0xFF800000> : vector<8xf32>
    %114 = vector.multi_reduction <maximumf>, %113, %cst_39 [1] : vector<8x8xf32> to vector<8xf32>
    %115 = vector.shape_cast %114 : vector<8xf32> to vector<8x1xf32>
    %116 = vector.broadcast %115 : vector<8x1xf32> to vector<8x8xf32>
    %117 = arith.subf %113, %116 : vector<8x8xf32>
    %118 = math.exp %117 : vector<8x8xf32>
    %cst_40 = arith.constant dense<0.000000e+00> : vector<8xf32>
    %119 = vector.multi_reduction <add>, %118, %cst_40 [1] : vector<8x8xf32> to vector<8xf32>
    %120 = vector.shape_cast %119 : vector<8xf32> to vector<8x1xf32>
    %121 = tpu.reciprocal %120 {approx = true} : vector<8x1xf32> -> vector<8x1xf32>
    %122 = vector.broadcast %121 : vector<8x1xf32> to vector<8x8xf32>
    %123 = arith.mulf %118, %122 : vector<8x8xf32>
    %124 = arith.truncf %123 : vector<8x8xf32> to vector<8x8xbf16>
    %125 = arith.truncf %108 : vector<8x64xf32> to vector<8x64xbf16>
    %cst_41 = arith.constant dense<0.000000e+00> : vector<8x64xf32>
    %126 = tpu.matmul %124, %125, %cst_41 {dimension_numbers = #tpu.dot_dimension_numbers<[1], [0], [0], [1], [0, 0, 1, 1], [], []>} : vector<8x8xbf16>, vector<8x64xbf16>, vector<8x64xf32> -> vector<8x64xf32>
    %127 = tpu.concatenate %105, %126 in 1 : vector<8x64xf32>, vector<8x64xf32> -> vector<8x128xf32>
    %128 = tpu.concatenate %84, %127 in 0 : vector<8x128xf32>, vector<8x128xf32> -> vector<16x128xf32>
    %c0_42 = arith.constant 0 : index
    %c0_43 = arith.constant 0 : index
    %c0_44 = arith.constant 0 : index
    %129 = vector.load %arg9[%c0_42, %c0_43, %c0_44] : memref<1x128x128xbf16, #tpu.memory_space<vmem>>, vector<1x128x128xbf16>
    %130 = vector.shape_cast %129 : vector<1x128x128xbf16> to vector<128x128xbf16>
    %131 = arith.truncf %128 : vector<16x128xf32> to vector<16x128xbf16>
    %cst_45 = arith.constant dense<0.000000e+00> : vector<16x128xf32>
    %132 = tpu.matmul %131, %130, %cst_45 {dimension_numbers = #tpu.dot_dimension_numbers<[1], [0], [0], [1], [0, 0, 1, 1], [], []>} : vector<16x128xbf16>, vector<128x128xbf16>, vector<16x128xf32> -> vector<16x128xf32>
    %133 = arith.addf %7, %132 : vector<16x128xf32>
    %c0_46 = arith.constant 0 : index
    %c0_47 = arith.constant 0 : index
    %c0_48 = arith.constant 0 : index
    %134 = vector.load %arg10[%c0_46, %c0_47, %c0_48] : memref<1x1x128xf32, #tpu.memory_space<vmem>>, vector<1x1x128xf32>
    %135 = vector.shape_cast %134 : vector<1x1x128xf32> to vector<1x128xf32>
    %136 = vector.broadcast %135 : vector<1x128xf32> to vector<16x128xf32>
    %137 = arith.addf %133, %136 : vector<16x128xf32>
    %c0_49 = arith.constant 0 : index
    %c0_50 = arith.constant 0 : index
    %c0_51 = arith.constant 0 : index
    %138 = vector.load %arg11[%c0_49, %c0_50, %c0_51] : memref<1x1x128xf32, #tpu.memory_space<vmem>>, vector<1x1x128xf32>
    %139 = vector.shape_cast %138 : vector<1x1x128xf32> to vector<1x128xf32>
    %c0_52 = arith.constant 0 : index
    %c0_53 = arith.constant 0 : index
    %c0_54 = arith.constant 0 : index
    %140 = vector.load %arg12[%c0_52, %c0_53, %c0_54] : memref<1x1x128xf32, #tpu.memory_space<vmem>>, vector<1x1x128xf32>
    %141 = vector.shape_cast %140 : vector<1x1x128xf32> to vector<1x128xf32>
    %cst_55 = arith.constant dense<0.000000e+00> : vector<16xf32>
    %142 = vector.multi_reduction <add>, %137, %cst_55 [1] : vector<16x128xf32> to vector<16xf32>
    %143 = vector.shape_cast %142 : vector<16xf32> to vector<16x1xf32>
    %cst_56 = arith.constant 1.280000e+02 : f32
    %144 = vector.broadcast %cst_56 : f32 to vector<16x1xf32>
    %145 = arith.divf %143, %144 : vector<16x1xf32>
    %146 = vector.broadcast %145 : vector<16x1xf32> to vector<16x128xf32>
    %147 = arith.subf %137, %146 : vector<16x128xf32>
    %148 = arith.mulf %147, %147 : vector<16x128xf32>
    %cst_57 = arith.constant dense<0.000000e+00> : vector<16xf32>
    %149 = vector.multi_reduction <add>, %148, %cst_57 [1] : vector<16x128xf32> to vector<16xf32>
    %150 = vector.shape_cast %149 : vector<16xf32> to vector<16x1xf32>
    %cst_58 = arith.constant 1.280000e+02 : f32
    %151 = vector.broadcast %cst_58 : f32 to vector<16x1xf32>
    %152 = arith.divf %150, %151 : vector<16x1xf32>
    %153 = vector.broadcast %145 : vector<16x1xf32> to vector<16x128xf32>
    %154 = arith.subf %137, %153 : vector<16x128xf32>
    %cst_59 = arith.constant 9.99999974E-6 : f32
    %155 = vector.broadcast %cst_59 : f32 to vector<16x1xf32>
    %156 = arith.addf %152, %155 : vector<16x1xf32>
    %157 = math.rsqrt %156 : vector<16x1xf32>
    %158 = vector.broadcast %157 : vector<16x1xf32> to vector<16x128xf32>
    %159 = arith.mulf %154, %158 : vector<16x128xf32>
    %160 = vector.broadcast %139 : vector<1x128xf32> to vector<16x128xf32>
    %161 = arith.mulf %159, %160 : vector<16x128xf32>
    %162 = vector.broadcast %141 : vector<1x128xf32> to vector<16x128xf32>
    %163 = arith.addf %161, %162 : vector<16x128xf32>
    %c0_60 = arith.constant 0 : index
    %c0_61 = arith.constant 0 : index
    %c0_62 = arith.constant 0 : index
    %164 = vector.load %arg13[%c0_60, %c0_61, %c0_62] : memref<1x128x256xbf16, #tpu.memory_space<vmem>>, vector<1x128x256xbf16>
    %165 = vector.shape_cast %164 : vector<1x128x256xbf16> to vector<128x256xbf16>
    %166 = arith.truncf %163 : vector<16x128xf32> to vector<16x128xbf16>
    %cst_63 = arith.constant dense<0.000000e+00> : vector<16x256xf32>
    %167 = tpu.matmul %166, %165, %cst_63 {dimension_numbers = #tpu.dot_dimension_numbers<[1], [0], [0], [1], [0, 0, 1, 1], [], []>} : vector<16x128xbf16>, vector<128x256xbf16>, vector<16x256xf32> -> vector<16x256xf32>
    %c0_64 = arith.constant 0 : index
    %c0_65 = arith.constant 0 : index
    %c0_66 = arith.constant 0 : index
    %168 = vector.load %arg14[%c0_64, %c0_65, %c0_66] : memref<1x1x256xf32, #tpu.memory_space<vmem>>, vector<1x1x256xf32>
    %169 = vector.shape_cast %168 : vector<1x1x256xf32> to vector<1x256xf32>
    %170 = vector.broadcast %169 : vector<1x256xf32> to vector<16x256xf32>
    %171 = arith.addf %167, %170 : vector<16x256xf32>
    %172 = arith.mulf %171, %171 : vector<16x256xf32>
    %173 = arith.mulf %171, %172 : vector<16x256xf32>
    %cst_67 = arith.constant 4.471500e-02 : f32
    %174 = vector.broadcast %cst_67 : f32 to vector<16x256xf32>
    %175 = arith.mulf %174, %173 : vector<16x256xf32>
    %176 = arith.addf %171, %175 : vector<16x256xf32>
    %cst_68 = arith.constant 0.797884583 : f32
    %177 = vector.broadcast %cst_68 : f32 to vector<16x256xf32>
    %178 = arith.mulf %177, %176 : vector<16x256xf32>
    %179 = math.tanh %178 : vector<16x256xf32>
    %cst_69 = arith.constant 1.000000e+00 : f32
    %180 = vector.broadcast %cst_69 : f32 to vector<16x256xf32>
    %181 = arith.addf %180, %179 : vector<16x256xf32>
    %cst_70 = arith.constant 5.000000e-01 : f32
    %182 = vector.broadcast %cst_70 : f32 to vector<16x256xf32>
    %183 = arith.mulf %182, %181 : vector<16x256xf32>
    %184 = arith.mulf %171, %183 : vector<16x256xf32>
    %c0_71 = arith.constant 0 : index
    %c0_72 = arith.constant 0 : index
    %c0_73 = arith.constant 0 : index
    %185 = vector.load %arg15[%c0_71, %c0_72, %c0_73] : memref<1x256x128xbf16, #tpu.memory_space<vmem>>, vector<1x256x128xbf16>
    %186 = vector.shape_cast %185 : vector<1x256x128xbf16> to vector<256x128xbf16>
    %187 = arith.truncf %184 : vector<16x256xf32> to vector<16x256xbf16>
    %cst_74 = arith.constant dense<0.000000e+00> : vector<16x128xf32>
    %188 = tpu.matmul %187, %186, %cst_74 {dimension_numbers = #tpu.dot_dimension_numbers<[1], [0], [0], [1], [0, 0, 1, 1], [], []>} : vector<16x256xbf16>, vector<256x128xbf16>, vector<16x128xf32> -> vector<16x128xf32>
    %189 = arith.addf %137, %188 : vector<16x128xf32>
    %c0_75 = arith.constant 0 : index
    %c0_76 = arith.constant 0 : index
    %c0_77 = arith.constant 0 : index
    %190 = vector.load %arg16[%c0_75, %c0_76, %c0_77] : memref<1x1x128xf32, #tpu.memory_space<vmem>>, vector<1x1x128xf32>
    %191 = vector.shape_cast %190 : vector<1x1x128xf32> to vector<1x128xf32>
    %192 = vector.broadcast %191 : vector<1x128xf32> to vector<16x128xf32>
    %193 = arith.addf %189, %192 : vector<16x128xf32>
    %c1_i32 = arith.constant 1 : i32
    %194 = arith.cmpi eq, %arg0, %c1_i32 : i32
    %195 = arith.extui %194 : i1 to i32
    %c0_i32_78 = arith.constant 0 : i32
    %196 = arith.cmpi ne, %195, %c0_i32_78 : i32
    scf.if %196 {
      %c0_81 = arith.constant 0 : index
      %c0_82 = arith.constant 0 : index
      %200 = vector.load %arg17[%c0_81, %c0_82] : memref<1x128xf32, #tpu.memory_space<vmem>>, vector<1x128xf32>
      %c0_83 = arith.constant 0 : index
      %c0_84 = arith.constant 0 : index
      %201 = vector.load %arg18[%c0_83, %c0_84] : memref<1x128xf32, #tpu.memory_space<vmem>>, vector<1x128xf32>
      %cst_85 = arith.constant dense<0.000000e+00> : vector<16xf32>
      %202 = vector.multi_reduction <add>, %193, %cst_85 [1] : vector<16x128xf32> to vector<16xf32>
      %203 = vector.shape_cast %202 : vector<16xf32> to vector<16x1xf32>
      %cst_86 = arith.constant 1.280000e+02 : f32
      %204 = vector.broadcast %cst_86 : f32 to vector<16x1xf32>
      %205 = arith.divf %203, %204 : vector<16x1xf32>
      %206 = vector.broadcast %205 : vector<16x1xf32> to vector<16x128xf32>
      %207 = arith.subf %193, %206 : vector<16x128xf32>
      %208 = arith.mulf %207, %207 : vector<16x128xf32>
      %cst_87 = arith.constant dense<0.000000e+00> : vector<16xf32>
      %209 = vector.multi_reduction <add>, %208, %cst_87 [1] : vector<16x128xf32> to vector<16xf32>
      %210 = vector.shape_cast %209 : vector<16xf32> to vector<16x1xf32>
      %cst_88 = arith.constant 1.280000e+02 : f32
      %211 = vector.broadcast %cst_88 : f32 to vector<16x1xf32>
      %212 = arith.divf %210, %211 : vector<16x1xf32>
      %213 = vector.broadcast %205 : vector<16x1xf32> to vector<16x128xf32>
      %214 = arith.subf %193, %213 : vector<16x128xf32>
      %cst_89 = arith.constant 9.99999974E-6 : f32
      %215 = vector.broadcast %cst_89 : f32 to vector<16x1xf32>
      %216 = arith.addf %212, %215 : vector<16x1xf32>
      %217 = math.rsqrt %216 : vector<16x1xf32>
      %218 = vector.broadcast %217 : vector<16x1xf32> to vector<16x128xf32>
      %219 = arith.mulf %214, %218 : vector<16x128xf32>
      %220 = vector.broadcast %200 : vector<1x128xf32> to vector<16x128xf32>
      %221 = arith.mulf %219, %220 : vector<16x128xf32>
      %222 = vector.broadcast %201 : vector<1x128xf32> to vector<16x128xf32>
      %223 = arith.addf %221, %222 : vector<16x128xf32>
      %224 = vector.extract_strided_slice %223 {offsets = [0, 0], sizes = [8, 128], strides = [1, 1]} : vector<16x128xf32> to vector<8x128xf32>
      %c0_90 = arith.constant 0 : index
      %c0_91 = arith.constant 0 : index
      %c0_92 = arith.constant 0 : index
      %225 = vector.load %arg19[%c0_90, %c0_91, %c0_92] : memref<2x8x128xf32, #tpu.memory_space<vmem>>, vector<1x8x128xf32>
      %226 = vector.shape_cast %225 : vector<1x8x128xf32> to vector<8x128xf32>
      %227 = vector.shape_cast %224 : vector<8x128xf32> to vector<1x8x128xf32>
      tpu.vector_store %arg19[%c0_90, %c0_91, %c0_92], %227 {strides = array<i32>} : memref<2x8x128xf32, #tpu.memory_space<vmem>>, vector<1x8x128xf32>,
      %228 = vector.extract_strided_slice %223 {offsets = [8, 0], sizes = [8, 128], strides = [1, 1]} : vector<16x128xf32> to vector<8x128xf32>
      %c1_93 = arith.constant 1 : index
      %c0_94 = arith.constant 0 : index
      %c0_95 = arith.constant 0 : index
      %229 = vector.load %arg19[%c1_93, %c0_94, %c0_95] : memref<2x8x128xf32, #tpu.memory_space<vmem>>, vector<1x8x128xf32>
      %230 = vector.shape_cast %229 : vector<1x8x128xf32> to vector<8x128xf32>
      %231 = vector.shape_cast %228 : vector<8x128xf32> to vector<1x8x128xf32>
      tpu.vector_store %arg19[%c1_93, %c0_94, %c0_95], %231 {strides = array<i32>} : memref<2x8x128xf32, #tpu.memory_space<vmem>>, vector<1x8x128xf32>,
    } else {
    }
    %c1_i32_79 = arith.constant 1 : i32
    %197 = arith.cmpi slt, %arg0, %c1_i32_79 : i32
    %198 = arith.extui %197 : i1 to i32
    %c0_i32_80 = arith.constant 0 : i32
    %199 = arith.cmpi ne, %198, %c0_i32_80 : i32
    scf.if %199 {
      %200 = vector.extract_strided_slice %193 {offsets = [0, 0], sizes = [8, 128], strides = [1, 1]} : vector<16x128xf32> to vector<8x128xf32>
      %c0_81 = arith.constant 0 : index
      %c0_82 = arith.constant 0 : index
      %c0_83 = arith.constant 0 : index
      %201 = vector.load %arg19[%c0_81, %c0_82, %c0_83] : memref<2x8x128xf32, #tpu.memory_space<vmem>>, vector<1x8x128xf32>
      %202 = vector.shape_cast %201 : vector<1x8x128xf32> to vector<8x128xf32>
      %203 = vector.shape_cast %200 : vector<8x128xf32> to vector<1x8x128xf32>
      tpu.vector_store %arg19[%c0_81, %c0_82, %c0_83], %203 {strides = array<i32>} : memref<2x8x128xf32, #tpu.memory_space<vmem>>, vector<1x8x128xf32>,
      %204 = vector.extract_strided_slice %193 {offsets = [8, 0], sizes = [8, 128], strides = [1, 1]} : vector<16x128xf32> to vector<8x128xf32>
      %c1_84 = arith.constant 1 : index
      %c0_85 = arith.constant 0 : index
      %c0_86 = arith.constant 0 : index
      %205 = vector.load %arg19[%c1_84, %c0_85, %c0_86] : memref<2x8x128xf32, #tpu.memory_space<vmem>>, vector<1x8x128xf32>
      %206 = vector.shape_cast %205 : vector<1x8x128xf32> to vector<8x128xf32>
      %207 = vector.shape_cast %204 : vector<8x128xf32> to vector<1x8x128xf32>
      tpu.vector_store %arg19[%c1_84, %c0_85, %c0_86], %207 {strides = array<i32>} : memref<2x8x128xf32, #tpu.memory_space<vmem>>, vector<1x8x128xf32>,
    } else {
    }
    return
  }
  func.func @transform_0(%arg0: i32) -> (i32, i32) {
    %c0_i32 = arith.constant 0 : i32
    %c0_i32_0 = arith.constant 0 : i32
    %c0_i32_1 = arith.constant 0 : i32
    return %c0_i32, %c0_i32_0 : i32, i32
  }
  func.func @transform_1(%arg0: i32) -> (i32, i32) {
    %c0_i32 = arith.constant 0 : i32
    %c0_i32_0 = arith.constant 0 : i32
    %c0_i32_1 = arith.constant 0 : i32
    return %c0_i32, %c0_i32_0 : i32, i32
  }
  func.func @transform_2(%arg0: i32) -> (i32, i32) {
    %c0_i32 = arith.constant 0 : i32
    %c0_i32_0 = arith.constant 0 : i32
    %c0_i32_1 = arith.constant 0 : i32
    return %c0_i32, %c0_i32_0 : i32, i32
  }
  func.func @transform_3(%arg0: i32) -> (i32, i32, i32) {
    %c0_i32 = arith.constant 0 : i32
    %c0_i32_0 = arith.constant 0 : i32
    %c0_i32_1 = arith.constant 0 : i32
    %c0_i32_2 = arith.constant 0 : i32
    return %c0_i32, %c0_i32_0, %c0_i32_1 : i32, i32, i32
  }
  func.func @transform_4(%arg0: i32) -> (i32, i32, i32) {
    %c0_i32 = arith.constant 0 : i32
    %c0_i32_0 = arith.constant 0 : i32
    %c0_i32_1 = arith.constant 0 : i32
    return %arg0, %c0_i32, %c0_i32_0 : i32, i32, i32
  }
  func.func @transform_5(%arg0: i32) -> (i32, i32, i32) {
    %c0_i32 = arith.constant 0 : i32
    %c0_i32_0 = arith.constant 0 : i32
    %c0_i32_1 = arith.constant 0 : i32
    return %arg0, %c0_i32, %c0_i32_0 : i32, i32, i32
  }
  func.func @transform_6(%arg0: i32) -> (i32, i32, i32) {
    %c0_i32 = arith.constant 0 : i32
    %c0_i32_0 = arith.constant 0 : i32
    %c0_i32_1 = arith.constant 0 : i32
    return %arg0, %c0_i32, %c0_i32_0 : i32, i32, i32
  }
  func.func @transform_7(%arg0: i32) -> (i32, i32, i32) {
    %c0_i32 = arith.constant 0 : i32
    %c0_i32_0 = arith.constant 0 : i32
    %c0_i32_1 = arith.constant 0 : i32
    return %arg0, %c0_i32, %c0_i32_0 : i32, i32, i32
  }
  func.func @transform_8(%arg0: i32) -> (i32, i32, i32) {
    %c0_i32 = arith.constant 0 : i32
    %c0_i32_0 = arith.constant 0 : i32
    %c0_i32_1 = arith.constant 0 : i32
    return %arg0, %c0_i32, %c0_i32_0 : i32, i32, i32
  }
  func.func @transform_9(%arg0: i32) -> (i32, i32, i32) {
    %c0_i32 = arith.constant 0 : i32
    %c0_i32_0 = arith.constant 0 : i32
    %c0_i32_1 = arith.constant 0 : i32
    return %arg0, %c0_i32, %c0_i32_0 : i32, i32, i32
  }
  func.func @transform_10(%arg0: i32) -> (i32, i32, i32) {
    %c0_i32 = arith.constant 0 : i32
    %c0_i32_0 = arith.constant 0 : i32
    %c0_i32_1 = arith.constant 0 : i32
    return %arg0, %c0_i32, %c0_i32_0 : i32, i32, i32
  }
  func.func @transform_11(%arg0: i32) -> (i32, i32, i32) {
    %c0_i32 = arith.constant 0 : i32
    %c0_i32_0 = arith.constant 0 : i32
    %c0_i32_1 = arith.constant 0 : i32
    return %arg0, %c0_i32, %c0_i32_0 : i32, i32, i32
  }
  func.func @transform_12(%arg0: i32) -> (i32, i32, i32) {
    %c0_i32 = arith.constant 0 : i32
    %c0_i32_0 = arith.constant 0 : i32
    %c0_i32_1 = arith.constant 0 : i32
    return %arg0, %c0_i32, %c0_i32_0 : i32, i32, i32
  }
  func.func @transform_13(%arg0: i32) -> (i32, i32, i32) {
    %c0_i32 = arith.constant 0 : i32
    %c0_i32_0 = arith.constant 0 : i32
    %c0_i32_1 = arith.constant 0 : i32
    return %arg0, %c0_i32, %c0_i32_0 : i32, i32, i32
  }
  func.func @transform_14(%arg0: i32) -> (i32, i32, i32) {
    %c0_i32 = arith.constant 0 : i32
    %c0_i32_0 = arith.constant 0 : i32
    %c0_i32_1 = arith.constant 0 : i32
    return %arg0, %c0_i32, %c0_i32_0 : i32, i32, i32
  }
  func.func @transform_15(%arg0: i32) -> (i32, i32, i32) {
    %c0_i32 = arith.constant 0 : i32
    %c0_i32_0 = arith.constant 0 : i32
    %c0_i32_1 = arith.constant 0 : i32
    return %arg0, %c0_i32, %c0_i32_0 : i32, i32, i32
  }
  func.func @transform_16(%arg0: i32) -> (i32, i32) {
    %c0_i32 = arith.constant 0 : i32
    %c0_i32_0 = arith.constant 0 : i32
    %c0_i32_1 = arith.constant 0 : i32
    return %c0_i32, %c0_i32_0 : i32, i32
  }
  func.func @transform_17(%arg0: i32) -> (i32, i32) {
    %c0_i32 = arith.constant 0 : i32
    %c0_i32_0 = arith.constant 0 : i32
    %c0_i32_1 = arith.constant 0 : i32
    return %c0_i32, %c0_i32_0 : i32, i32
  }
  func.func @transform_18(%arg0: i32) -> (i32, i32, i32) {
    %c0_i32 = arith.constant 0 : i32
    %c0_i32_0 = arith.constant 0 : i32
    %c0_i32_1 = arith.constant 0 : i32
    %c0_i32_2 = arith.constant 0 : i32
    return %c0_i32, %c0_i32_0, %c0_i32_1 : i32, i32, i32
  }
}

module attributes {stable_mosaic.version = 11 : i64} {
  func.func @_encoder_stack_kernel(%arg0: i32, %arg1: memref<8x6xf32, #tpu.memory_space<vmem>>, %arg2: memref<6x128xbf16, #tpu.memory_space<vmem>>, %arg3: memref<1x128xf32, #tpu.memory_space<vmem>>, %arg4: memref<1x4x128xf32, #tpu.memory_space<vmem>>, %arg5: memref<1x1x128xf32, #tpu.memory_space<vmem>>, %arg6: memref<1x1x128xf32, #tpu.memory_space<vmem>>, %arg7: memref<1x128x384xbf16, #tpu.memory_space<vmem>>, %arg8: memref<1x1x384xf32, #tpu.memory_space<vmem>>, %arg9: memref<1x128x128xbf16, #tpu.memory_space<vmem>>, %arg10: memref<1x1x128xf32, #tpu.memory_space<vmem>>, %arg11: memref<1x1x128xf32, #tpu.memory_space<vmem>>, %arg12: memref<1x1x128xf32, #tpu.memory_space<vmem>>, %arg13: memref<1x128x256xbf16, #tpu.memory_space<vmem>>, %arg14: memref<1x1x256xf32, #tpu.memory_space<vmem>>, %arg15: memref<1x256x128xbf16, #tpu.memory_space<vmem>>, %arg16: memref<1x1x128xf32, #tpu.memory_space<vmem>>, %arg17: memref<1x128xf32, #tpu.memory_space<vmem>>, %arg18: memref<1x128xf32, #tpu.memory_space<vmem>>, %arg19: memref<2x4x128xf32, #tpu.memory_space<vmem>>) attributes {dimension_semantics = [#tpu.dimension_semantics<arbitrary>], iteration_bounds = array<i64: 2>, scalar_prefetch = 0 : i64, scratch_operands = 0 : i64, tpu.core_type = #tpu.core_type<tc>, window_params = [{pipeline_mode = #tpu.pipeline_mode<synchronous>, transform_indices = @transform_0, window_bounds = array<i64: 8, 6>}, {pipeline_mode = #tpu.pipeline_mode<synchronous>, transform_indices = @transform_1, window_bounds = array<i64: 6, 128>}, {pipeline_mode = #tpu.pipeline_mode<synchronous>, transform_indices = @transform_2, window_bounds = array<i64: 1, 128>}, {pipeline_mode = #tpu.pipeline_mode<synchronous>, transform_indices = @transform_3, window_bounds = array<i64: 1, 4, 128>}, {transform_indices = @transform_4, window_bounds = array<i64: 1, 1, 128>}, {transform_indices = @transform_5, window_bounds = array<i64: 1, 1, 128>}, {transform_indices = @transform_6, window_bounds = array<i64: 1, 128, 384>}, {transform_indices = @transform_7, window_bounds = array<i64: 1, 1, 384>}, {transform_indices = @transform_8, window_bounds = array<i64: 1, 128, 128>}, {transform_indices = @transform_9, window_bounds = array<i64: 1, 1, 128>}, {transform_indices = @transform_10, window_bounds = array<i64: 1, 1, 128>}, {transform_indices = @transform_11, window_bounds = array<i64: 1, 1, 128>}, {transform_indices = @transform_12, window_bounds = array<i64: 1, 128, 256>}, {transform_indices = @transform_13, window_bounds = array<i64: 1, 1, 256>}, {transform_indices = @transform_14, window_bounds = array<i64: 1, 256, 128>}, {transform_indices = @transform_15, window_bounds = array<i64: 1, 1, 128>}, {pipeline_mode = #tpu.pipeline_mode<synchronous>, transform_indices = @transform_16, window_bounds = array<i64: 1, 128>}, {pipeline_mode = #tpu.pipeline_mode<synchronous>, transform_indices = @transform_17, window_bounds = array<i64: 1, 128>}, {pipeline_mode = #tpu.pipeline_mode<synchronous>, transform_indices = @transform_18, window_bounds = array<i64: 2, 4, 128>}]} {
    %c0_i32 = arith.constant 0 : i32
    %0 = arith.cmpi eq, %arg0, %c0_i32 : i32
    %1 = arith.extui %0 : i1 to i32
    %c0_i32_0 = arith.constant 0 : i32
    %2 = arith.cmpi ne, %1, %c0_i32_0 : i32
    scf.if %2 {
      %c0_81 = arith.constant 0 : index
      %c0_82 = arith.constant 0 : index
      %200 = vector.load %arg1[%c0_81, %c0_82] : memref<8x6xf32, #tpu.memory_space<vmem>>, vector<8x6xf32>
      %c0_83 = arith.constant 0 : index
      %c0_84 = arith.constant 0 : index
      %201 = vector.load %arg2[%c0_83, %c0_84] : memref<6x128xbf16, #tpu.memory_space<vmem>>, vector<6x128xbf16>
      %202 = arith.truncf %200 : vector<8x6xf32> to vector<8x6xbf16>
      %cst_85 = arith.constant dense<0.000000e+00> : vector<8x128xf32>
      %203 = tpu.matmul %202, %201, %cst_85 {dimension_numbers = #tpu.dot_dimension_numbers<[1], [0], [0], [1], [0, 0, 1, 1], [], []>} : vector<8x6xbf16>, vector<6x128xbf16>, vector<8x128xf32> -> vector<8x128xf32>
      %c0_86 = arith.constant 0 : index
      %c0_87 = arith.constant 0 : index
      %204 = vector.load %arg3[%c0_86, %c0_87] : memref<1x128xf32, #tpu.memory_space<vmem>>, vector<1x128xf32>
      %205 = vector.broadcast %204 : vector<1x128xf32> to vector<8x128xf32>
      %206 = arith.addf %203, %205 : vector<8x128xf32>
      %207 = vector.extract_strided_slice %206 {offsets = [0, 0], sizes = [4, 128], strides = [1, 1]} : vector<8x128xf32> to vector<4x128xf32>
      %c0_88 = arith.constant 0 : index
      %c0_89 = arith.constant 0 : index
      %c0_90 = arith.constant 0 : index
      %208 = vector.load %arg4[%c0_88, %c0_89, %c0_90] : memref<1x4x128xf32, #tpu.memory_space<vmem>>, vector<1x4x128xf32>
      %209 = vector.shape_cast %208 : vector<1x4x128xf32> to vector<4x128xf32>
      %210 = arith.addf %207, %209 : vector<4x128xf32>
      %c0_91 = arith.constant 0 : index
      %c0_92 = arith.constant 0 : index
      %c0_93 = arith.constant 0 : index
      %211 = vector.load %arg19[%c0_91, %c0_92, %c0_93] : memref<2x4x128xf32, #tpu.memory_space<vmem>>, vector<1x4x128xf32>
      %212 = vector.shape_cast %211 : vector<1x4x128xf32> to vector<4x128xf32>
      %213 = vector.shape_cast %210 : vector<4x128xf32> to vector<1x4x128xf32>
      tpu.vector_store %arg19[%c0_91, %c0_92, %c0_93], %213 {strides = array<i32>} : memref<2x4x128xf32, #tpu.memory_space<vmem>>, vector<1x4x128xf32>,
      %214 = vector.extract_strided_slice %206 {offsets = [4, 0], sizes = [4, 128], strides = [1, 1]} : vector<8x128xf32> to vector<4x128xf32>
      %c0_94 = arith.constant 0 : index
      %c0_95 = arith.constant 0 : index
      %c0_96 = arith.constant 0 : index
      %215 = vector.load %arg4[%c0_94, %c0_95, %c0_96] : memref<1x4x128xf32, #tpu.memory_space<vmem>>, vector<1x4x128xf32>
      %216 = vector.shape_cast %215 : vector<1x4x128xf32> to vector<4x128xf32>
      %217 = arith.addf %214, %216 : vector<4x128xf32>
      %c1_97 = arith.constant 1 : index
      %c0_98 = arith.constant 0 : index
      %c0_99 = arith.constant 0 : index
      %218 = vector.load %arg19[%c1_97, %c0_98, %c0_99] : memref<2x4x128xf32, #tpu.memory_space<vmem>>, vector<1x4x128xf32>
      %219 = vector.shape_cast %218 : vector<1x4x128xf32> to vector<4x128xf32>
      %220 = vector.shape_cast %217 : vector<4x128xf32> to vector<1x4x128xf32>
      tpu.vector_store %arg19[%c1_97, %c0_98, %c0_99], %220 {strides = array<i32>} : memref<2x4x128xf32, #tpu.memory_space<vmem>>, vector<1x4x128xf32>,
    } else {
    }
    %c0 = arith.constant 0 : index
    %c0_1 = arith.constant 0 : index
    %c0_2 = arith.constant 0 : index
    %3 = vector.load %arg19[%c0, %c0_1, %c0_2] : memref<2x4x128xf32, #tpu.memory_space<vmem>>, vector<1x4x128xf32>
    %4 = vector.shape_cast %3 : vector<1x4x128xf32> to vector<4x128xf32>
    %c1 = arith.constant 1 : index
    %c0_3 = arith.constant 0 : index
    %c0_4 = arith.constant 0 : index
    %5 = vector.load %arg19[%c1, %c0_3, %c0_4] : memref<2x4x128xf32, #tpu.memory_space<vmem>>, vector<1x4x128xf32>
    %6 = vector.shape_cast %5 : vector<1x4x128xf32> to vector<4x128xf32>
    %7 = tpu.concatenate %4, %6 in 0 : vector<4x128xf32>, vector<4x128xf32> -> vector<8x128xf32>
    %c0_5 = arith.constant 0 : index
    %c0_6 = arith.constant 0 : index
    %c0_7 = arith.constant 0 : index
    %8 = vector.load %arg5[%c0_5, %c0_6, %c0_7] : memref<1x1x128xf32, #tpu.memory_space<vmem>>, vector<1x1x128xf32>
    %9 = vector.shape_cast %8 : vector<1x1x128xf32> to vector<1x128xf32>
    %c0_8 = arith.constant 0 : index
    %c0_9 = arith.constant 0 : index
    %c0_10 = arith.constant 0 : index
    %10 = vector.load %arg6[%c0_8, %c0_9, %c0_10] : memref<1x1x128xf32, #tpu.memory_space<vmem>>, vector<1x1x128xf32>
    %11 = vector.shape_cast %10 : vector<1x1x128xf32> to vector<1x128xf32>
    %cst = arith.constant dense<0.000000e+00> : vector<8xf32>
    %12 = vector.multi_reduction <add>, %7, %cst [1] : vector<8x128xf32> to vector<8xf32>
    %13 = vector.shape_cast %12 : vector<8xf32> to vector<8x1xf32>
    %cst_11 = arith.constant 1.280000e+02 : f32
    %14 = vector.broadcast %cst_11 : f32 to vector<8x1xf32>
    %15 = arith.divf %13, %14 : vector<8x1xf32>
    %16 = vector.broadcast %15 : vector<8x1xf32> to vector<8x128xf32>
    %17 = arith.subf %7, %16 : vector<8x128xf32>
    %18 = arith.mulf %17, %17 : vector<8x128xf32>
    %cst_12 = arith.constant dense<0.000000e+00> : vector<8xf32>
    %19 = vector.multi_reduction <add>, %18, %cst_12 [1] : vector<8x128xf32> to vector<8xf32>
    %20 = vector.shape_cast %19 : vector<8xf32> to vector<8x1xf32>
    %cst_13 = arith.constant 1.280000e+02 : f32
    %21 = vector.broadcast %cst_13 : f32 to vector<8x1xf32>
    %22 = arith.divf %20, %21 : vector<8x1xf32>
    %23 = vector.broadcast %15 : vector<8x1xf32> to vector<8x128xf32>
    %24 = arith.subf %7, %23 : vector<8x128xf32>
    %cst_14 = arith.constant 9.99999974E-6 : f32
    %25 = vector.broadcast %cst_14 : f32 to vector<8x1xf32>
    %26 = arith.addf %22, %25 : vector<8x1xf32>
    %27 = math.rsqrt %26 : vector<8x1xf32>
    %28 = vector.broadcast %27 : vector<8x1xf32> to vector<8x128xf32>
    %29 = arith.mulf %24, %28 : vector<8x128xf32>
    %30 = vector.broadcast %9 : vector<1x128xf32> to vector<8x128xf32>
    %31 = arith.mulf %29, %30 : vector<8x128xf32>
    %32 = vector.broadcast %11 : vector<1x128xf32> to vector<8x128xf32>
    %33 = arith.addf %31, %32 : vector<8x128xf32>
    %c0_15 = arith.constant 0 : index
    %c0_16 = arith.constant 0 : index
    %c0_17 = arith.constant 0 : index
    %34 = vector.load %arg7[%c0_15, %c0_16, %c0_17] : memref<1x128x384xbf16, #tpu.memory_space<vmem>>, vector<1x128x384xbf16>
    %35 = vector.shape_cast %34 : vector<1x128x384xbf16> to vector<128x384xbf16>
    %36 = arith.truncf %33 : vector<8x128xf32> to vector<8x128xbf16>
    %cst_18 = arith.constant dense<0.000000e+00> : vector<8x384xf32>
    %37 = tpu.matmul %36, %35, %cst_18 {dimension_numbers = #tpu.dot_dimension_numbers<[1], [0], [0], [1], [0, 0, 1, 1], [], []>} : vector<8x128xbf16>, vector<128x384xbf16>, vector<8x384xf32> -> vector<8x384xf32>
    %c0_19 = arith.constant 0 : index
    %c0_20 = arith.constant 0 : index
    %c0_21 = arith.constant 0 : index
    %38 = vector.load %arg8[%c0_19, %c0_20, %c0_21] : memref<1x1x384xf32, #tpu.memory_space<vmem>>, vector<1x1x384xf32>
    %39 = vector.shape_cast %38 : vector<1x1x384xf32> to vector<1x384xf32>
    %40 = vector.broadcast %39 : vector<1x384xf32> to vector<8x384xf32>
    %41 = arith.addf %37, %40 : vector<8x384xf32>
    %42 = vector.extract_strided_slice %41 {offsets = [0, 0], sizes = [4, 64], strides = [1, 1]} : vector<8x384xf32> to vector<4x64xf32>
    %43 = vector.extract_strided_slice %41 {offsets = [0, 128], sizes = [4, 64], strides = [1, 1]} : vector<8x384xf32> to vector<4x64xf32>
    %44 = vector.extract_strided_slice %41 {offsets = [0, 256], sizes = [4, 64], strides = [1, 1]} : vector<8x384xf32> to vector<4x64xf32>
    %45 = arith.truncf %42 : vector<4x64xf32> to vector<4x64xbf16>
    %46 = arith.truncf %43 : vector<4x64xf32> to vector<4x64xbf16>
    %cst_22 = arith.constant dense<0.000000e+00> : vector<4x4xf32>
    %47 = tpu.matmul %45, %46, %cst_22 {dimension_numbers = #tpu.dot_dimension_numbers<[1], [1], [0], [0], [0, 0, 1, 0], [], []>} : vector<4x64xbf16>, vector<4x64xbf16>, vector<4x4xf32> -> vector<4x4xf32>
    %cst_23 = arith.constant 1.250000e-01 : f32
    %48 = vector.broadcast %cst_23 : f32 to vector<4x4xf32>
    %49 = arith.mulf %47, %48 : vector<4x4xf32>
    %cst_24 = arith.constant dense<0xFF800000> : vector<4xf32>
    %50 = vector.multi_reduction <maximumf>, %49, %cst_24 [1] : vector<4x4xf32> to vector<4xf32>
    %51 = vector.shape_cast %50 : vector<4xf32> to vector<4x1xf32>
    %52 = vector.broadcast %51 : vector<4x1xf32> to vector<4x4xf32>
    %53 = arith.subf %49, %52 : vector<4x4xf32>
    %54 = math.exp %53 : vector<4x4xf32>
    %cst_25 = arith.constant dense<0.000000e+00> : vector<4xf32>
    %55 = vector.multi_reduction <add>, %54, %cst_25 [1] : vector<4x4xf32> to vector<4xf32>
    %56 = vector.shape_cast %55 : vector<4xf32> to vector<4x1xf32>
    %57 = tpu.reciprocal %56 {approx = true} : vector<4x1xf32> -> vector<4x1xf32>
    %58 = vector.broadcast %57 : vector<4x1xf32> to vector<4x4xf32>
    %59 = arith.mulf %54, %58 : vector<4x4xf32>
    %60 = arith.truncf %59 : vector<4x4xf32> to vector<4x4xbf16>
    %61 = arith.truncf %44 : vector<4x64xf32> to vector<4x64xbf16>
    %cst_26 = arith.constant dense<0.000000e+00> : vector<4x64xf32>
    %62 = tpu.matmul %60, %61, %cst_26 {dimension_numbers = #tpu.dot_dimension_numbers<[1], [0], [0], [1], [0, 0, 1, 1], [], []>} : vector<4x4xbf16>, vector<4x64xbf16>, vector<4x64xf32> -> vector<4x64xf32>
    %63 = vector.extract_strided_slice %41 {offsets = [0, 64], sizes = [4, 64], strides = [1, 1]} : vector<8x384xf32> to vector<4x64xf32>
    %64 = vector.extract_strided_slice %41 {offsets = [0, 192], sizes = [4, 64], strides = [1, 1]} : vector<8x384xf32> to vector<4x64xf32>
    %65 = vector.extract_strided_slice %41 {offsets = [0, 320], sizes = [4, 64], strides = [1, 1]} : vector<8x384xf32> to vector<4x64xf32>
    %66 = arith.truncf %63 : vector<4x64xf32> to vector<4x64xbf16>
    %67 = arith.truncf %64 : vector<4x64xf32> to vector<4x64xbf16>
    %cst_27 = arith.constant dense<0.000000e+00> : vector<4x4xf32>
    %68 = tpu.matmul %66, %67, %cst_27 {dimension_numbers = #tpu.dot_dimension_numbers<[1], [1], [0], [0], [0, 0, 1, 0], [], []>} : vector<4x64xbf16>, vector<4x64xbf16>, vector<4x4xf32> -> vector<4x4xf32>
    %cst_28 = arith.constant 1.250000e-01 : f32
    %69 = vector.broadcast %cst_28 : f32 to vector<4x4xf32>
    %70 = arith.mulf %68, %69 : vector<4x4xf32>
    %cst_29 = arith.constant dense<0xFF800000> : vector<4xf32>
    %71 = vector.multi_reduction <maximumf>, %70, %cst_29 [1] : vector<4x4xf32> to vector<4xf32>
    %72 = vector.shape_cast %71 : vector<4xf32> to vector<4x1xf32>
    %73 = vector.broadcast %72 : vector<4x1xf32> to vector<4x4xf32>
    %74 = arith.subf %70, %73 : vector<4x4xf32>
    %75 = math.exp %74 : vector<4x4xf32>
    %cst_30 = arith.constant dense<0.000000e+00> : vector<4xf32>
    %76 = vector.multi_reduction <add>, %75, %cst_30 [1] : vector<4x4xf32> to vector<4xf32>
    %77 = vector.shape_cast %76 : vector<4xf32> to vector<4x1xf32>
    %78 = tpu.reciprocal %77 {approx = true} : vector<4x1xf32> -> vector<4x1xf32>
    %79 = vector.broadcast %78 : vector<4x1xf32> to vector<4x4xf32>
    %80 = arith.mulf %75, %79 : vector<4x4xf32>
    %81 = arith.truncf %80 : vector<4x4xf32> to vector<4x4xbf16>
    %82 = arith.truncf %65 : vector<4x64xf32> to vector<4x64xbf16>
    %cst_31 = arith.constant dense<0.000000e+00> : vector<4x64xf32>
    %83 = tpu.matmul %81, %82, %cst_31 {dimension_numbers = #tpu.dot_dimension_numbers<[1], [0], [0], [1], [0, 0, 1, 1], [], []>} : vector<4x4xbf16>, vector<4x64xbf16>, vector<4x64xf32> -> vector<4x64xf32>
    %84 = tpu.concatenate %62, %83 in 1 : vector<4x64xf32>, vector<4x64xf32> -> vector<4x128xf32>
    %85 = vector.extract_strided_slice %41 {offsets = [4, 0], sizes = [4, 64], strides = [1, 1]} : vector<8x384xf32> to vector<4x64xf32>
    %86 = vector.extract_strided_slice %41 {offsets = [4, 128], sizes = [4, 64], strides = [1, 1]} : vector<8x384xf32> to vector<4x64xf32>
    %87 = vector.extract_strided_slice %41 {offsets = [4, 256], sizes = [4, 64], strides = [1, 1]} : vector<8x384xf32> to vector<4x64xf32>
    %88 = arith.truncf %85 : vector<4x64xf32> to vector<4x64xbf16>
    %89 = arith.truncf %86 : vector<4x64xf32> to vector<4x64xbf16>
    %cst_32 = arith.constant dense<0.000000e+00> : vector<4x4xf32>
    %90 = tpu.matmul %88, %89, %cst_32 {dimension_numbers = #tpu.dot_dimension_numbers<[1], [1], [0], [0], [0, 0, 1, 0], [], []>} : vector<4x64xbf16>, vector<4x64xbf16>, vector<4x4xf32> -> vector<4x4xf32>
    %cst_33 = arith.constant 1.250000e-01 : f32
    %91 = vector.broadcast %cst_33 : f32 to vector<4x4xf32>
    %92 = arith.mulf %90, %91 : vector<4x4xf32>
    %cst_34 = arith.constant dense<0xFF800000> : vector<4xf32>
    %93 = vector.multi_reduction <maximumf>, %92, %cst_34 [1] : vector<4x4xf32> to vector<4xf32>
    %94 = vector.shape_cast %93 : vector<4xf32> to vector<4x1xf32>
    %95 = vector.broadcast %94 : vector<4x1xf32> to vector<4x4xf32>
    %96 = arith.subf %92, %95 : vector<4x4xf32>
    %97 = math.exp %96 : vector<4x4xf32>
    %cst_35 = arith.constant dense<0.000000e+00> : vector<4xf32>
    %98 = vector.multi_reduction <add>, %97, %cst_35 [1] : vector<4x4xf32> to vector<4xf32>
    %99 = vector.shape_cast %98 : vector<4xf32> to vector<4x1xf32>
    %100 = tpu.reciprocal %99 {approx = true} : vector<4x1xf32> -> vector<4x1xf32>
    %101 = vector.broadcast %100 : vector<4x1xf32> to vector<4x4xf32>
    %102 = arith.mulf %97, %101 : vector<4x4xf32>
    %103 = arith.truncf %102 : vector<4x4xf32> to vector<4x4xbf16>
    %104 = arith.truncf %87 : vector<4x64xf32> to vector<4x64xbf16>
    %cst_36 = arith.constant dense<0.000000e+00> : vector<4x64xf32>
    %105 = tpu.matmul %103, %104, %cst_36 {dimension_numbers = #tpu.dot_dimension_numbers<[1], [0], [0], [1], [0, 0, 1, 1], [], []>} : vector<4x4xbf16>, vector<4x64xbf16>, vector<4x64xf32> -> vector<4x64xf32>
    %106 = vector.extract_strided_slice %41 {offsets = [4, 64], sizes = [4, 64], strides = [1, 1]} : vector<8x384xf32> to vector<4x64xf32>
    %107 = vector.extract_strided_slice %41 {offsets = [4, 192], sizes = [4, 64], strides = [1, 1]} : vector<8x384xf32> to vector<4x64xf32>
    %108 = vector.extract_strided_slice %41 {offsets = [4, 320], sizes = [4, 64], strides = [1, 1]} : vector<8x384xf32> to vector<4x64xf32>
    %109 = arith.truncf %106 : vector<4x64xf32> to vector<4x64xbf16>
    %110 = arith.truncf %107 : vector<4x64xf32> to vector<4x64xbf16>
    %cst_37 = arith.constant dense<0.000000e+00> : vector<4x4xf32>
    %111 = tpu.matmul %109, %110, %cst_37 {dimension_numbers = #tpu.dot_dimension_numbers<[1], [1], [0], [0], [0, 0, 1, 0], [], []>} : vector<4x64xbf16>, vector<4x64xbf16>, vector<4x4xf32> -> vector<4x4xf32>
    %cst_38 = arith.constant 1.250000e-01 : f32
    %112 = vector.broadcast %cst_38 : f32 to vector<4x4xf32>
    %113 = arith.mulf %111, %112 : vector<4x4xf32>
    %cst_39 = arith.constant dense<0xFF800000> : vector<4xf32>
    %114 = vector.multi_reduction <maximumf>, %113, %cst_39 [1] : vector<4x4xf32> to vector<4xf32>
    %115 = vector.shape_cast %114 : vector<4xf32> to vector<4x1xf32>
    %116 = vector.broadcast %115 : vector<4x1xf32> to vector<4x4xf32>
    %117 = arith.subf %113, %116 : vector<4x4xf32>
    %118 = math.exp %117 : vector<4x4xf32>
    %cst_40 = arith.constant dense<0.000000e+00> : vector<4xf32>
    %119 = vector.multi_reduction <add>, %118, %cst_40 [1] : vector<4x4xf32> to vector<4xf32>
    %120 = vector.shape_cast %119 : vector<4xf32> to vector<4x1xf32>
    %121 = tpu.reciprocal %120 {approx = true} : vector<4x1xf32> -> vector<4x1xf32>
    %122 = vector.broadcast %121 : vector<4x1xf32> to vector<4x4xf32>
    %123 = arith.mulf %118, %122 : vector<4x4xf32>
    %124 = arith.truncf %123 : vector<4x4xf32> to vector<4x4xbf16>
    %125 = arith.truncf %108 : vector<4x64xf32> to vector<4x64xbf16>
    %cst_41 = arith.constant dense<0.000000e+00> : vector<4x64xf32>
    %126 = tpu.matmul %124, %125, %cst_41 {dimension_numbers = #tpu.dot_dimension_numbers<[1], [0], [0], [1], [0, 0, 1, 1], [], []>} : vector<4x4xbf16>, vector<4x64xbf16>, vector<4x64xf32> -> vector<4x64xf32>
    %127 = tpu.concatenate %105, %126 in 1 : vector<4x64xf32>, vector<4x64xf32> -> vector<4x128xf32>
    %128 = tpu.concatenate %84, %127 in 0 : vector<4x128xf32>, vector<4x128xf32> -> vector<8x128xf32>
    %c0_42 = arith.constant 0 : index
    %c0_43 = arith.constant 0 : index
    %c0_44 = arith.constant 0 : index
    %129 = vector.load %arg9[%c0_42, %c0_43, %c0_44] : memref<1x128x128xbf16, #tpu.memory_space<vmem>>, vector<1x128x128xbf16>
    %130 = vector.shape_cast %129 : vector<1x128x128xbf16> to vector<128x128xbf16>
    %131 = arith.truncf %128 : vector<8x128xf32> to vector<8x128xbf16>
    %cst_45 = arith.constant dense<0.000000e+00> : vector<8x128xf32>
    %132 = tpu.matmul %131, %130, %cst_45 {dimension_numbers = #tpu.dot_dimension_numbers<[1], [0], [0], [1], [0, 0, 1, 1], [], []>} : vector<8x128xbf16>, vector<128x128xbf16>, vector<8x128xf32> -> vector<8x128xf32>
    %133 = arith.addf %7, %132 : vector<8x128xf32>
    %c0_46 = arith.constant 0 : index
    %c0_47 = arith.constant 0 : index
    %c0_48 = arith.constant 0 : index
    %134 = vector.load %arg10[%c0_46, %c0_47, %c0_48] : memref<1x1x128xf32, #tpu.memory_space<vmem>>, vector<1x1x128xf32>
    %135 = vector.shape_cast %134 : vector<1x1x128xf32> to vector<1x128xf32>
    %136 = vector.broadcast %135 : vector<1x128xf32> to vector<8x128xf32>
    %137 = arith.addf %133, %136 : vector<8x128xf32>
    %c0_49 = arith.constant 0 : index
    %c0_50 = arith.constant 0 : index
    %c0_51 = arith.constant 0 : index
    %138 = vector.load %arg11[%c0_49, %c0_50, %c0_51] : memref<1x1x128xf32, #tpu.memory_space<vmem>>, vector<1x1x128xf32>
    %139 = vector.shape_cast %138 : vector<1x1x128xf32> to vector<1x128xf32>
    %c0_52 = arith.constant 0 : index
    %c0_53 = arith.constant 0 : index
    %c0_54 = arith.constant 0 : index
    %140 = vector.load %arg12[%c0_52, %c0_53, %c0_54] : memref<1x1x128xf32, #tpu.memory_space<vmem>>, vector<1x1x128xf32>
    %141 = vector.shape_cast %140 : vector<1x1x128xf32> to vector<1x128xf32>
    %cst_55 = arith.constant dense<0.000000e+00> : vector<8xf32>
    %142 = vector.multi_reduction <add>, %137, %cst_55 [1] : vector<8x128xf32> to vector<8xf32>
    %143 = vector.shape_cast %142 : vector<8xf32> to vector<8x1xf32>
    %cst_56 = arith.constant 1.280000e+02 : f32
    %144 = vector.broadcast %cst_56 : f32 to vector<8x1xf32>
    %145 = arith.divf %143, %144 : vector<8x1xf32>
    %146 = vector.broadcast %145 : vector<8x1xf32> to vector<8x128xf32>
    %147 = arith.subf %137, %146 : vector<8x128xf32>
    %148 = arith.mulf %147, %147 : vector<8x128xf32>
    %cst_57 = arith.constant dense<0.000000e+00> : vector<8xf32>
    %149 = vector.multi_reduction <add>, %148, %cst_57 [1] : vector<8x128xf32> to vector<8xf32>
    %150 = vector.shape_cast %149 : vector<8xf32> to vector<8x1xf32>
    %cst_58 = arith.constant 1.280000e+02 : f32
    %151 = vector.broadcast %cst_58 : f32 to vector<8x1xf32>
    %152 = arith.divf %150, %151 : vector<8x1xf32>
    %153 = vector.broadcast %145 : vector<8x1xf32> to vector<8x128xf32>
    %154 = arith.subf %137, %153 : vector<8x128xf32>
    %cst_59 = arith.constant 9.99999974E-6 : f32
    %155 = vector.broadcast %cst_59 : f32 to vector<8x1xf32>
    %156 = arith.addf %152, %155 : vector<8x1xf32>
    %157 = math.rsqrt %156 : vector<8x1xf32>
    %158 = vector.broadcast %157 : vector<8x1xf32> to vector<8x128xf32>
    %159 = arith.mulf %154, %158 : vector<8x128xf32>
    %160 = vector.broadcast %139 : vector<1x128xf32> to vector<8x128xf32>
    %161 = arith.mulf %159, %160 : vector<8x128xf32>
    %162 = vector.broadcast %141 : vector<1x128xf32> to vector<8x128xf32>
    %163 = arith.addf %161, %162 : vector<8x128xf32>
    %c0_60 = arith.constant 0 : index
    %c0_61 = arith.constant 0 : index
    %c0_62 = arith.constant 0 : index
    %164 = vector.load %arg13[%c0_60, %c0_61, %c0_62] : memref<1x128x256xbf16, #tpu.memory_space<vmem>>, vector<1x128x256xbf16>
    %165 = vector.shape_cast %164 : vector<1x128x256xbf16> to vector<128x256xbf16>
    %166 = arith.truncf %163 : vector<8x128xf32> to vector<8x128xbf16>
    %cst_63 = arith.constant dense<0.000000e+00> : vector<8x256xf32>
    %167 = tpu.matmul %166, %165, %cst_63 {dimension_numbers = #tpu.dot_dimension_numbers<[1], [0], [0], [1], [0, 0, 1, 1], [], []>} : vector<8x128xbf16>, vector<128x256xbf16>, vector<8x256xf32> -> vector<8x256xf32>
    %c0_64 = arith.constant 0 : index
    %c0_65 = arith.constant 0 : index
    %c0_66 = arith.constant 0 : index
    %168 = vector.load %arg14[%c0_64, %c0_65, %c0_66] : memref<1x1x256xf32, #tpu.memory_space<vmem>>, vector<1x1x256xf32>
    %169 = vector.shape_cast %168 : vector<1x1x256xf32> to vector<1x256xf32>
    %170 = vector.broadcast %169 : vector<1x256xf32> to vector<8x256xf32>
    %171 = arith.addf %167, %170 : vector<8x256xf32>
    %172 = arith.mulf %171, %171 : vector<8x256xf32>
    %173 = arith.mulf %171, %172 : vector<8x256xf32>
    %cst_67 = arith.constant 4.471500e-02 : f32
    %174 = vector.broadcast %cst_67 : f32 to vector<8x256xf32>
    %175 = arith.mulf %174, %173 : vector<8x256xf32>
    %176 = arith.addf %171, %175 : vector<8x256xf32>
    %cst_68 = arith.constant 0.797884583 : f32
    %177 = vector.broadcast %cst_68 : f32 to vector<8x256xf32>
    %178 = arith.mulf %177, %176 : vector<8x256xf32>
    %179 = math.tanh %178 : vector<8x256xf32>
    %cst_69 = arith.constant 1.000000e+00 : f32
    %180 = vector.broadcast %cst_69 : f32 to vector<8x256xf32>
    %181 = arith.addf %180, %179 : vector<8x256xf32>
    %cst_70 = arith.constant 5.000000e-01 : f32
    %182 = vector.broadcast %cst_70 : f32 to vector<8x256xf32>
    %183 = arith.mulf %182, %181 : vector<8x256xf32>
    %184 = arith.mulf %171, %183 : vector<8x256xf32>
    %c0_71 = arith.constant 0 : index
    %c0_72 = arith.constant 0 : index
    %c0_73 = arith.constant 0 : index
    %185 = vector.load %arg15[%c0_71, %c0_72, %c0_73] : memref<1x256x128xbf16, #tpu.memory_space<vmem>>, vector<1x256x128xbf16>
    %186 = vector.shape_cast %185 : vector<1x256x128xbf16> to vector<256x128xbf16>
    %187 = arith.truncf %184 : vector<8x256xf32> to vector<8x256xbf16>
    %cst_74 = arith.constant dense<0.000000e+00> : vector<8x128xf32>
    %188 = tpu.matmul %187, %186, %cst_74 {dimension_numbers = #tpu.dot_dimension_numbers<[1], [0], [0], [1], [0, 0, 1, 1], [], []>} : vector<8x256xbf16>, vector<256x128xbf16>, vector<8x128xf32> -> vector<8x128xf32>
    %189 = arith.addf %137, %188 : vector<8x128xf32>
    %c0_75 = arith.constant 0 : index
    %c0_76 = arith.constant 0 : index
    %c0_77 = arith.constant 0 : index
    %190 = vector.load %arg16[%c0_75, %c0_76, %c0_77] : memref<1x1x128xf32, #tpu.memory_space<vmem>>, vector<1x1x128xf32>
    %191 = vector.shape_cast %190 : vector<1x1x128xf32> to vector<1x128xf32>
    %192 = vector.broadcast %191 : vector<1x128xf32> to vector<8x128xf32>
    %193 = arith.addf %189, %192 : vector<8x128xf32>
    %c1_i32 = arith.constant 1 : i32
    %194 = arith.cmpi eq, %arg0, %c1_i32 : i32
    %195 = arith.extui %194 : i1 to i32
    %c0_i32_78 = arith.constant 0 : i32
    %196 = arith.cmpi ne, %195, %c0_i32_78 : i32
    scf.if %196 {
      %c0_81 = arith.constant 0 : index
      %c0_82 = arith.constant 0 : index
      %200 = vector.load %arg17[%c0_81, %c0_82] : memref<1x128xf32, #tpu.memory_space<vmem>>, vector<1x128xf32>
      %c0_83 = arith.constant 0 : index
      %c0_84 = arith.constant 0 : index
      %201 = vector.load %arg18[%c0_83, %c0_84] : memref<1x128xf32, #tpu.memory_space<vmem>>, vector<1x128xf32>
      %cst_85 = arith.constant dense<0.000000e+00> : vector<8xf32>
      %202 = vector.multi_reduction <add>, %193, %cst_85 [1] : vector<8x128xf32> to vector<8xf32>
      %203 = vector.shape_cast %202 : vector<8xf32> to vector<8x1xf32>
      %cst_86 = arith.constant 1.280000e+02 : f32
      %204 = vector.broadcast %cst_86 : f32 to vector<8x1xf32>
      %205 = arith.divf %203, %204 : vector<8x1xf32>
      %206 = vector.broadcast %205 : vector<8x1xf32> to vector<8x128xf32>
      %207 = arith.subf %193, %206 : vector<8x128xf32>
      %208 = arith.mulf %207, %207 : vector<8x128xf32>
      %cst_87 = arith.constant dense<0.000000e+00> : vector<8xf32>
      %209 = vector.multi_reduction <add>, %208, %cst_87 [1] : vector<8x128xf32> to vector<8xf32>
      %210 = vector.shape_cast %209 : vector<8xf32> to vector<8x1xf32>
      %cst_88 = arith.constant 1.280000e+02 : f32
      %211 = vector.broadcast %cst_88 : f32 to vector<8x1xf32>
      %212 = arith.divf %210, %211 : vector<8x1xf32>
      %213 = vector.broadcast %205 : vector<8x1xf32> to vector<8x128xf32>
      %214 = arith.subf %193, %213 : vector<8x128xf32>
      %cst_89 = arith.constant 9.99999974E-6 : f32
      %215 = vector.broadcast %cst_89 : f32 to vector<8x1xf32>
      %216 = arith.addf %212, %215 : vector<8x1xf32>
      %217 = math.rsqrt %216 : vector<8x1xf32>
      %218 = vector.broadcast %217 : vector<8x1xf32> to vector<8x128xf32>
      %219 = arith.mulf %214, %218 : vector<8x128xf32>
      %220 = vector.broadcast %200 : vector<1x128xf32> to vector<8x128xf32>
      %221 = arith.mulf %219, %220 : vector<8x128xf32>
      %222 = vector.broadcast %201 : vector<1x128xf32> to vector<8x128xf32>
      %223 = arith.addf %221, %222 : vector<8x128xf32>
      %224 = vector.extract_strided_slice %223 {offsets = [0, 0], sizes = [4, 128], strides = [1, 1]} : vector<8x128xf32> to vector<4x128xf32>
      %c0_90 = arith.constant 0 : index
      %c0_91 = arith.constant 0 : index
      %c0_92 = arith.constant 0 : index
      %225 = vector.load %arg19[%c0_90, %c0_91, %c0_92] : memref<2x4x128xf32, #tpu.memory_space<vmem>>, vector<1x4x128xf32>
      %226 = vector.shape_cast %225 : vector<1x4x128xf32> to vector<4x128xf32>
      %227 = vector.shape_cast %224 : vector<4x128xf32> to vector<1x4x128xf32>
      tpu.vector_store %arg19[%c0_90, %c0_91, %c0_92], %227 {strides = array<i32>} : memref<2x4x128xf32, #tpu.memory_space<vmem>>, vector<1x4x128xf32>,
      %228 = vector.extract_strided_slice %223 {offsets = [4, 0], sizes = [4, 128], strides = [1, 1]} : vector<8x128xf32> to vector<4x128xf32>
      %c1_93 = arith.constant 1 : index
      %c0_94 = arith.constant 0 : index
      %c0_95 = arith.constant 0 : index
      %229 = vector.load %arg19[%c1_93, %c0_94, %c0_95] : memref<2x4x128xf32, #tpu.memory_space<vmem>>, vector<1x4x128xf32>
      %230 = vector.shape_cast %229 : vector<1x4x128xf32> to vector<4x128xf32>
      %231 = vector.shape_cast %228 : vector<4x128xf32> to vector<1x4x128xf32>
      tpu.vector_store %arg19[%c1_93, %c0_94, %c0_95], %231 {strides = array<i32>} : memref<2x4x128xf32, #tpu.memory_space<vmem>>, vector<1x4x128xf32>,
    } else {
    }
    %c1_i32_79 = arith.constant 1 : i32
    %197 = arith.cmpi slt, %arg0, %c1_i32_79 : i32
    %198 = arith.extui %197 : i1 to i32
    %c0_i32_80 = arith.constant 0 : i32
    %199 = arith.cmpi ne, %198, %c0_i32_80 : i32
    scf.if %199 {
      %200 = vector.extract_strided_slice %193 {offsets = [0, 0], sizes = [4, 128], strides = [1, 1]} : vector<8x128xf32> to vector<4x128xf32>
      %c0_81 = arith.constant 0 : index
      %c0_82 = arith.constant 0 : index
      %c0_83 = arith.constant 0 : index
      %201 = vector.load %arg19[%c0_81, %c0_82, %c0_83] : memref<2x4x128xf32, #tpu.memory_space<vmem>>, vector<1x4x128xf32>
      %202 = vector.shape_cast %201 : vector<1x4x128xf32> to vector<4x128xf32>
      %203 = vector.shape_cast %200 : vector<4x128xf32> to vector<1x4x128xf32>
      tpu.vector_store %arg19[%c0_81, %c0_82, %c0_83], %203 {strides = array<i32>} : memref<2x4x128xf32, #tpu.memory_space<vmem>>, vector<1x4x128xf32>,
      %204 = vector.extract_strided_slice %193 {offsets = [4, 0], sizes = [4, 128], strides = [1, 1]} : vector<8x128xf32> to vector<4x128xf32>
      %c1_84 = arith.constant 1 : index
      %c0_85 = arith.constant 0 : index
      %c0_86 = arith.constant 0 : index
      %205 = vector.load %arg19[%c1_84, %c0_85, %c0_86] : memref<2x4x128xf32, #tpu.memory_space<vmem>>, vector<1x4x128xf32>
      %206 = vector.shape_cast %205 : vector<1x4x128xf32> to vector<4x128xf32>
      %207 = vector.shape_cast %204 : vector<4x128xf32> to vector<1x4x128xf32>
      tpu.vector_store %arg19[%c1_84, %c0_85, %c0_86], %207 {strides = array<i32>} : memref<2x4x128xf32, #tpu.memory_space<vmem>>, vector<1x4x128xf32>,
    } else {
    }
    return
  }
  func.func @transform_0(%arg0: i32) -> (i32, i32) {
    %c0_i32 = arith.constant 0 : i32
    %c0_i32_0 = arith.constant 0 : i32
    %c0_i32_1 = arith.constant 0 : i32
    return %c0_i32, %c0_i32_0 : i32, i32
  }
  func.func @transform_1(%arg0: i32) -> (i32, i32) {
    %c0_i32 = arith.constant 0 : i32
    %c0_i32_0 = arith.constant 0 : i32
    %c0_i32_1 = arith.constant 0 : i32
    return %c0_i32, %c0_i32_0 : i32, i32
  }
  func.func @transform_2(%arg0: i32) -> (i32, i32) {
    %c0_i32 = arith.constant 0 : i32
    %c0_i32_0 = arith.constant 0 : i32
    %c0_i32_1 = arith.constant 0 : i32
    return %c0_i32, %c0_i32_0 : i32, i32
  }
  func.func @transform_3(%arg0: i32) -> (i32, i32, i32) {
    %c0_i32 = arith.constant 0 : i32
    %c0_i32_0 = arith.constant 0 : i32
    %c0_i32_1 = arith.constant 0 : i32
    %c0_i32_2 = arith.constant 0 : i32
    return %c0_i32, %c0_i32_0, %c0_i32_1 : i32, i32, i32
  }
  func.func @transform_4(%arg0: i32) -> (i32, i32, i32) {
    %c0_i32 = arith.constant 0 : i32
    %c0_i32_0 = arith.constant 0 : i32
    %c0_i32_1 = arith.constant 0 : i32
    return %arg0, %c0_i32, %c0_i32_0 : i32, i32, i32
  }
  func.func @transform_5(%arg0: i32) -> (i32, i32, i32) {
    %c0_i32 = arith.constant 0 : i32
    %c0_i32_0 = arith.constant 0 : i32
    %c0_i32_1 = arith.constant 0 : i32
    return %arg0, %c0_i32, %c0_i32_0 : i32, i32, i32
  }
  func.func @transform_6(%arg0: i32) -> (i32, i32, i32) {
    %c0_i32 = arith.constant 0 : i32
    %c0_i32_0 = arith.constant 0 : i32
    %c0_i32_1 = arith.constant 0 : i32
    return %arg0, %c0_i32, %c0_i32_0 : i32, i32, i32
  }
  func.func @transform_7(%arg0: i32) -> (i32, i32, i32) {
    %c0_i32 = arith.constant 0 : i32
    %c0_i32_0 = arith.constant 0 : i32
    %c0_i32_1 = arith.constant 0 : i32
    return %arg0, %c0_i32, %c0_i32_0 : i32, i32, i32
  }
  func.func @transform_8(%arg0: i32) -> (i32, i32, i32) {
    %c0_i32 = arith.constant 0 : i32
    %c0_i32_0 = arith.constant 0 : i32
    %c0_i32_1 = arith.constant 0 : i32
    return %arg0, %c0_i32, %c0_i32_0 : i32, i32, i32
  }
  func.func @transform_9(%arg0: i32) -> (i32, i32, i32) {
    %c0_i32 = arith.constant 0 : i32
    %c0_i32_0 = arith.constant 0 : i32
    %c0_i32_1 = arith.constant 0 : i32
    return %arg0, %c0_i32, %c0_i32_0 : i32, i32, i32
  }
  func.func @transform_10(%arg0: i32) -> (i32, i32, i32) {
    %c0_i32 = arith.constant 0 : i32
    %c0_i32_0 = arith.constant 0 : i32
    %c0_i32_1 = arith.constant 0 : i32
    return %arg0, %c0_i32, %c0_i32_0 : i32, i32, i32
  }
  func.func @transform_11(%arg0: i32) -> (i32, i32, i32) {
    %c0_i32 = arith.constant 0 : i32
    %c0_i32_0 = arith.constant 0 : i32
    %c0_i32_1 = arith.constant 0 : i32
    return %arg0, %c0_i32, %c0_i32_0 : i32, i32, i32
  }
  func.func @transform_12(%arg0: i32) -> (i32, i32, i32) {
    %c0_i32 = arith.constant 0 : i32
    %c0_i32_0 = arith.constant 0 : i32
    %c0_i32_1 = arith.constant 0 : i32
    return %arg0, %c0_i32, %c0_i32_0 : i32, i32, i32
  }
  func.func @transform_13(%arg0: i32) -> (i32, i32, i32) {
    %c0_i32 = arith.constant 0 : i32
    %c0_i32_0 = arith.constant 0 : i32
    %c0_i32_1 = arith.constant 0 : i32
    return %arg0, %c0_i32, %c0_i32_0 : i32, i32, i32
  }
  func.func @transform_14(%arg0: i32) -> (i32, i32, i32) {
    %c0_i32 = arith.constant 0 : i32
    %c0_i32_0 = arith.constant 0 : i32
    %c0_i32_1 = arith.constant 0 : i32
    return %arg0, %c0_i32, %c0_i32_0 : i32, i32, i32
  }
  func.func @transform_15(%arg0: i32) -> (i32, i32, i32) {
    %c0_i32 = arith.constant 0 : i32
    %c0_i32_0 = arith.constant 0 : i32
    %c0_i32_1 = arith.constant 0 : i32
    return %arg0, %c0_i32, %c0_i32_0 : i32, i32, i32
  }
  func.func @transform_16(%arg0: i32) -> (i32, i32) {
    %c0_i32 = arith.constant 0 : i32
    %c0_i32_0 = arith.constant 0 : i32
    %c0_i32_1 = arith.constant 0 : i32
    return %c0_i32, %c0_i32_0 : i32, i32
  }
  func.func @transform_17(%arg0: i32) -> (i32, i32) {
    %c0_i32 = arith.constant 0 : i32
    %c0_i32_0 = arith.constant 0 : i32
    %c0_i32_1 = arith.constant 0 : i32
    return %c0_i32, %c0_i32_0 : i32, i32
  }
  func.func @transform_18(%arg0: i32) -> (i32, i32, i32) {
    %c0_i32 = arith.constant 0 : i32
    %c0_i32_0 = arith.constant 0 : i32
    %c0_i32_1 = arith.constant 0 : i32
    %c0_i32_2 = arith.constant 0 : i32
    return %c0_i32, %c0_i32_0, %c0_i32_1 : i32, i32, i32
  }
}

module attributes {stable_mosaic.version = 11 : i64} {
  func.func @_cross_stack_kernel(%arg0: i32, %arg1: memref<2x4x128xf32, #tpu.memory_space<vmem>>, %arg2: memref<2x8x128xf32, #tpu.memory_space<vmem>>, %arg3: memref<1x1x128xf32, #tpu.memory_space<vmem>>, %arg4: memref<1x1x128xf32, #tpu.memory_space<vmem>>, %arg5: memref<1x1x128xf32, #tpu.memory_space<vmem>>, %arg6: memref<1x1x128xf32, #tpu.memory_space<vmem>>, %arg7: memref<1x128x128xbf16, #tpu.memory_space<vmem>>, %arg8: memref<1x1x128xf32, #tpu.memory_space<vmem>>, %arg9: memref<1x128x256xbf16, #tpu.memory_space<vmem>>, %arg10: memref<1x1x256xf32, #tpu.memory_space<vmem>>, %arg11: memref<1x128x128xbf16, #tpu.memory_space<vmem>>, %arg12: memref<1x1x128xf32, #tpu.memory_space<vmem>>, %arg13: memref<1x1x128xf32, #tpu.memory_space<vmem>>, %arg14: memref<1x1x128xf32, #tpu.memory_space<vmem>>, %arg15: memref<1x128x256xbf16, #tpu.memory_space<vmem>>, %arg16: memref<1x1x256xf32, #tpu.memory_space<vmem>>, %arg17: memref<1x256x128xbf16, #tpu.memory_space<vmem>>, %arg18: memref<1x1x128xf32, #tpu.memory_space<vmem>>, %arg19: memref<128x8xbf16, #tpu.memory_space<vmem>>, %arg20: memref<1x8xf32, #tpu.memory_space<vmem>>, %arg21: memref<2x8xf32, #tpu.memory_space<vmem>>, %arg22: memref<2x2x4x8xf32, #tpu.memory_space<vmem>>, %arg23: memref<8x128xf32, #tpu.memory_space<vmem>>) attributes {dimension_semantics = [#tpu.dimension_semantics<arbitrary>], iteration_bounds = array<i64: 2>, scalar_prefetch = 0 : i64, scratch_operands = 1 : i64, tpu.core_type = #tpu.core_type<tc>, window_params = [{pipeline_mode = #tpu.pipeline_mode<synchronous>, transform_indices = @transform_0, window_bounds = array<i64: 2, 4, 128>}, {pipeline_mode = #tpu.pipeline_mode<synchronous>, transform_indices = @transform_1, window_bounds = array<i64: 2, 8, 128>}, {transform_indices = @transform_2, window_bounds = array<i64: 1, 1, 128>}, {transform_indices = @transform_3, window_bounds = array<i64: 1, 1, 128>}, {transform_indices = @transform_4, window_bounds = array<i64: 1, 1, 128>}, {transform_indices = @transform_5, window_bounds = array<i64: 1, 1, 128>}, {transform_indices = @transform_6, window_bounds = array<i64: 1, 128, 128>}, {transform_indices = @transform_7, window_bounds = array<i64: 1, 1, 128>}, {transform_indices = @transform_8, window_bounds = array<i64: 1, 128, 256>}, {transform_indices = @transform_9, window_bounds = array<i64: 1, 1, 256>}, {transform_indices = @transform_10, window_bounds = array<i64: 1, 128, 128>}, {transform_indices = @transform_11, window_bounds = array<i64: 1, 1, 128>}, {transform_indices = @transform_12, window_bounds = array<i64: 1, 1, 128>}, {transform_indices = @transform_13, window_bounds = array<i64: 1, 1, 128>}, {transform_indices = @transform_14, window_bounds = array<i64: 1, 128, 256>}, {transform_indices = @transform_15, window_bounds = array<i64: 1, 1, 256>}, {transform_indices = @transform_16, window_bounds = array<i64: 1, 256, 128>}, {transform_indices = @transform_17, window_bounds = array<i64: 1, 1, 128>}, {pipeline_mode = #tpu.pipeline_mode<synchronous>, transform_indices = @transform_18, window_bounds = array<i64: 128, 8>}, {pipeline_mode = #tpu.pipeline_mode<synchronous>, transform_indices = @transform_19, window_bounds = array<i64: 1, 8>}, {pipeline_mode = #tpu.pipeline_mode<synchronous>, transform_indices = @transform_20, window_bounds = array<i64: 2, 8>}, {pipeline_mode = #tpu.pipeline_mode<synchronous>, transform_indices = @transform_21, window_bounds = array<i64: 2, 2, 4, 8>}]} {
    %c0_i32 = arith.constant 0 : i32
    %0 = arith.cmpi eq, %arg0, %c0_i32 : i32
    %1 = arith.extui %0 : i1 to i32
    %c0_i32_0 = arith.constant 0 : i32
    %2 = arith.cmpi ne, %1, %c0_i32_0 : i32
    scf.if %2 {
      %c0_109 = arith.constant 0 : index
      %c0_110 = arith.constant 0 : index
      %c0_111 = arith.constant 0 : index
      %245 = vector.load %arg1[%c0_109, %c0_110, %c0_111] : memref<2x4x128xf32, #tpu.memory_space<vmem>>, vector<1x4x128xf32>
      %246 = vector.shape_cast %245 : vector<1x4x128xf32> to vector<4x128xf32>
      %c1_112 = arith.constant 1 : index
      %c0_113 = arith.constant 0 : index
      %c0_114 = arith.constant 0 : index
      %247 = vector.load %arg1[%c1_112, %c0_113, %c0_114] : memref<2x4x128xf32, #tpu.memory_space<vmem>>, vector<1x4x128xf32>
      %248 = vector.shape_cast %247 : vector<1x4x128xf32> to vector<4x128xf32>
      %249 = tpu.concatenate %246, %248 in 0 : vector<4x128xf32>, vector<4x128xf32> -> vector<8x128xf32>
      %c0_115 = arith.constant 0 : index
      %c0_116 = arith.constant 0 : index
      %250 = vector.load %arg23[%c0_115, %c0_116] : memref<8x128xf32, #tpu.memory_space<vmem>>, vector<8x128xf32>
      tpu.vector_store %arg23[%c0_115, %c0_116], %249 {strides = array<i32>} : memref<8x128xf32, #tpu.memory_space<vmem>>, vector<8x128xf32>,
    } else {
    }
    %c0 = arith.constant 0 : index
    %c0_1 = arith.constant 0 : index
    %3 = vector.load %arg23[%c0, %c0_1] : memref<8x128xf32, #tpu.memory_space<vmem>>, vector<8x128xf32>
    %c0_2 = arith.constant 0 : index
    %c0_3 = arith.constant 0 : index
    %c0_4 = arith.constant 0 : index
    %4 = vector.load %arg2[%c0_2, %c0_3, %c0_4] : memref<2x8x128xf32, #tpu.memory_space<vmem>>, vector<1x8x128xf32>
    %5 = vector.shape_cast %4 : vector<1x8x128xf32> to vector<8x128xf32>
    %c1 = arith.constant 1 : index
    %c0_5 = arith.constant 0 : index
    %c0_6 = arith.constant 0 : index
    %6 = vector.load %arg2[%c1, %c0_5, %c0_6] : memref<2x8x128xf32, #tpu.memory_space<vmem>>, vector<1x8x128xf32>
    %7 = vector.shape_cast %6 : vector<1x8x128xf32> to vector<8x128xf32>
    %8 = tpu.concatenate %5, %7 in 0 : vector<8x128xf32>, vector<8x128xf32> -> vector<16x128xf32>
    %c0_7 = arith.constant 0 : index
    %c0_8 = arith.constant 0 : index
    %c0_9 = arith.constant 0 : index
    %9 = vector.load %arg3[%c0_7, %c0_8, %c0_9] : memref<1x1x128xf32, #tpu.memory_space<vmem>>, vector<1x1x128xf32>
    %10 = vector.shape_cast %9 : vector<1x1x128xf32> to vector<1x128xf32>
    %c0_10 = arith.constant 0 : index
    %c0_11 = arith.constant 0 : index
    %c0_12 = arith.constant 0 : index
    %11 = vector.load %arg4[%c0_10, %c0_11, %c0_12] : memref<1x1x128xf32, #tpu.memory_space<vmem>>, vector<1x1x128xf32>
    %12 = vector.shape_cast %11 : vector<1x1x128xf32> to vector<1x128xf32>
    %cst = arith.constant dense<0.000000e+00> : vector<8xf32>
    %13 = vector.multi_reduction <add>, %3, %cst [1] : vector<8x128xf32> to vector<8xf32>
    %14 = vector.shape_cast %13 : vector<8xf32> to vector<8x1xf32>
    %cst_13 = arith.constant 1.280000e+02 : f32
    %15 = vector.broadcast %cst_13 : f32 to vector<8x1xf32>
    %16 = arith.divf %14, %15 : vector<8x1xf32>
    %17 = vector.broadcast %16 : vector<8x1xf32> to vector<8x128xf32>
    %18 = arith.subf %3, %17 : vector<8x128xf32>
    %19 = arith.mulf %18, %18 : vector<8x128xf32>
    %cst_14 = arith.constant dense<0.000000e+00> : vector<8xf32>
    %20 = vector.multi_reduction <add>, %19, %cst_14 [1] : vector<8x128xf32> to vector<8xf32>
    %21 = vector.shape_cast %20 : vector<8xf32> to vector<8x1xf32>
    %cst_15 = arith.constant 1.280000e+02 : f32
    %22 = vector.broadcast %cst_15 : f32 to vector<8x1xf32>
    %23 = arith.divf %21, %22 : vector<8x1xf32>
    %24 = vector.broadcast %16 : vector<8x1xf32> to vector<8x128xf32>
    %25 = arith.subf %3, %24 : vector<8x128xf32>
    %cst_16 = arith.constant 9.99999974E-6 : f32
    %26 = vector.broadcast %cst_16 : f32 to vector<8x1xf32>
    %27 = arith.addf %23, %26 : vector<8x1xf32>
    %28 = math.rsqrt %27 : vector<8x1xf32>
    %29 = vector.broadcast %28 : vector<8x1xf32> to vector<8x128xf32>
    %30 = arith.mulf %25, %29 : vector<8x128xf32>
    %31 = vector.broadcast %10 : vector<1x128xf32> to vector<8x128xf32>
    %32 = arith.mulf %30, %31 : vector<8x128xf32>
    %33 = vector.broadcast %12 : vector<1x128xf32> to vector<8x128xf32>
    %34 = arith.addf %32, %33 : vector<8x128xf32>
    %c0_17 = arith.constant 0 : index
    %c0_18 = arith.constant 0 : index
    %c0_19 = arith.constant 0 : index
    %35 = vector.load %arg5[%c0_17, %c0_18, %c0_19] : memref<1x1x128xf32, #tpu.memory_space<vmem>>, vector<1x1x128xf32>
    %36 = vector.shape_cast %35 : vector<1x1x128xf32> to vector<1x128xf32>
    %c0_20 = arith.constant 0 : index
    %c0_21 = arith.constant 0 : index
    %c0_22 = arith.constant 0 : index
    %37 = vector.load %arg6[%c0_20, %c0_21, %c0_22] : memref<1x1x128xf32, #tpu.memory_space<vmem>>, vector<1x1x128xf32>
    %38 = vector.shape_cast %37 : vector<1x1x128xf32> to vector<1x128xf32>
    %cst_23 = arith.constant dense<0.000000e+00> : vector<16xf32>
    %39 = vector.multi_reduction <add>, %8, %cst_23 [1] : vector<16x128xf32> to vector<16xf32>
    %40 = vector.shape_cast %39 : vector<16xf32> to vector<16x1xf32>
    %cst_24 = arith.constant 1.280000e+02 : f32
    %41 = vector.broadcast %cst_24 : f32 to vector<16x1xf32>
    %42 = arith.divf %40, %41 : vector<16x1xf32>
    %43 = vector.broadcast %42 : vector<16x1xf32> to vector<16x128xf32>
    %44 = arith.subf %8, %43 : vector<16x128xf32>
    %45 = arith.mulf %44, %44 : vector<16x128xf32>
    %cst_25 = arith.constant dense<0.000000e+00> : vector<16xf32>
    %46 = vector.multi_reduction <add>, %45, %cst_25 [1] : vector<16x128xf32> to vector<16xf32>
    %47 = vector.shape_cast %46 : vector<16xf32> to vector<16x1xf32>
    %cst_26 = arith.constant 1.280000e+02 : f32
    %48 = vector.broadcast %cst_26 : f32 to vector<16x1xf32>
    %49 = arith.divf %47, %48 : vector<16x1xf32>
    %50 = vector.broadcast %42 : vector<16x1xf32> to vector<16x128xf32>
    %51 = arith.subf %8, %50 : vector<16x128xf32>
    %cst_27 = arith.constant 9.99999974E-6 : f32
    %52 = vector.broadcast %cst_27 : f32 to vector<16x1xf32>
    %53 = arith.addf %49, %52 : vector<16x1xf32>
    %54 = math.rsqrt %53 : vector<16x1xf32>
    %55 = vector.broadcast %54 : vector<16x1xf32> to vector<16x128xf32>
    %56 = arith.mulf %51, %55 : vector<16x128xf32>
    %57 = vector.broadcast %36 : vector<1x128xf32> to vector<16x128xf32>
    %58 = arith.mulf %56, %57 : vector<16x128xf32>
    %59 = vector.broadcast %38 : vector<1x128xf32> to vector<16x128xf32>
    %60 = arith.addf %58, %59 : vector<16x128xf32>
    %c0_28 = arith.constant 0 : index
    %c0_29 = arith.constant 0 : index
    %c0_30 = arith.constant 0 : index
    %61 = vector.load %arg7[%c0_28, %c0_29, %c0_30] : memref<1x128x128xbf16, #tpu.memory_space<vmem>>, vector<1x128x128xbf16>
    %62 = vector.shape_cast %61 : vector<1x128x128xbf16> to vector<128x128xbf16>
    %63 = arith.truncf %34 : vector<8x128xf32> to vector<8x128xbf16>
    %cst_31 = arith.constant dense<0.000000e+00> : vector<8x128xf32>
    %64 = tpu.matmul %63, %62, %cst_31 {dimension_numbers = #tpu.dot_dimension_numbers<[1], [0], [0], [1], [0, 0, 1, 1], [], []>} : vector<8x128xbf16>, vector<128x128xbf16>, vector<8x128xf32> -> vector<8x128xf32>
    %c0_32 = arith.constant 0 : index
    %c0_33 = arith.constant 0 : index
    %c0_34 = arith.constant 0 : index
    %65 = vector.load %arg8[%c0_32, %c0_33, %c0_34] : memref<1x1x128xf32, #tpu.memory_space<vmem>>, vector<1x1x128xf32>
    %66 = vector.shape_cast %65 : vector<1x1x128xf32> to vector<1x128xf32>
    %67 = vector.broadcast %66 : vector<1x128xf32> to vector<8x128xf32>
    %68 = arith.addf %64, %67 : vector<8x128xf32>
    %c0_35 = arith.constant 0 : index
    %c0_36 = arith.constant 0 : index
    %c0_37 = arith.constant 0 : index
    %69 = vector.load %arg9[%c0_35, %c0_36, %c0_37] : memref<1x128x256xbf16, #tpu.memory_space<vmem>>, vector<1x128x256xbf16>
    %70 = vector.shape_cast %69 : vector<1x128x256xbf16> to vector<128x256xbf16>
    %71 = arith.truncf %60 : vector<16x128xf32> to vector<16x128xbf16>
    %cst_38 = arith.constant dense<0.000000e+00> : vector<16x256xf32>
    %72 = tpu.matmul %71, %70, %cst_38 {dimension_numbers = #tpu.dot_dimension_numbers<[1], [0], [0], [1], [0, 0, 1, 1], [], []>} : vector<16x128xbf16>, vector<128x256xbf16>, vector<16x256xf32> -> vector<16x256xf32>
    %c0_39 = arith.constant 0 : index
    %c0_40 = arith.constant 0 : index
    %c0_41 = arith.constant 0 : index
    %73 = vector.load %arg10[%c0_39, %c0_40, %c0_41] : memref<1x1x256xf32, #tpu.memory_space<vmem>>, vector<1x1x256xf32>
    %74 = vector.shape_cast %73 : vector<1x1x256xf32> to vector<1x256xf32>
    %75 = vector.broadcast %74 : vector<1x256xf32> to vector<16x256xf32>
    %76 = arith.addf %72, %75 : vector<16x256xf32>
    %77 = vector.extract_strided_slice %68 {offsets = [0, 0], sizes = [4, 64], strides = [1, 1]} : vector<8x128xf32> to vector<4x64xf32>
    %78 = vector.extract_strided_slice %76 {offsets = [0, 0], sizes = [8, 64], strides = [1, 1]} : vector<16x256xf32> to vector<8x64xf32>
    %79 = vector.extract_strided_slice %76 {offsets = [0, 128], sizes = [8, 64], strides = [1, 1]} : vector<16x256xf32> to vector<8x64xf32>
    %80 = arith.truncf %77 : vector<4x64xf32> to vector<4x64xbf16>
    %81 = arith.truncf %78 : vector<8x64xf32> to vector<8x64xbf16>
    %cst_42 = arith.constant dense<0.000000e+00> : vector<4x8xf32>
    %82 = tpu.matmul %80, %81, %cst_42 {dimension_numbers = #tpu.dot_dimension_numbers<[1], [1], [0], [0], [0, 0, 1, 0], [], []>} : vector<4x64xbf16>, vector<8x64xbf16>, vector<4x8xf32> -> vector<4x8xf32>
    %cst_43 = arith.constant 1.250000e-01 : f32
    %83 = vector.broadcast %cst_43 : f32 to vector<4x8xf32>
    %84 = arith.mulf %82, %83 : vector<4x8xf32>
    %cst_44 = arith.constant dense<0xFF800000> : vector<4xf32>
    %85 = vector.multi_reduction <maximumf>, %84, %cst_44 [1] : vector<4x8xf32> to vector<4xf32>
    %86 = vector.shape_cast %85 : vector<4xf32> to vector<4x1xf32>
    %87 = vector.broadcast %86 : vector<4x1xf32> to vector<4x8xf32>
    %88 = arith.subf %84, %87 : vector<4x8xf32>
    %89 = math.exp %88 : vector<4x8xf32>
    %cst_45 = arith.constant dense<0.000000e+00> : vector<4xf32>
    %90 = vector.multi_reduction <add>, %89, %cst_45 [1] : vector<4x8xf32> to vector<4xf32>
    %91 = vector.shape_cast %90 : vector<4xf32> to vector<4x1xf32>
    %92 = tpu.reciprocal %91 {approx = true} : vector<4x1xf32> -> vector<4x1xf32>
    %93 = vector.broadcast %92 : vector<4x1xf32> to vector<4x8xf32>
    %94 = arith.mulf %89, %93 : vector<4x8xf32>
    %c1_i32 = arith.constant 1 : i32
    %95 = arith.cmpi eq, %arg0, %c1_i32 : i32
    %96 = arith.extui %95 : i1 to i32
    %c0_i32_46 = arith.constant 0 : i32
    %97 = arith.cmpi ne, %96, %c0_i32_46 : i32
    scf.if %97 {
      %c0_109 = arith.constant 0 : index
      %c0_110 = arith.constant 0 : index
      %c0_111 = arith.constant 0 : index
      %c0_112 = arith.constant 0 : index
      %245 = vector.load %arg22[%c0_109, %c0_110, %c0_111, %c0_112] : memref<2x2x4x8xf32, #tpu.memory_space<vmem>>, vector<1x1x4x8xf32>
      %246 = vector.shape_cast %245 : vector<1x1x4x8xf32> to vector<4x8xf32>
      %247 = vector.shape_cast %94 : vector<4x8xf32> to vector<1x1x4x8xf32>
      tpu.vector_store %arg22[%c0_109, %c0_110, %c0_111, %c0_112], %247 {strides = array<i32>} : memref<2x2x4x8xf32, #tpu.memory_space<vmem>>, vector<1x1x4x8xf32>,
    } else {
    }
    %98 = arith.truncf %94 : vector<4x8xf32> to vector<4x8xbf16>
    %99 = arith.truncf %79 : vector<8x64xf32> to vector<8x64xbf16>
    %cst_47 = arith.constant dense<0.000000e+00> : vector<4x64xf32>
    %100 = tpu.matmul %98, %99, %cst_47 {dimension_numbers = #tpu.dot_dimension_numbers<[1], [0], [0], [1], [0, 0, 1, 1], [], []>} : vector<4x8xbf16>, vector<8x64xbf16>, vector<4x64xf32> -> vector<4x64xf32>
    %101 = vector.extract_strided_slice %68 {offsets = [0, 64], sizes = [4, 64], strides = [1, 1]} : vector<8x128xf32> to vector<4x64xf32>
    %102 = vector.extract_strided_slice %76 {offsets = [0, 64], sizes = [8, 64], strides = [1, 1]} : vector<16x256xf32> to vector<8x64xf32>
    %103 = vector.extract_strided_slice %76 {offsets = [0, 192], sizes = [8, 64], strides = [1, 1]} : vector<16x256xf32> to vector<8x64xf32>
    %104 = arith.truncf %101 : vector<4x64xf32> to vector<4x64xbf16>
    %105 = arith.truncf %102 : vector<8x64xf32> to vector<8x64xbf16>
    %cst_48 = arith.constant dense<0.000000e+00> : vector<4x8xf32>
    %106 = tpu.matmul %104, %105, %cst_48 {dimension_numbers = #tpu.dot_dimension_numbers<[1], [1], [0], [0], [0, 0, 1, 0], [], []>} : vector<4x64xbf16>, vector<8x64xbf16>, vector<4x8xf32> -> vector<4x8xf32>
    %cst_49 = arith.constant 1.250000e-01 : f32
    %107 = vector.broadcast %cst_49 : f32 to vector<4x8xf32>
    %108 = arith.mulf %106, %107 : vector<4x8xf32>
    %cst_50 = arith.constant dense<0xFF800000> : vector<4xf32>
    %109 = vector.multi_reduction <maximumf>, %108, %cst_50 [1] : vector<4x8xf32> to vector<4xf32>
    %110 = vector.shape_cast %109 : vector<4xf32> to vector<4x1xf32>
    %111 = vector.broadcast %110 : vector<4x1xf32> to vector<4x8xf32>
    %112 = arith.subf %108, %111 : vector<4x8xf32>
    %113 = math.exp %112 : vector<4x8xf32>
    %cst_51 = arith.constant dense<0.000000e+00> : vector<4xf32>
    %114 = vector.multi_reduction <add>, %113, %cst_51 [1] : vector<4x8xf32> to vector<4xf32>
    %115 = vector.shape_cast %114 : vector<4xf32> to vector<4x1xf32>
    %116 = tpu.reciprocal %115 {approx = true} : vector<4x1xf32> -> vector<4x1xf32>
    %117 = vector.broadcast %116 : vector<4x1xf32> to vector<4x8xf32>
    %118 = arith.mulf %113, %117 : vector<4x8xf32>
    %c1_i32_52 = arith.constant 1 : i32
    %119 = arith.cmpi eq, %arg0, %c1_i32_52 : i32
    %120 = arith.extui %119 : i1 to i32
    %c0_i32_53 = arith.constant 0 : i32
    %121 = arith.cmpi ne, %120, %c0_i32_53 : i32
    scf.if %121 {
      %c0_109 = arith.constant 0 : index
      %c1_110 = arith.constant 1 : index
      %c0_111 = arith.constant 0 : index
      %c0_112 = arith.constant 0 : index
      %245 = vector.load %arg22[%c0_109, %c1_110, %c0_111, %c0_112] : memref<2x2x4x8xf32, #tpu.memory_space<vmem>>, vector<1x1x4x8xf32>
      %246 = vector.shape_cast %245 : vector<1x1x4x8xf32> to vector<4x8xf32>
      %247 = vector.shape_cast %118 : vector<4x8xf32> to vector<1x1x4x8xf32>
      tpu.vector_store %arg22[%c0_109, %c1_110, %c0_111, %c0_112], %247 {strides = array<i32>} : memref<2x2x4x8xf32, #tpu.memory_space<vmem>>, vector<1x1x4x8xf32>,
    } else {
    }
    %122 = arith.truncf %118 : vector<4x8xf32> to vector<4x8xbf16>
    %123 = arith.truncf %103 : vector<8x64xf32> to vector<8x64xbf16>
    %cst_54 = arith.constant dense<0.000000e+00> : vector<4x64xf32>
    %124 = tpu.matmul %122, %123, %cst_54 {dimension_numbers = #tpu.dot_dimension_numbers<[1], [0], [0], [1], [0, 0, 1, 1], [], []>} : vector<4x8xbf16>, vector<8x64xbf16>, vector<4x64xf32> -> vector<4x64xf32>
    %125 = tpu.concatenate %100, %124 in 1 : vector<4x64xf32>, vector<4x64xf32> -> vector<4x128xf32>
    %126 = vector.extract_strided_slice %68 {offsets = [4, 0], sizes = [4, 64], strides = [1, 1]} : vector<8x128xf32> to vector<4x64xf32>
    %127 = vector.extract_strided_slice %76 {offsets = [8, 0], sizes = [8, 64], strides = [1, 1]} : vector<16x256xf32> to vector<8x64xf32>
    %128 = vector.extract_strided_slice %76 {offsets = [8, 128], sizes = [8, 64], strides = [1, 1]} : vector<16x256xf32> to vector<8x64xf32>
    %129 = arith.truncf %126 : vector<4x64xf32> to vector<4x64xbf16>
    %130 = arith.truncf %127 : vector<8x64xf32> to vector<8x64xbf16>
    %cst_55 = arith.constant dense<0.000000e+00> : vector<4x8xf32>
    %131 = tpu.matmul %129, %130, %cst_55 {dimension_numbers = #tpu.dot_dimension_numbers<[1], [1], [0], [0], [0, 0, 1, 0], [], []>} : vector<4x64xbf16>, vector<8x64xbf16>, vector<4x8xf32> -> vector<4x8xf32>
    %cst_56 = arith.constant 1.250000e-01 : f32
    %132 = vector.broadcast %cst_56 : f32 to vector<4x8xf32>
    %133 = arith.mulf %131, %132 : vector<4x8xf32>
    %cst_57 = arith.constant dense<0xFF800000> : vector<4xf32>
    %134 = vector.multi_reduction <maximumf>, %133, %cst_57 [1] : vector<4x8xf32> to vector<4xf32>
    %135 = vector.shape_cast %134 : vector<4xf32> to vector<4x1xf32>
    %136 = vector.broadcast %135 : vector<4x1xf32> to vector<4x8xf32>
    %137 = arith.subf %133, %136 : vector<4x8xf32>
    %138 = math.exp %137 : vector<4x8xf32>
    %cst_58 = arith.constant dense<0.000000e+00> : vector<4xf32>
    %139 = vector.multi_reduction <add>, %138, %cst_58 [1] : vector<4x8xf32> to vector<4xf32>
    %140 = vector.shape_cast %139 : vector<4xf32> to vector<4x1xf32>
    %141 = tpu.reciprocal %140 {approx = true} : vector<4x1xf32> -> vector<4x1xf32>
    %142 = vector.broadcast %141 : vector<4x1xf32> to vector<4x8xf32>
    %143 = arith.mulf %138, %142 : vector<4x8xf32>
    %c1_i32_59 = arith.constant 1 : i32
    %144 = arith.cmpi eq, %arg0, %c1_i32_59 : i32
    %145 = arith.extui %144 : i1 to i32
    %c0_i32_60 = arith.constant 0 : i32
    %146 = arith.cmpi ne, %145, %c0_i32_60 : i32
    scf.if %146 {
      %c1_109 = arith.constant 1 : index
      %c0_110 = arith.constant 0 : index
      %c0_111 = arith.constant 0 : index
      %c0_112 = arith.constant 0 : index
      %245 = vector.load %arg22[%c1_109, %c0_110, %c0_111, %c0_112] : memref<2x2x4x8xf32, #tpu.memory_space<vmem>>, vector<1x1x4x8xf32>
      %246 = vector.shape_cast %245 : vector<1x1x4x8xf32> to vector<4x8xf32>
      %247 = vector.shape_cast %143 : vector<4x8xf32> to vector<1x1x4x8xf32>
      tpu.vector_store %arg22[%c1_109, %c0_110, %c0_111, %c0_112], %247 {strides = array<i32>} : memref<2x2x4x8xf32, #tpu.memory_space<vmem>>, vector<1x1x4x8xf32>,
    } else {
    }
    %147 = arith.truncf %143 : vector<4x8xf32> to vector<4x8xbf16>
    %148 = arith.truncf %128 : vector<8x64xf32> to vector<8x64xbf16>
    %cst_61 = arith.constant dense<0.000000e+00> : vector<4x64xf32>
    %149 = tpu.matmul %147, %148, %cst_61 {dimension_numbers = #tpu.dot_dimension_numbers<[1], [0], [0], [1], [0, 0, 1, 1], [], []>} : vector<4x8xbf16>, vector<8x64xbf16>, vector<4x64xf32> -> vector<4x64xf32>
    %150 = vector.extract_strided_slice %68 {offsets = [4, 64], sizes = [4, 64], strides = [1, 1]} : vector<8x128xf32> to vector<4x64xf32>
    %151 = vector.extract_strided_slice %76 {offsets = [8, 64], sizes = [8, 64], strides = [1, 1]} : vector<16x256xf32> to vector<8x64xf32>
    %152 = vector.extract_strided_slice %76 {offsets = [8, 192], sizes = [8, 64], strides = [1, 1]} : vector<16x256xf32> to vector<8x64xf32>
    %153 = arith.truncf %150 : vector<4x64xf32> to vector<4x64xbf16>
    %154 = arith.truncf %151 : vector<8x64xf32> to vector<8x64xbf16>
    %cst_62 = arith.constant dense<0.000000e+00> : vector<4x8xf32>
    %155 = tpu.matmul %153, %154, %cst_62 {dimension_numbers = #tpu.dot_dimension_numbers<[1], [1], [0], [0], [0, 0, 1, 0], [], []>} : vector<4x64xbf16>, vector<8x64xbf16>, vector<4x8xf32> -> vector<4x8xf32>
    %cst_63 = arith.constant 1.250000e-01 : f32
    %156 = vector.broadcast %cst_63 : f32 to vector<4x8xf32>
    %157 = arith.mulf %155, %156 : vector<4x8xf32>
    %cst_64 = arith.constant dense<0xFF800000> : vector<4xf32>
    %158 = vector.multi_reduction <maximumf>, %157, %cst_64 [1] : vector<4x8xf32> to vector<4xf32>
    %159 = vector.shape_cast %158 : vector<4xf32> to vector<4x1xf32>
    %160 = vector.broadcast %159 : vector<4x1xf32> to vector<4x8xf32>
    %161 = arith.subf %157, %160 : vector<4x8xf32>
    %162 = math.exp %161 : vector<4x8xf32>
    %cst_65 = arith.constant dense<0.000000e+00> : vector<4xf32>
    %163 = vector.multi_reduction <add>, %162, %cst_65 [1] : vector<4x8xf32> to vector<4xf32>
    %164 = vector.shape_cast %163 : vector<4xf32> to vector<4x1xf32>
    %165 = tpu.reciprocal %164 {approx = true} : vector<4x1xf32> -> vector<4x1xf32>
    %166 = vector.broadcast %165 : vector<4x1xf32> to vector<4x8xf32>
    %167 = arith.mulf %162, %166 : vector<4x8xf32>
    %c1_i32_66 = arith.constant 1 : i32
    %168 = arith.cmpi eq, %arg0, %c1_i32_66 : i32
    %169 = arith.extui %168 : i1 to i32
    %c0_i32_67 = arith.constant 0 : i32
    %170 = arith.cmpi ne, %169, %c0_i32_67 : i32
    scf.if %170 {
      %c1_109 = arith.constant 1 : index
      %c1_110 = arith.constant 1 : index
      %c0_111 = arith.constant 0 : index
      %c0_112 = arith.constant 0 : index
      %245 = vector.load %arg22[%c1_109, %c1_110, %c0_111, %c0_112] : memref<2x2x4x8xf32, #tpu.memory_space<vmem>>, vector<1x1x4x8xf32>
      %246 = vector.shape_cast %245 : vector<1x1x4x8xf32> to vector<4x8xf32>
      %247 = vector.shape_cast %167 : vector<4x8xf32> to vector<1x1x4x8xf32>
      tpu.vector_store %arg22[%c1_109, %c1_110, %c0_111, %c0_112], %247 {strides = array<i32>} : memref<2x2x4x8xf32, #tpu.memory_space<vmem>>, vector<1x1x4x8xf32>,
    } else {
    }
    %171 = arith.truncf %167 : vector<4x8xf32> to vector<4x8xbf16>
    %172 = arith.truncf %152 : vector<8x64xf32> to vector<8x64xbf16>
    %cst_68 = arith.constant dense<0.000000e+00> : vector<4x64xf32>
    %173 = tpu.matmul %171, %172, %cst_68 {dimension_numbers = #tpu.dot_dimension_numbers<[1], [0], [0], [1], [0, 0, 1, 1], [], []>} : vector<4x8xbf16>, vector<8x64xbf16>, vector<4x64xf32> -> vector<4x64xf32>
    %174 = tpu.concatenate %149, %173 in 1 : vector<4x64xf32>, vector<4x64xf32> -> vector<4x128xf32>
    %175 = tpu.concatenate %125, %174 in 0 : vector<4x128xf32>, vector<4x128xf32> -> vector<8x128xf32>
    %c0_69 = arith.constant 0 : index
    %c0_70 = arith.constant 0 : index
    %c0_71 = arith.constant 0 : index
    %176 = vector.load %arg11[%c0_69, %c0_70, %c0_71] : memref<1x128x128xbf16, #tpu.memory_space<vmem>>, vector<1x128x128xbf16>
    %177 = vector.shape_cast %176 : vector<1x128x128xbf16> to vector<128x128xbf16>
    %178 = arith.truncf %175 : vector<8x128xf32> to vector<8x128xbf16>
    %cst_72 = arith.constant dense<0.000000e+00> : vector<8x128xf32>
    %179 = tpu.matmul %178, %177, %cst_72 {dimension_numbers = #tpu.dot_dimension_numbers<[1], [0], [0], [1], [0, 0, 1, 1], [], []>} : vector<8x128xbf16>, vector<128x128xbf16>, vector<8x128xf32> -> vector<8x128xf32>
    %180 = arith.addf %3, %179 : vector<8x128xf32>
    %c0_73 = arith.constant 0 : index
    %c0_74 = arith.constant 0 : index
    %c0_75 = arith.constant 0 : index
    %181 = vector.load %arg12[%c0_73, %c0_74, %c0_75] : memref<1x1x128xf32, #tpu.memory_space<vmem>>, vector<1x1x128xf32>
    %182 = vector.shape_cast %181 : vector<1x1x128xf32> to vector<1x128xf32>
    %183 = vector.broadcast %182 : vector<1x128xf32> to vector<8x128xf32>
    %184 = arith.addf %180, %183 : vector<8x128xf32>
    %c0_76 = arith.constant 0 : index
    %c0_77 = arith.constant 0 : index
    %c0_78 = arith.constant 0 : index
    %185 = vector.load %arg13[%c0_76, %c0_77, %c0_78] : memref<1x1x128xf32, #tpu.memory_space<vmem>>, vector<1x1x128xf32>
    %186 = vector.shape_cast %185 : vector<1x1x128xf32> to vector<1x128xf32>
    %c0_79 = arith.constant 0 : index
    %c0_80 = arith.constant 0 : index
    %c0_81 = arith.constant 0 : index
    %187 = vector.load %arg14[%c0_79, %c0_80, %c0_81] : memref<1x1x128xf32, #tpu.memory_space<vmem>>, vector<1x1x128xf32>
    %188 = vector.shape_cast %187 : vector<1x1x128xf32> to vector<1x128xf32>
    %cst_82 = arith.constant dense<0.000000e+00> : vector<8xf32>
    %189 = vector.multi_reduction <add>, %184, %cst_82 [1] : vector<8x128xf32> to vector<8xf32>
    %190 = vector.shape_cast %189 : vector<8xf32> to vector<8x1xf32>
    %cst_83 = arith.constant 1.280000e+02 : f32
    %191 = vector.broadcast %cst_83 : f32 to vector<8x1xf32>
    %192 = arith.divf %190, %191 : vector<8x1xf32>
    %193 = vector.broadcast %192 : vector<8x1xf32> to vector<8x128xf32>
    %194 = arith.subf %184, %193 : vector<8x128xf32>
    %195 = arith.mulf %194, %194 : vector<8x128xf32>
    %cst_84 = arith.constant dense<0.000000e+00> : vector<8xf32>
    %196 = vector.multi_reduction <add>, %195, %cst_84 [1] : vector<8x128xf32> to vector<8xf32>
    %197 = vector.shape_cast %196 : vector<8xf32> to vector<8x1xf32>
    %cst_85 = arith.constant 1.280000e+02 : f32
    %198 = vector.broadcast %cst_85 : f32 to vector<8x1xf32>
    %199 = arith.divf %197, %198 : vector<8x1xf32>
    %200 = vector.broadcast %192 : vector<8x1xf32> to vector<8x128xf32>
    %201 = arith.subf %184, %200 : vector<8x128xf32>
    %cst_86 = arith.constant 9.99999974E-6 : f32
    %202 = vector.broadcast %cst_86 : f32 to vector<8x1xf32>
    %203 = arith.addf %199, %202 : vector<8x1xf32>
    %204 = math.rsqrt %203 : vector<8x1xf32>
    %205 = vector.broadcast %204 : vector<8x1xf32> to vector<8x128xf32>
    %206 = arith.mulf %201, %205 : vector<8x128xf32>
    %207 = vector.broadcast %186 : vector<1x128xf32> to vector<8x128xf32>
    %208 = arith.mulf %206, %207 : vector<8x128xf32>
    %209 = vector.broadcast %188 : vector<1x128xf32> to vector<8x128xf32>
    %210 = arith.addf %208, %209 : vector<8x128xf32>
    %c0_87 = arith.constant 0 : index
    %c0_88 = arith.constant 0 : index
    %c0_89 = arith.constant 0 : index
    %211 = vector.load %arg15[%c0_87, %c0_88, %c0_89] : memref<1x128x256xbf16, #tpu.memory_space<vmem>>, vector<1x128x256xbf16>
    %212 = vector.shape_cast %211 : vector<1x128x256xbf16> to vector<128x256xbf16>
    %213 = arith.truncf %210 : vector<8x128xf32> to vector<8x128xbf16>
    %cst_90 = arith.constant dense<0.000000e+00> : vector<8x256xf32>
    %214 = tpu.matmul %213, %212, %cst_90 {dimension_numbers = #tpu.dot_dimension_numbers<[1], [0], [0], [1], [0, 0, 1, 1], [], []>} : vector<8x128xbf16>, vector<128x256xbf16>, vector<8x256xf32> -> vector<8x256xf32>
    %c0_91 = arith.constant 0 : index
    %c0_92 = arith.constant 0 : index
    %c0_93 = arith.constant 0 : index
    %215 = vector.load %arg16[%c0_91, %c0_92, %c0_93] : memref<1x1x256xf32, #tpu.memory_space<vmem>>, vector<1x1x256xf32>
    %216 = vector.shape_cast %215 : vector<1x1x256xf32> to vector<1x256xf32>
    %217 = vector.broadcast %216 : vector<1x256xf32> to vector<8x256xf32>
    %218 = arith.addf %214, %217 : vector<8x256xf32>
    %219 = arith.mulf %218, %218 : vector<8x256xf32>
    %220 = arith.mulf %218, %219 : vector<8x256xf32>
    %cst_94 = arith.constant 4.471500e-02 : f32
    %221 = vector.broadcast %cst_94 : f32 to vector<8x256xf32>
    %222 = arith.mulf %221, %220 : vector<8x256xf32>
    %223 = arith.addf %218, %222 : vector<8x256xf32>
    %cst_95 = arith.constant 0.797884583 : f32
    %224 = vector.broadcast %cst_95 : f32 to vector<8x256xf32>
    %225 = arith.mulf %224, %223 : vector<8x256xf32>
    %226 = math.tanh %225 : vector<8x256xf32>
    %cst_96 = arith.constant 1.000000e+00 : f32
    %227 = vector.broadcast %cst_96 : f32 to vector<8x256xf32>
    %228 = arith.addf %227, %226 : vector<8x256xf32>
    %cst_97 = arith.constant 5.000000e-01 : f32
    %229 = vector.broadcast %cst_97 : f32 to vector<8x256xf32>
    %230 = arith.mulf %229, %228 : vector<8x256xf32>
    %231 = arith.mulf %218, %230 : vector<8x256xf32>
    %c0_98 = arith.constant 0 : index
    %c0_99 = arith.constant 0 : index
    %c0_100 = arith.constant 0 : index
    %232 = vector.load %arg17[%c0_98, %c0_99, %c0_100] : memref<1x256x128xbf16, #tpu.memory_space<vmem>>, vector<1x256x128xbf16>
    %233 = vector.shape_cast %232 : vector<1x256x128xbf16> to vector<256x128xbf16>
    %234 = arith.truncf %231 : vector<8x256xf32> to vector<8x256xbf16>
    %cst_101 = arith.constant dense<0.000000e+00> : vector<8x128xf32>
    %235 = tpu.matmul %234, %233, %cst_101 {dimension_numbers = #tpu.dot_dimension_numbers<[1], [0], [0], [1], [0, 0, 1, 1], [], []>} : vector<8x256xbf16>, vector<256x128xbf16>, vector<8x128xf32> -> vector<8x128xf32>
    %236 = arith.addf %184, %235 : vector<8x128xf32>
    %c0_102 = arith.constant 0 : index
    %c0_103 = arith.constant 0 : index
    %c0_104 = arith.constant 0 : index
    %237 = vector.load %arg18[%c0_102, %c0_103, %c0_104] : memref<1x1x128xf32, #tpu.memory_space<vmem>>, vector<1x1x128xf32>
    %238 = vector.shape_cast %237 : vector<1x1x128xf32> to vector<1x128xf32>
    %239 = vector.broadcast %238 : vector<1x128xf32> to vector<8x128xf32>
    %240 = arith.addf %236, %239 : vector<8x128xf32>
    %c0_105 = arith.constant 0 : index
    %c0_106 = arith.constant 0 : index
    %241 = vector.load %arg23[%c0_105, %c0_106] : memref<8x128xf32, #tpu.memory_space<vmem>>, vector<8x128xf32>
    tpu.vector_store %arg23[%c0_105, %c0_106], %240 {strides = array<i32>} : memref<8x128xf32, #tpu.memory_space<vmem>>, vector<8x128xf32>,
    %c1_i32_107 = arith.constant 1 : i32
    %242 = arith.cmpi eq, %arg0, %c1_i32_107 : i32
    %243 = arith.extui %242 : i1 to i32
    %c0_i32_108 = arith.constant 0 : i32
    %244 = arith.cmpi ne, %243, %c0_i32_108 : i32
    scf.if %244 {
      %245 = vector.extract_strided_slice %240 {offsets = [0, 0], sizes = [1, 128], strides = [1, 1]} : vector<8x128xf32> to vector<1x128xf32>
      %246 = vector.extract_strided_slice %240 {offsets = [4, 0], sizes = [1, 128], strides = [1, 1]} : vector<8x128xf32> to vector<1x128xf32>
      %247 = tpu.concatenate %245, %246 in 0 : vector<1x128xf32>, vector<1x128xf32> -> vector<2x128xf32>
      %c0_109 = arith.constant 0 : index
      %c0_110 = arith.constant 0 : index
      %248 = vector.load %arg19[%c0_109, %c0_110] : memref<128x8xbf16, #tpu.memory_space<vmem>>, vector<128x8xbf16>
      %249 = arith.truncf %247 : vector<2x128xf32> to vector<2x128xbf16>
      %cst_111 = arith.constant dense<0.000000e+00> : vector<2x8xf32>
      %250 = tpu.matmul %249, %248, %cst_111 {dimension_numbers = #tpu.dot_dimension_numbers<[1], [0], [0], [1], [0, 0, 1, 1], [], []>} : vector<2x128xbf16>, vector<128x8xbf16>, vector<2x8xf32> -> vector<2x8xf32>
      %c0_112 = arith.constant 0 : index
      %c0_113 = arith.constant 0 : index
      %251 = vector.load %arg20[%c0_112, %c0_113] : memref<1x8xf32, #tpu.memory_space<vmem>>, vector<1x8xf32>
      %252 = vector.broadcast %251 : vector<1x8xf32> to vector<2x8xf32>
      %253 = arith.addf %250, %252 : vector<2x8xf32>
      %c0_114 = arith.constant 0 : index
      %c0_115 = arith.constant 0 : index
      %254 = vector.load %arg21[%c0_114, %c0_115] : memref<2x8xf32, #tpu.memory_space<vmem>>, vector<2x8xf32>
      tpu.vector_store %arg21[%c0_114, %c0_115], %253 {strides = array<i32>} : memref<2x8xf32, #tpu.memory_space<vmem>>, vector<2x8xf32>,
    } else {
    }
    return
  }
  func.func @transform_0(%arg0: i32) -> (i32, i32, i32) {
    %c0_i32 = arith.constant 0 : i32
    %c0_i32_0 = arith.constant 0 : i32
    %c0_i32_1 = arith.constant 0 : i32
    %c0_i32_2 = arith.constant 0 : i32
    return %c0_i32, %c0_i32_0, %c0_i32_1 : i32, i32, i32
  }
  func.func @transform_1(%arg0: i32) -> (i32, i32, i32) {
    %c0_i32 = arith.constant 0 : i32
    %c0_i32_0 = arith.constant 0 : i32
    %c0_i32_1 = arith.constant 0 : i32
    %c0_i32_2 = arith.constant 0 : i32
    return %c0_i32, %c0_i32_0, %c0_i32_1 : i32, i32, i32
  }
  func.func @transform_2(%arg0: i32) -> (i32, i32, i32) {
    %c0_i32 = arith.constant 0 : i32
    %c0_i32_0 = arith.constant 0 : i32
    %c0_i32_1 = arith.constant 0 : i32
    return %arg0, %c0_i32, %c0_i32_0 : i32, i32, i32
  }
  func.func @transform_3(%arg0: i32) -> (i32, i32, i32) {
    %c0_i32 = arith.constant 0 : i32
    %c0_i32_0 = arith.constant 0 : i32
    %c0_i32_1 = arith.constant 0 : i32
    return %arg0, %c0_i32, %c0_i32_0 : i32, i32, i32
  }
  func.func @transform_4(%arg0: i32) -> (i32, i32, i32) {
    %c0_i32 = arith.constant 0 : i32
    %c0_i32_0 = arith.constant 0 : i32
    %c0_i32_1 = arith.constant 0 : i32
    return %arg0, %c0_i32, %c0_i32_0 : i32, i32, i32
  }
  func.func @transform_5(%arg0: i32) -> (i32, i32, i32) {
    %c0_i32 = arith.constant 0 : i32
    %c0_i32_0 = arith.constant 0 : i32
    %c0_i32_1 = arith.constant 0 : i32
    return %arg0, %c0_i32, %c0_i32_0 : i32, i32, i32
  }
  func.func @transform_6(%arg0: i32) -> (i32, i32, i32) {
    %c0_i32 = arith.constant 0 : i32
    %c0_i32_0 = arith.constant 0 : i32
    %c0_i32_1 = arith.constant 0 : i32
    return %arg0, %c0_i32, %c0_i32_0 : i32, i32, i32
  }
  func.func @transform_7(%arg0: i32) -> (i32, i32, i32) {
    %c0_i32 = arith.constant 0 : i32
    %c0_i32_0 = arith.constant 0 : i32
    %c0_i32_1 = arith.constant 0 : i32
    return %arg0, %c0_i32, %c0_i32_0 : i32, i32, i32
  }
  func.func @transform_8(%arg0: i32) -> (i32, i32, i32) {
    %c0_i32 = arith.constant 0 : i32
    %c0_i32_0 = arith.constant 0 : i32
    %c0_i32_1 = arith.constant 0 : i32
    return %arg0, %c0_i32, %c0_i32_0 : i32, i32, i32
  }
  func.func @transform_9(%arg0: i32) -> (i32, i32, i32) {
    %c0_i32 = arith.constant 0 : i32
    %c0_i32_0 = arith.constant 0 : i32
    %c0_i32_1 = arith.constant 0 : i32
    return %arg0, %c0_i32, %c0_i32_0 : i32, i32, i32
  }
  func.func @transform_10(%arg0: i32) -> (i32, i32, i32) {
    %c0_i32 = arith.constant 0 : i32
    %c0_i32_0 = arith.constant 0 : i32
    %c0_i32_1 = arith.constant 0 : i32
    return %arg0, %c0_i32, %c0_i32_0 : i32, i32, i32
  }
  func.func @transform_11(%arg0: i32) -> (i32, i32, i32) {
    %c0_i32 = arith.constant 0 : i32
    %c0_i32_0 = arith.constant 0 : i32
    %c0_i32_1 = arith.constant 0 : i32
    return %arg0, %c0_i32, %c0_i32_0 : i32, i32, i32
  }
  func.func @transform_12(%arg0: i32) -> (i32, i32, i32) {
    %c0_i32 = arith.constant 0 : i32
    %c0_i32_0 = arith.constant 0 : i32
    %c0_i32_1 = arith.constant 0 : i32
    return %arg0, %c0_i32, %c0_i32_0 : i32, i32, i32
  }
  func.func @transform_13(%arg0: i32) -> (i32, i32, i32) {
    %c0_i32 = arith.constant 0 : i32
    %c0_i32_0 = arith.constant 0 : i32
    %c0_i32_1 = arith.constant 0 : i32
    return %arg0, %c0_i32, %c0_i32_0 : i32, i32, i32
  }
  func.func @transform_14(%arg0: i32) -> (i32, i32, i32) {
    %c0_i32 = arith.constant 0 : i32
    %c0_i32_0 = arith.constant 0 : i32
    %c0_i32_1 = arith.constant 0 : i32
    return %arg0, %c0_i32, %c0_i32_0 : i32, i32, i32
  }
  func.func @transform_15(%arg0: i32) -> (i32, i32, i32) {
    %c0_i32 = arith.constant 0 : i32
    %c0_i32_0 = arith.constant 0 : i32
    %c0_i32_1 = arith.constant 0 : i32
    return %arg0, %c0_i32, %c0_i32_0 : i32, i32, i32
  }
  func.func @transform_16(%arg0: i32) -> (i32, i32, i32) {
    %c0_i32 = arith.constant 0 : i32
    %c0_i32_0 = arith.constant 0 : i32
    %c0_i32_1 = arith.constant 0 : i32
    return %arg0, %c0_i32, %c0_i32_0 : i32, i32, i32
  }
  func.func @transform_17(%arg0: i32) -> (i32, i32, i32) {
    %c0_i32 = arith.constant 0 : i32
    %c0_i32_0 = arith.constant 0 : i32
    %c0_i32_1 = arith.constant 0 : i32
    return %arg0, %c0_i32, %c0_i32_0 : i32, i32, i32
  }
  func.func @transform_18(%arg0: i32) -> (i32, i32) {
    %c0_i32 = arith.constant 0 : i32
    %c0_i32_0 = arith.constant 0 : i32
    %c0_i32_1 = arith.constant 0 : i32
    return %c0_i32, %c0_i32_0 : i32, i32
  }
  func.func @transform_19(%arg0: i32) -> (i32, i32) {
    %c0_i32 = arith.constant 0 : i32
    %c0_i32_0 = arith.constant 0 : i32
    %c0_i32_1 = arith.constant 0 : i32
    return %c0_i32, %c0_i32_0 : i32, i32
  }
  func.func @transform_20(%arg0: i32) -> (i32, i32) {
    %c0_i32 = arith.constant 0 : i32
    %c0_i32_0 = arith.constant 0 : i32
    %c0_i32_1 = arith.constant 0 : i32
    return %c0_i32, %c0_i32_0 : i32, i32
  }
  func.func @transform_21(%arg0: i32) -> (i32, i32, i32, i32) {
    %c0_i32 = arith.constant 0 : i32
    %c0_i32_0 = arith.constant 0 : i32
    %c0_i32_1 = arith.constant 0 : i32
    %c0_i32_2 = arith.constant 0 : i32
    %c0_i32_3 = arith.constant 0 : i32
    return %c0_i32, %c0_i32_0, %c0_i32_1, %c0_i32_2 : i32, i32, i32, i32
  }
}

</mosaic_0001>

<bundles_post_ra>
// kernel: _lambda_.3
= control target key start
LH: loop header
LB: loop body
LE: loop exit
PB: predicated region body
PF: predicated region fallthrough
CT: control target
= control target key end

     0   :  { %s3348_s27 = smov 0   ;;  %s3842_s0 = inlined_call_operand.vmem [shape: f32[16,640], index: 0, kind: input, shape index: {}]   ;;  %s3843_s1 = inlined_call_operand.vmem [shape: bf16[640,128], index: 1, kind: input, shape index: {}]   ;;  %s3844_s2 = inlined_call_operand.vmem [shape: f32[1,128], index: 2, kind: input, shape index: {}]   ;;  %s3845_s3 = inlined_call_operand.vmem [shape: f32[1,8,128], index: 3, kind: input, shape index: {}]   ;;  %s3846_s4 = inlined_call_operand.vmem [shape: f32[2,1,128], index: 4, kind: input, shape index: {}]   ;;  %s3847_s5 = inlined_call_operand.vmem [shape: f32[2,1,128], index: 5, kind: input, shape index: {}]   ;;  %s3848_s6 = inlined_call_operand.vmem [shape: bf16[2,128,384], index: 6, kind: input, shape index: {}]   ;;  %s3849_s7 = inlined_call_operand.vmem [shape: f32[2,1,384], index: 7, kind: input, shape index: {}]   ;;  %s3850_s8 = inlined_call_operand.vmem [shape: bf16[2,128,128], index: 8, kind: input, shape index: {}]   ;;  %s3851_s9 = inlined_call_operand.vmem [shape: f32[2,1,128], index: 9, kind: input, shape index: {}]   ;;  %s3852_s10 = inlined_call_operand.vmem [shape: f32[2,1,128], index: 10, kind: input, shape index: {}]   ;;  %s3853_s11 = inlined_call_operand.vmem [shape: f32[2,1,128], index: 11, kind: input, shape index: {}]   ;;  %s3854_s12 = inlined_call_operand.vmem [shape: bf16[2,128,256], index: 12, kind: input, shape index: {}]   ;;  %s3855_s13 = inlined_call_operand.vmem [shape: f32[2,1,256], index: 13, kind: input, shape index: {}]   ;;  %s3856_s14 = inlined_call_operand.vmem [shape: bf16[2,256,128], index: 14, kind: input, shape index: {}]   ;;  %s3857_s15 = inlined_call_operand.vmem [shape: f32[2,1,128], index: 15, kind: input, shape index: {}]   ;;  %s3858_s16 = inlined_call_operand.vmem [shape: f32[1,128], index: 16, kind: input, shape index: {}]   ;;  %s3859_s17 = inlined_call_operand.vmem [shape: f32[1,128], index: 17, kind: input, shape index: {}]   ;;  %s3860_s18 = inlined_call_operand.vmem [shape: f32[2,8,128], index: 18, kind: output, shape index: {}]  }
   0x1   :  { %3864 = sst [smem:[#allocation3_spill]] %s3842_s0 }
   0x2   :  { %3865 = sst [smem:[#allocation4_spill]] %s3843_s1 }
   0x3   :  { %3866 = sst [smem:[#allocation5_spill]] %s3844_s2 }
   0x4   :  { %3867 = sst [smem:[#allocation6_spill]] %s3846_s4 }
   0x5   :  { %3868 = sst [smem:[#allocation7_spill]] %s3847_s5 }
   0x6   :  { %3869 = sst [smem:[#allocation8_spill]] %s3848_s6 }
   0x7   :  { %3870 = sst [smem:[#allocation9_spill]] %s3850_s8 }
   0x8   :  { %3871 = sst [smem:[#allocation10_spill]] %s3858_s16 }
   0x9   :  { %3872 = sst [smem:[#allocation11_spill]] %s3859_s17 }
   0xa LB: > { %3873 = sst [smem:[#allocation2_spill]] %s3245_s27  ;;  %s3354_s28 = sadd.s32 4294967295, %s3245_s27   ;;  %s3245_s27 = sphi %s3348_s27, %s28_s27  }
   0xb   : > { %p2703_p0 = scmp.ge.s32.totalorder %s3245_s27, 1  ;;  %p603_p1 = scmp.lt.s32.totalorder %s3245_s27, 3 }
   0xd   : > { %p604_p2 = pnand %p2703_p0, %p603_p1 }
   0xe   : > { %p693_p3 = scmp.lt.s32.totalorder (!%p604_p2), %s3354_s28, 1  ;;  %s3876_s8 = sld [smem:[#allocation9_spill]] (!%p604_p2) }
   0xf   : > { %607 = sbr.rel (%p604_p2) target bundleno = 3609 (0xe19), region = 92  ;;  %s3877_s6 = sld [smem:[#allocation8_spill]] (!%p604_p2) }
  0x10   : > { %p2712_p4 = scmp.ne.s32.totalorder (!%p604_p2), %s3354_s28, 0 }
  0x16   : > { %s3360_s29 = scalar_select %p693_p3, %s3354_s28, 1 }
  0x17   : > { %743 = sbr.rel (%p2712_p4) target bundleno = 320 (0x140), region = 96  ;;  %s3879_s5 = sld [smem:[#allocation3_spill]] (!%p2712_p4)  ;;  %v3247_v36 = vmov (!%p2712_p4), 0.0   ;;  %vm3248_vm0 = vmmov (!%p2712_p4), 0  }
  0x18   : > { %s3062_s22 = smul.u32 192, %s3360_s29  ;;  %s2842_s2 = sshll.u32 %s3360_s29, 6 }
  0x19   : > { %s3063_s23 = smul.u32 3, %s3360_s29  ;;  %s3376_s26 = scalar_lea.vmem %s3876_s8, %s2842_s2 }
  0x1a   : > { %s3381_s27 = scalar_lea.vmem %s3877_s6, %s3062_s22  ;;  %s2843_s30 = sshll.u32 %s3360_s29, 7 }
  0x1b   : > { %s3390_s21 = scalar_lea.vmem %s3849_s7, %s3063_s23  ;;  %s3404_s6 = scalar_lea.vmem %s3854_s12, %s2843_s30 }
  0x1c   : > { %s2709_s17 = sshll.u32 %s3360_s29, 1  ;;  %s3415_s4 = scalar_lea.vmem %s3856_s14, %s2843_s30 }
  0x1d   : > { %s3410_s23 = scalar_lea.vmem %s3855_s13, %s2709_s17  ;;  %s738_s25 = scalar_lea.vmem %s3857_s15, %s3360_s29  ;;  %v745_v31 = vld [vmem:[%s3879_s5 + $0x8] sm:$0xff] (!%p2712_p4)  ;;  %v750_v32 = vld [vmem:[%s3879_s5 + $0x30] sm:$0xff] (!%p2712_p4)  ;;  %v744_v35 = vld [vmem:[%s3879_s5] sm:$0xff] (!%p2712_p4) }
  0x1e   : > { %s3878_s8 = sld [smem:[#allocation4_spill]]  ;;  %v835_v33 = vpack.c.bf16 %v750_v32, %v745_v31  ;;  %v749_v37 = vld [vmem:[%s3879_s5 + $0x28] sm:$0xff]  ;;  %v747_v38 = vld [vmem:[%s3879_s5 + $0x18] sm:$0xff]  ;;  %v752_v39 = vld [vmem:[%s3879_s5 + $0x40] sm:$0xff]  ;;  %s3880_s1 = sld [smem:[#allocation5_spill]] }
  0x1f   : > { %v834_v40 = vpack.c.bf16 %v749_v37, %v744_v35  ;;  %v837_v41 = vpack.c.bf16 %v752_v39, %v747_v38  ;;  %v746_v43 = vld [vmem:[%s3879_s5 + $0x10] sm:$0xff]  ;;  %v751_v44 = vld [vmem:[%s3879_s5 + $0x38] sm:$0xff]  ;;  %v748_v53 = vld [vmem:[%s3879_s5 + $0x20] sm:$0xff] }
  0x20   : > { %1118 = vmatprep.mubr.bf16.mxu0 %v835_v33  ;;  %v836_v45 = vpack.c.bf16 %v751_v44, %v746_v43  ;;  %v753_v54 = vld [vmem:[%s3879_s5 + $0x48] sm:$0xff] }
  0x21   : > { %1159 = vmatprep.mubr.bf16.mxu1 %v837_v41  ;;  %v838_v55 = vpack.c.bf16 %v753_v54, %v748_v53 }
  0x24   : > { %v3078_v0 = vld [vmem:[%s3878_s8 + $0x40] sm:$0xff]   ;;  %v3082_v4 = vld [vmem:[%s3878_s8 + $0x48] sm:$0xff]   ;;  %v3086_v8 = vld [vmem:[%s3878_s8 + $0x50] sm:$0xff]  }
  0x25   : > { %v3079_v1 = vld [vmem:[%s3878_s8] sm:$0xff]   ;;  %2845 = vmatprep.subr.bf16.mxu0 %v3078_v0  ;;  %v3083_v5 = vld [vmem:[%s3878_s8 + $0x8] sm:$0xff]   ;;  %v3087_v9 = vld [vmem:[%s3878_s8 + $0x10] sm:$0xff]  }
  0x26   : > { %v3080_v2 = vld [vmem:[%s3878_s8 + $0xc0] sm:$0xff]   ;;  %2846 = vmatpush3.bf16.msra.mxu0 %v3079_v1  ;;  %v3084_v6 = vld [vmem:[%s3878_s8 + $0xc8] sm:$0xff]   ;;  %v3088_v10 = vld [vmem:[%s3878_s8 + $0xd0] sm:$0xff]  }
  0x27   : > { %v3081_v3 = vld [vmem:[%s3878_s8 + $0x80] sm:$0xff]   ;;  %2867 = vmatprep.subr.bf16.mxu1 %v3080_v2  ;;  %2847 = vmatprep.subr.bf16.mxu0 %v3082_v4  ;;  %v3085_v7 = vld [vmem:[%s3878_s8 + $0x88] sm:$0xff]   ;;  %v3089_v11 = vld [vmem:[%s3878_s8 + $0x90] sm:$0xff]  }
  0x28   : > { %2868 = vmatpush3.bf16.msra.mxu1 %v3081_v3  ;;  %v3090_v12 = vld [vmem:[%s3878_s8 + $0x58] sm:$0xff]   ;;  %v3094_v16 = vld [vmem:[%s3878_s8 + $0x60] sm:$0xff]   ;;  %v3098_v20 = vld [vmem:[%s3878_s8 + $0x68] sm:$0xff]  }
  0x29   : > { %2869 = vmatprep.subr.bf16.mxu1 %v3084_v6  ;;  %v3091_v13 = vld [vmem:[%s3878_s8 + $0x18] sm:$0xff]   ;;  %v3095_v17 = vld [vmem:[%s3878_s8 + $0x20] sm:$0xff]   ;;  %v3099_v21 = vld [vmem:[%s3878_s8 + $0x28] sm:$0xff]  }
  0x2a   : > { %2848 = vmatpush3.bf16.msra.mxu0 %v3083_v5  ;;  %v3092_v14 = vld [vmem:[%s3878_s8 + $0xd8] sm:$0xff]   ;;  %v3096_v18 = vld [vmem:[%s3878_s8 + $0xe0] sm:$0xff]   ;;  %v3100_v22 = vld [vmem:[%s3878_s8 + $0xe8] sm:$0xff]  }
  0x2b   : > { %2849 = vmatprep.subr.bf16.mxu0 %v3086_v8  ;;  %v3093_v15 = vld [vmem:[%s3878_s8 + $0x98] sm:$0xff]   ;;  %v3097_v19 = vld [vmem:[%s3878_s8 + $0xa0] sm:$0xff]   ;;  %v3101_v23 = vld [vmem:[%s3878_s8 + $0xa8] sm:$0xff]  }
  0x2c   : > { %2870 = vmatpush3.bf16.msra.mxu1 %v3085_v7  ;;  %v3102_v24 = vld [vmem:[%s3878_s8 + $0x70] sm:$0xff]   ;;  %v3106_v28 = vld [vmem:[%s3878_s8 + $0x78] sm:$0xff]   ;;  %v3110_v42 = vld [vmem:[%s3878_s8 + $0x100] sm:$0xff]  }
  0x2d   : > { %2871 = vmatprep.subr.bf16.mxu1 %v3088_v10  ;;  %v3103_v25 = vld [vmem:[%s3878_s8 + $0x30] sm:$0xff]   ;;  %v3107_v29 = vld [vmem:[%s3878_s8 + $0x38] sm:$0xff]   ;;  %v3111_v46 = vld [vmem:[%s3878_s8 + $0x108] sm:$0xff]  }
  0x2e   : > { %2850 = vmatpush3.bf16.msra.mxu0 %v3087_v9  ;;  %v3104_v26 = vld [vmem:[%s3878_s8 + $0xf0] sm:$0xff]   ;;  %v3108_v30 = vld [vmem:[%s3878_s8 + $0xf8] sm:$0xff]   ;;  %v3114_v49 = vld [vmem:[%s3878_s8 + $0x120] sm:$0xff]  }
  0x2f   : > { %2851 = vmatprep.subr.bf16.mxu0 %v3090_v12  ;;  %v3105_v27 = vld [vmem:[%s3878_s8 + $0xb0] sm:$0xff]   ;;  %v3109_v34 = vld [vmem:[%s3878_s8 + $0xb8] sm:$0xff]   ;;  %v3115_v50 = vld [vmem:[%s3878_s8 + $0x128] sm:$0xff]  }
  0x30   : > { %2872 = vmatpush3.bf16.msra.mxu1 %v3089_v11  ;;  %v3112_v47 = vld [vmem:[%s3878_s8 + $0x110] sm:$0xff]   ;;  %v3113_v48 = vld [vmem:[%s3878_s8 + $0x118] sm:$0xff]   ;;  %v2713_v57 = vld [vmem:[%s3880_s1] ss:$0 sm:$0xff] }
  0x31   : > { %2873 = vmatprep.subr.bf16.mxu1 %v3092_v14  ;;  %v3116_v51 = vld [vmem:[%s3878_s8 + $0x130] sm:$0xff]   ;;  %v3117_v52 = vld [vmem:[%s3878_s8 + $0x138] sm:$0xff]   ;;  %v1209_v10 = vld [vmem:[%s3845_s3] sm:$0xff] }
  0x32   : > { %2852 = vmatpush3.bf16.msra.mxu0 %v3091_v13 }
  0x33   : > { %2853 = vmatprep.subr.bf16.mxu0 %v3094_v16 }
  0x34   : > { %2874 = vmatpush3.bf16.msra.mxu1 %v3093_v15 }
  0x35   : > { %2875 = vmatprep.subr.bf16.mxu1 %v3096_v18 }
  0x36   : > { %2854 = vmatpush3.bf16.msra.mxu0 %v3095_v17 }
  0x37   : > { %2855 = vmatprep.subr.bf16.mxu0 %v3098_v20 }
  0x38   : > { %2876 = vmatpush3.bf16.msra.mxu1 %v3097_v19 }
  0x39   : > { %2877 = vmatprep.subr.bf16.mxu1 %v3100_v22 }
  0x3a   : > { %2856 = vmatpush3.bf16.msra.mxu0 %v3099_v21 }
  0x3b   : > { %2857 = vmatprep.subr.bf16.mxu0 %v3102_v24 }
  0x3c   : > { %2878 = vmatpush3.bf16.msra.mxu1 %v3101_v23 }
  0x3d   : > { %2879 = vmatprep.subr.bf16.mxu1 %v3104_v26 }
  0x3e   : > { %2858 = vmatpush3.bf16.msra.mxu0 %v3103_v25 }
  0x3f   : > { %2859 = vmatprep.subr.bf16.mxu0 %v3106_v28 }
  0x40   : > { %2880 = vmatpush3.bf16.msra.mxu1 %v3105_v27 }
  0x41   : > { %2881 = vmatprep.subr.bf16.mxu1 %v3108_v30 }
  0x42   : > { %2860 = vmatpush3.bf16.msra.mxu0 %v3107_v29 }
  0x43   : > { %2954 = vmatprep.subr.bf16.mxu0 %v3247_v36 }
  0x44   : > { %2882 = vmatpush3.bf16.msra.mxu1 %v3109_v34 }
  0x45   : > { %1119 = vmatmul.mubr.bf16.vlgmr.msra.gmra.mrb[0].mxu0 %v834_v40 }
  0x46   : > { %2955 = vmatpush3.bf16.msra.mxu0 %v3110_v42  ;;  %2970 = vmatprep.mubr.msk.bf16.mxu0 %vm3248_vm0, %v3247_v36 }
  0x47   : > { %1160 = vmatmul.mubr.bf16.vlgmr.msra.gmra.mrb[0].mxu1 %v836_v45  ;;  %2956 = vmatprep.subr.bf16.mxu0 %v3247_v36 }
  0x4a   : > { %2957 = vmatpush3.bf16.msra.mxu0 %v3111_v46 }
  0x4b   : > { %2958 = vmatprep.subr.bf16.mxu0 %v3247_v36 }
  0x4e   : > { %2959 = vmatpush3.bf16.msra.mxu0 %v3112_v47 }
  0x4f   : > { %2960 = vmatprep.subr.bf16.mxu0 %v3247_v36 }
  0x52   : > { %2961 = vmatpush3.bf16.msra.mxu0 %v3113_v48 }
  0x53   : > { %2962 = vmatprep.subr.bf16.mxu0 %v3247_v36 }
  0x56   : > { %2963 = vmatpush3.bf16.msra.mxu0 %v3114_v49 }
  0x57   : > { %2964 = vmatprep.subr.bf16.mxu0 %v3247_v36 }
  0x5a   : > { %2965 = vmatpush3.bf16.msra.mxu0 %v3115_v50 }
  0x5b   : > { %2966 = vmatprep.subr.bf16.mxu0 %v3247_v36 }
  0x5e   : > { %2967 = vmatpush3.bf16.msra.mxu0 %v3116_v51 }
  0x5f   : > { %2968 = vmatprep.subr.bf16.mxu0 %v3247_v36 }
  0x62   : > { %2969 = vmatpush3.bf16.msra.mxu0 %v3117_v52 }
  0x65   : > { %2971 = vmatmul.mubr.bf16.vlgmr.msra.gmra.mrb[4].mxu0 %v838_v55 }
 0x118   : > { %v2861_v56 = vpop.f32.mrb[0].mxu0 }
 0x119   : > { %v2862_v58 = vpop.f32.mrb[1].mxu0 }
 0x11a   : > { %v2863_v59 = vadd.f32 %v2862_v58, %v2861_v56  ;;  %v2864_v60 = vpop.f32.mrb[2].mxu0  ;;  %v2883_v61 = vpop.f32.mrb[0].mxu1 }
 0x11b   : > { %v2865_v62 = vpop.f32.mrb[3].mxu0  ;;  %v2884_v63 = vpop.f32.mrb[1].mxu1 }
 0x11c   : > { %v1121_v0 = vadd.f32 %v2863_v59, %v2713_v57  ;;  %v2866_v1 = vadd.f32 %v2865_v62, %v2864_v60  ;;  %v2885_v2 = vadd.f32 %v2884_v63, %v2883_v61  ;;  %v2886_v3 = vpop.f32.mrb[2].mxu1 }
 0x11d   : > { %v2887_v4 = vpop.f32.mrb[3].mxu1 }
 0x11e   : > { %v1124_v5 = vadd.f32 %v2866_v1, %v2713_v57  ;;  %v2888_v6 = vadd.f32 %v2887_v4, %v2886_v3  ;;  %v1162_v7 = vadd.f32 %v2885_v2, %v1121_v0 }
 0x120   : > { %v1165_v8 = vadd.f32 %v2888_v6, %v1124_v5 }
 0x138   : > { %v1202_v9 = vpop.f32.mrb[4].mxu0 }
 0x139   : > { %v1203_v11 = vadd.f32 %v1202_v9, %v1162_v7  ;;  %v2972_v12 = vpop.f32.mrb[5].mxu0 }
 0x13a   : > { %v1205_v13 = vpop.f32.mrb[6].mxu0 }
 0x13b   : > { %v1210_v14 = vadd.f32 %v1209_v10, %v1203_v11  ;;  %v1206_v15 = vadd.f32 %v1205_v13, %v1165_v8  ;;  %v2973_v16 = vpop.f32.mrb[7].mxu0 }
 0x13d   : > { %1211 = vst [vmem:[%s3860_s18] sm:$0xff] %v1210_v14  ;;  %v1213_v17 = vadd.f32 %v1209_v10, %v1206_v15 }
 0x13f   : > { %2754 = vst [vmem:[%s3860_s18 + $0x8] sm:$0xff] %v1213_v17 }
 0x140 PF: > { %v3123_v20 = vld [vmem:[%s3381_s27 + $0x4] ss:$12 sps:$4 sm:$0xff]   ;;  %v3125_v21 = vld [vmem:[%s3381_s27] ss:$12 sps:$4 sm:$0xff]   ;;  %v3249_v22 = vmov 0.0   ;;  %v3250_v48 = vmov 0   ;;  %v1295_v7 = vlaneseq  ;;  %s3885_s30 = scalar_lea.vmem %s3851_s9, %s3360_s29 }
 0x141   : > { %2974 = vmatprep.subr.bf16.mxu1 %v3249_v22  ;;  %v3126_v23 = vld [vmem:[%s3381_s27 + $0x8] ss:$12 sps:$4 sm:$0xff]   ;;  %1438 = vmatprep.subr.bf16.mxu0 %v3123_v20  ;;  %v3129_v33 = vld [vmem:[%s3381_s27 + $0x18] ss:$12 sps:$4 sm:$0xff]   ;;  %v3130_v34 = vld [vmem:[%s3381_s27 + $0x20] ss:$12 sps:$4 sm:$0xff]  }
 0x142   : > { %v3127_v24 = vld [vmem:[%s3381_s27 + $0x1c] ss:$12 sps:$4 sm:$0xff]   ;;  %1439 = vmatpush1.bf16.msra.mxu0 %v3125_v21  ;;  %2975 = vmatpush3.bf16.msra.mxu1 %v3126_v23  ;;  %v3131_v35 = vld [vmem:[%s3381_s27 + $0x34] ss:$12 sps:$4 sm:$0xff]   ;;  %v3134_v37 = vld [vmem:[%s3381_s27 + $0x38] ss:$12 sps:$4 sm:$0xff]  }
 0x143   : > { %1440 = vmatprep.subr.bf16.mxu0 %v3127_v24  ;;  %2976 = vmatprep.subr.bf16.mxu1 %v3249_v22  ;;  %v3133_v36 = vld [vmem:[%s3381_s27 + $0x30] ss:$12 sps:$4 sm:$0xff]   ;;  %v3135_v38 = vld [vmem:[%s3381_s27 + $0x4c] ss:$12 sps:$4 sm:$0xff]   ;;  %v3137_v39 = vld [vmem:[%s3381_s27 + $0x48] ss:$12 sps:$4 sm:$0xff]  }
 0x144   : > { %v3587_v18 = vld [vmem:[%s3860_s18] sm:$0xff]  ;;  %v3138_v40 = vld [vmem:[%s3381_s27 + $0x50] ss:$12 sps:$4 sm:$0xff]   ;;  %v3142_v43 = vld [vmem:[%s3381_s27 + $0x68] ss:$12 sps:$4 sm:$0xff]   ;;  %1470 = vmatprep.mubr.bf16.mxu0 %v3250_v48  ;;  %vm3251_vm1 = vmmov 0  }
 0x145   : > { %1221 = vadd.xlane.f32.xlu0 %v3587_v18  ;;  %v3139_v41 = vld [vmem:[%s3381_s27 + $0x64] ss:$12 sps:$4 sm:$0xff]   ;;  %v3141_v42 = vld [vmem:[%s3381_s27 + $0x60] ss:$12 sps:$4 sm:$0xff]   ;;  %v3143_v44 = vld [vmem:[%s3381_s27 + $0x7c] ss:$12 sps:$4 sm:$0xff]   ;;  %2990 = vmatprep.mubr.msk.bf16.mxu1 %vm3251_vm1, %v3249_v22 }
 0x146   : > { %v3592_v19 = vld [vmem:[%s3860_s18 + $0x8] sm:$0xff]  ;;  %1441 = vmatpush1.bf16.msra.mxu0 %v3129_v33  ;;  %2977 = vmatpush3.bf16.msra.mxu1 %v3130_v34  ;;  %v3145_v45 = vld [vmem:[%s3381_s27 + $0x78] ss:$12 sps:$4 sm:$0xff]   ;;  %v3147_v47 = vld [vmem:[%s3381_s27 + $0x94] ss:$12 sps:$4 sm:$0xff]   ;;  %s3881_s2 = sld [smem:[#allocation6_spill]] }
 0x147   : > { %2978 = vmatprep.subr.bf16.mxu1 %v3249_v22  ;;  %1442 = vmatprep.subr.bf16.mxu0 %v3131_v35  ;;  %v3146_v46 = vld [vmem:[%s3381_s27 + $0x80] ss:$12 sps:$4 sm:$0xff]   ;;  %v3149_v49 = vld [vmem:[%s3381_s27 + $0x90] ss:$12 sps:$4 sm:$0xff]   ;;  %v3150_v50 = vld [vmem:[%s3381_s27 + $0x98] ss:$12 sps:$4 sm:$0xff]  }
 0x148   : > { %v3151_v51 = vld [vmem:[%s3381_s27 + $0xac] ss:$12 sps:$4 sm:$0xff]   ;;  %v3153_v52 = vld [vmem:[%s3381_s27 + $0xa8] ss:$12 sps:$4 sm:$0xff]   ;;  %v3154_v53 = vld [vmem:[%s3381_s27 + $0xb0] ss:$12 sps:$4 sm:$0xff]  }
 0x149   : > { %1223 = vadd.xlane.f32.xlu0 %v3592_v19  ;;  %s3883_s16 = sld [smem:[#allocation7_spill]]  ;;  %v3659_v8 = vshrl.u32 %v1295_v7, 7  ;;  %v1293_v10 = vld [vmem:[%s3390_s21] sm:$0x7]  ;;  %vm1524_vm2 = vcmask 523264   ;;  %vm1589_vm3 = vcmask 1043456  }
 0x14a   : > { %1443 = vmatpush1.bf16.msra.mxu0 %v3133_v36  ;;  %2979 = vmatpush3.bf16.msra.mxu1 %v3134_v37  ;;  %vm1572_vm4 = vcmask 64512   ;;  %s3252_s21 = smov 64   ;;  %p2834_p5 = scmp.ne.s32.totalorder %s3354_s28, 1 }
 0x14b   : > { %2980 = vmatprep.subr.bf16.mxu1 %v3249_v22  ;;  %1444 = vmatprep.subr.bf16.mxu0 %v3135_v38  ;;  %v1301_v9 = vsub.s32 1, %v3659_v8  ;;  %v1305_v11 = vsub.s32 2, %v3659_v8  ;;  %v1297_v13 = vsub.s32 0, %v3659_v8  ;;  %s3888_s24 = sld [smem:[#allocation10_spill]] (!%p2834_p5) }
 0x14c   : > { %s3882_s22 = scalar_lea.vmem %s3881_s2, %s3360_s29 }
 0x14d   : > { %v2756_v62 = vld [vmem:[%s3882_s22] ss:$0 sm:$0xff]  ;;  %v1302_v12 = vrot.slane %v1293_v10, %v1301_v9  ;;  %v1306_v16 = vrot.slane %v1293_v10, %v1305_v11  ;;  %s3887_s22 = scalar_lea.vmem %s3853_s11, %s3360_s29 }
 0x14e   : > { %1445 = vmatpush1.bf16.msra.mxu0 %v3137_v39  ;;  %2981 = vmatpush3.bf16.msra.mxu1 %v3138_v40 }
 0x14f   : > { %2982 = vmatprep.subr.bf16.mxu1 %v3249_v22  ;;  %1446 = vmatprep.subr.bf16.mxu0 %v3139_v41  ;;  %s3884_s17 = scalar_lea.vmem %s3883_s16, %s3360_s29 }
 0x150   : > { %v2757_v2 = vld [vmem:[%s3884_s17] ss:$0 sm:$0xff]  ;;  %s3889_s17 = sld [smem:[#allocation11_spill]] (!%p2834_p5) }
 0x152   : > { %1447 = vmatpush1.bf16.msra.mxu0 %v3141_v42  ;;  %2983 = vmatpush3.bf16.msra.mxu1 %v3142_v43 }
 0x153   : > { %1448 = vmatprep.subr.bf16.mxu0 %v3143_v44  ;;  %2984 = vmatprep.subr.bf16.mxu1 %v3249_v22 }
 0x156   : > { %1449 = vmatpush1.bf16.msra.mxu0 %v3145_v45  ;;  %2985 = vmatpush3.bf16.msra.mxu1 %v3146_v46 }
 0x157   : > { %1450 = vmatprep.subr.bf16.mxu0 %v3147_v47  ;;  %2986 = vmatprep.subr.bf16.mxu1 %v3249_v22 }
 0x15a   : > { %1451 = vmatpush1.bf16.msra.mxu0 %v3149_v49  ;;  %2987 = vmatpush3.bf16.msra.mxu1 %v3150_v50 }
 0x15b   : > { %1452 = vmatprep.subr.bf16.mxu0 %v3151_v51  ;;  %2988 = vmatprep.subr.bf16.mxu1 %v3249_v22 }
 0x15e   : > { %1453 = vmatpush1.bf16.msra.mxu0 %v3153_v52  ;;  %2989 = vmatpush3.bf16.msra.mxu1 %v3154_v53 }
 0x15f   : > { %2994 = vmatprep.subr.bf16.mxu1 %v3249_v22  ;;  %3018 = vmatprep.subr.bf16.mxu0 %v3249_v22 }
 0x1d2   : > { %v1222_v25 = vpop.xlane.xlu0 %1221 }
 0x1d3   : > { %v1226_v26 = vmul.f32 0.0078125, %v1222_v25 }
 0x1d5   : > { %v3603_v27 = vsub.f32 %v3587_v18, %v1226_v26 }
 0x1d6   : > { %v1224_v28 = vpop.xlane.xlu0 %1223 }
 0x1d7   : > { %v1227_v29 = vmul.f32 0.0078125, %v1224_v28  ;;  %v1230_v30 = vmul.f32 %v3603_v27, %v3603_v27  ;;  %v1298_v28 = vrot.slane %v1293_v10, %v1297_v13 }
 0x1d9   : > { %v3608_v31 = vsub.f32 %v3592_v19, %v1227_v29  ;;  %1232 = vadd.xlane.f32.xlu1 %v1230_v30 }
 0x1db   : > { %v1231_v32 = vmul.f32 %v3608_v31, %v3608_v31 }
 0x1dd   : > { %1234 = vadd.xlane.f32.xlu1 %v1231_v32 }
 0x266   : > { %v1233_v54 = vpop.xlane.xlu1 %1232 }
 0x267   : > { %v1236_v55 = vmul.f32 0.0078125, %v1233_v54 }
 0x269   : > { %v1238_v56 = vadd.f32 1e-05, %v1236_v55 }
 0x26a   : > { %v1235_v57 = vpop.xlane.xlu1 %1234 }
 0x26b   : > { %3203 = vrsqrt.f32 %v1238_v56  ;;  %v1237_v58 = vmul.f32 0.0078125, %v1235_v57 }
 0x26d   : > { %v1239_v59 = vadd.f32 1e-05, %v1237_v58 }
 0x26f   : > { %3205 = vrsqrt.f32 %v1239_v59 }
 0x275   : > { %v3204_v60 = vpop.eup %3203 }
 0x276   : > { %v1242_v61 = vmul.f32 %v3204_v60, %v3603_v27 }
 0x278   : > { %v1250_v1 = vmul.f32 %v2756_v62, %v1242_v61 }
 0x279   : > { %v3206_v63 = vpop.eup %3205 }
 0x27a   : > { %v1243_v0 = vmul.f32 %v3206_v63, %v3608_v31  ;;  %v1258_v4 = vadd.f32 %v2757_v2, %v1250_v1 }
 0x27c   : > { %v1251_v3 = vmul.f32 %v2756_v62, %v1243_v0 }
 0x27e   : > { %v1259_v5 = vadd.f32 %v2757_v2, %v1251_v3 }
 0x280   : > { %v1292_v6 = vpack.c.bf16 %v1259_v5, %v1258_v4 }
 0x282   : > { %1471 = vmatmul.mubr.bf16.vlgmr.msra.gmra.mrb[0].mxu0 %v1292_v6  ;;  %2991 = vmatmul.mubr.bf16.vlgmr.msra.gmra.mrb[0].mxu1 %v1292_v6 }
 0x283   : > { %2996 = vmatprep.mubr.msk.bf16.mxu1 %vm3251_vm1, %v3249_v22  ;;  %3020 = vmatprep.mubr.msk.bf16.mxu0 %vm3251_vm1, %v3249_v22 }
 0x355   : > { %v1472_v14 = vpop.f32.mrb[0].mxu0  ;;  %v1515_v15 = vpop.f32.mrb[0].mxu1 }
 0x356   : > { %v1474_v17 = vpop.f32.mrb[1].mxu0  ;;  %v2992_v20 = vpop.f32.mrb[1].mxu1  ;;  %v1516_v31 = vadd.f32 %v1515_v15, %v1306_v16  ;;  %v1473_v34 = vadd.f32 %v1472_v14, %v1298_v28 }
 0x357   : > { %v1475_v21 = vadd.f32 %v1474_v17, %v1302_v12  ;;  %v1476_v23 = vpop.f32.mrb[2].mxu0  ;;  %v1518_v24 = vpop.f32.mrb[2].mxu1 }
 0x358   : > { %v3667_v25 = vadd.f32 %v1518_v24, %v1306_v16  ;;  %v1478_v26 = vpop.f32.mrb[3].mxu0  ;;  %v2993_v27 = vpop.f32.mrb[3].mxu1  ;;  %v3674_v36 = vpack.c.bf16 %v1516_v31, %v1516_v31  ;;  %v1477_v37 = vadd.f32 %v1476_v23, %v1298_v28  ;;  %v1522_v38 = vpack.c.bf16 %v1473_v34, %v1473_v34 }
 0x359   : > { %v1523_v29 = vpack.c.bf16 %v1475_v21, %v1475_v21  ;;  %v1479_v30 = vadd.f32 %v1478_v26, %v1302_v12 }
 0x35a   : > { %v1591_v39 = vsel %vm1589_vm3, %v3674_v36, 0  ;;  %v1752_v40 = vpack.c.bf16 %v1477_v37, %v1477_v37 }
 0x35b   : > { %v1529_v32 = vsel %vm1524_vm2, %v1523_v29, 0  ;;  %v1753_v33 = vpack.c.bf16 %v1479_v30, %v1479_v30 }
 0x35c   : > { %2995 = vmatpush3.bf16.xpose.msra.mxu1 %v1529_v32 }
 0x35d   : > { %v1758_v35 = vsel %vm1524_vm2, %v1753_v33, 0  ;;  %3000 = vmatprep.subr.bf16.mxu1 %v3249_v22 }
 0x35e   : > { %3019 = vmatpush3.bf16.xpose.msra.mxu0 %v1758_v35 }
 0x35f   : > { %3030 = vmatprep.subr.bf16.mxu0 %v3249_v22 }
 0x363   : > { %2997 = vmatmul.mubr.msk.bf16.vlgmr.msra.gmra.mrb[4].mxu1 %vm1524_vm2, %v1522_v38 }
 0x364   : > { %3001 = vmatpush3.bf16.msra.mxu1 %v1591_v39  ;;  %3002 = vmatprep.mubr.msk.bf16.mxu1 %vm3251_vm1, %v3249_v22 }
 0x365   : > { %3021 = vmatmul.mubr.msk.bf16.vlgmr.msra.gmra.mrb[4].mxu0 %vm1524_vm2, %v1752_v40  ;;  %3006 = vmatprep.subr.bf16.mxu1 %v3249_v22 }
 0x366   : > { %3032 = vmatprep.mubr.msk.bf16.mxu0 %vm3251_vm1, %v3249_v22 }
 0x436   : > { %v1565_v41 = vpop.f32.mrb[4].mxu1 }
 0x437   : > { %v1571_v42 = vmul.f32 0.125, %v1565_v41  ;;  %v2998_v43 = vpop.f32.mrb[5].mxu1 }
 0x438   : > { %v1568_v44 = vpop.f32.mrb[6].mxu1  ;;  %v1794_v45 = vpop.f32.mrb[4].mxu0 }
 0x439   : > { %v2999_v46 = vpop.f32.mrb[7].mxu1  ;;  %v3022_v47 = vpop.f32.mrb[5].mxu0  ;;  %v1573_v49 = vsel %vm1572_vm4, %v1571_v42, -inf  ;;  %v1800_v57 = vmul.f32 0.125, %v1794_v45  ;;  %v1813_v44 = vpack.c.bf16 %v3667_v25, %v3667_v25 }
 0x43a   : > { %v1797_v50 = vpop.f32.mrb[6].mxu0  ;;  %1574 = vmax.xlane.f32.xlu0 %v1573_v49 }
 0x43b   : > { %v3023_v51 = vpop.f32.mrb[7].mxu0  ;;  %v1801_v58 = vsel %vm1572_vm4, %v1800_v57, -inf }
 0x450   : > { %1637 = vrot.lane.b32.xlu0 %v1523_v29, %s3252_s21 }
 0x4c7   : > { %v1575_v52 = vpop.xlane.xlu0 %1574 }
 0x4c8   : > { %v1576_v53 = vsub.f32 %v1571_v42, %v1575_v52 }
 0x4ca   : > { %v1577_v54 = vmul.f32 1.442695, %v1576_v53 }
 0x4cb   : > { %v1638_v1 = vpop.permute.xlu0 %1637 }
 0x4cc   : > { %3207 = vpow2.f32 %v1577_v54  ;;  %v1643_v3 = vsel %vm1524_vm2, %v1638_v1, 0  ;;  %v1818_v54 = vsel %vm1589_vm3, %v1813_v44, 0  ;;  %v3159_v1 = vld [vmem:[%s3376_s26 + $0x20] sm:$0xff]  }
 0x4d6   : > { %v3208_v55 = vpop.eup %3207 }
 0x4d7   : > { %v1579_v56 = vsel %vm1572_vm4, %v3208_v55, 0.0 }
 0x4d8   : > { %1580 = vadd.xlane.f32.xlu1 %v1579_v56 }
 0x4e9   : > { %1634 = vrot.lane.b32.xlu1 %v1522_v38, %s3252_s21 }
 0x4ed   : > { %1864 = vrot.lane.b32.xlu1 %v1753_v33, %s3252_s21 }
 0x4f1   : > { %1861 = vrot.lane.b32.xlu1 %v1752_v40, %s3252_s21 }
 0x515   : > { %1802 = vmax.xlane.f32.xlu1 %v1801_v58 }
 0x565   : > { %v1581_v59 = vpop.xlane.xlu1 %1580 }
 0x566   : > { %3209 = vrcp.f32 %v1581_v59 }
 0x569   : > { %v1635_v60 = vpop.permute.xlu1 %1634 }
 0x56d   : > { %v1865_v61 = vpop.permute.xlu1 %1864 }
 0x56e   : > { %v1870_v62 = vsel %vm1524_vm2, %v1865_v61, 0  ;;  %v3155_v61 = vld [vmem:[%s3376_s26] sm:$0xff]  }
 0x56f   : > { %3031 = vmatpush3.bf16.xpose.msra.mxu0 %v1870_v62  ;;  %v3156_v62 = vld [vmem:[%s3376_s26 + $0x8] sm:$0xff]  }
 0x570   : > { %v3210_v63 = vpop.eup %3209  ;;  %3042 = vmatprep.subr.bf16.mxu0 %v3249_v22 }
 0x571   : > { %v1583_v0 = vmul.f32 %v3210_v63, %v3208_v55  ;;  %v1862_v4 = vpop.permute.xlu1 %1861  ;;  %v3157_v63 = vld [vmem:[%s3376_s26 + $0x10] sm:$0xff]  }
 0x573   : > { %v1584_v2 = vpack.c.bf16 %v1583_v0, %v1583_v0  ;;  %v3158_v0 = vld [vmem:[%s3376_s26 + $0x18] sm:$0xff]  }
 0x575   : > { %3003 = vmatmul.mubr.msk.bf16.vlgmr.msra.gmra.mrb[8].mxu1 %vm1572_vm4, %v1584_v2  ;;  %v3161_v2 = vld [vmem:[%s3376_s26 + $0x30] sm:$0xff]  }
 0x576   : > { %3007 = vmatpush3.bf16.xpose.msra.mxu1 %v1643_v3  ;;  %3033 = vmatmul.mubr.msk.bf16.vlgmr.msra.gmra.mrb[8].mxu0 %vm1524_vm2, %v1862_v4 }
 0x577   : > { %3008 = vmatprep.mubr.msk.bf16.mxu1 %vm3251_vm1, %v3249_v22  ;;  %3012 = vmatprep.subr.bf16.mxu1 %v3249_v22 }
 0x578   : > { %3058 = vmatprep.mubr.msk.bf16.mxu0 %vm3251_vm1, %v3249_v22  ;;  %3043 = vmatpush3.bf16.msra.mxu0 %v3155_v61 }
 0x579   : > { %3044 = vmatprep.subr.bf16.mxu0 %v3249_v22 }
 0x57c   : > { %3045 = vmatpush3.bf16.msra.mxu0 %v3156_v62 }
 0x57d   : > { %3009 = vmatmul.mubr.msk.bf16.vlgmr.msra.gmra.mrb[12].mxu1 %vm1524_vm2, %v1635_v60  ;;  %3046 = vmatprep.subr.bf16.mxu0 %v3249_v22 }
 0x57e   : > { %3014 = vmatprep.mubr.msk.bf16.mxu1 %vm3251_vm1, %v3249_v22 }
 0x580   : > { %3047 = vmatpush3.bf16.msra.mxu0 %v3157_v63 }
 0x581   : > { %3048 = vmatprep.subr.bf16.mxu0 %v3249_v22 }
 0x584   : > { %3049 = vmatpush3.bf16.msra.mxu0 %v3158_v0 }
 0x585   : > { %3050 = vmatprep.subr.bf16.mxu0 %v3249_v22 }
 0x588   : > { %3051 = vmatpush3.bf16.msra.mxu0 %v3159_v1 }
 0x589   : > { %3052 = vmatprep.subr.bf16.mxu0 %v3249_v22 }
 0x5a2   : > { %v1803_v5 = vpop.xlane.xlu1 %1802 }
 0x5a3   : > { %v1804_v6 = vsub.f32 %v1800_v57, %v1803_v5 }
 0x5a5   : > { %v1805_v12 = vmul.f32 1.442695, %v1804_v6 }
 0x5a7   : > { %3211 = vpow2.f32 %v1805_v12 }
 0x5b1   : > { %v3212_v31 = vpop.eup %3211 }
 0x5b2   : > { %v1807_v32 = vsel %vm1572_vm4, %v3212_v31, 0.0 }
 0x648   : > { %v3706_v7 = vpop.f32.mrb[8].mxu1 }
 0x649   : > { %v3004_v10 = vpop.f32.mrb[9].mxu1  ;;  %v1906_v11 = vpop.f32.mrb[8].mxu0 }
 0x64a   : > { %v1630_v14 = vpop.f32.mrb[10].mxu1  ;;  %v3034_v15 = vpop.f32.mrb[9].mxu0  ;;  %v1912_v27 = vmul.f32 0.125, %v1906_v11  ;;  %v3162_v10 = vld [vmem:[%s3376_s26 + $0x38] sm:$0xff]  }
 0x64b   : > { %v3005_v16 = vpop.f32.mrb[11].mxu1  ;;  %v1909_v17 = vpop.f32.mrb[10].mxu0 }
 0x64c   : > { %v3035_v20 = vpop.f32.mrb[11].mxu0  ;;  %v1913_v30 = vsel %vm1572_vm4, %v1912_v27, -inf }
 0x650   : > { %v1679_v21 = vpop.f32.mrb[12].mxu1 }
 0x651   : > { %v1685_v23 = vmul.f32 0.125, %v1679_v21  ;;  %v3010_v24 = vpop.f32.mrb[13].mxu1 }
 0x652   : > { %v1682_v26 = vpop.f32.mrb[14].mxu1 }
 0x653   : > { %v3011_v28 = vpop.f32.mrb[15].mxu1  ;;  %v1686_v29 = vsel %vm1572_vm4, %v1685_v23, -inf }
 0x654   : > { %1687 = vmax.xlane.f32.xlu0 %v1686_v29 }
 0x658   : > { %1914 = vmax.xlane.f32.xlu0 %v1913_v30 }
 0x65c   : > { %1808 = vadd.xlane.f32.xlu0 %v1807_v32 }
 0x6e1   : > { %v1688_v33 = vpop.xlane.xlu0 %1687 }
 0x6e2   : > { %v1689_v34 = vsub.f32 %v1685_v23, %v1688_v33 }
 0x6e4   : > { %v1690_v35 = vmul.f32 1.442695, %v1689_v34 }
 0x6e5   : > { %v1915_v37 = vpop.xlane.xlu0 %1914 }
 0x6e6   : > { %3213 = vpow2.f32 %v1690_v35  ;;  %v1916_v38 = vsub.f32 %v1912_v27, %v1915_v37 }
 0x6e8   : > { %v1917_v39 = vmul.f32 1.442695, %v1916_v38 }
 0x6e9   : > { %v1809_v45 = vpop.xlane.xlu0 %1808 }
 0x6ea   : > { %3215 = vpow2.f32 %v1917_v39  ;;  %v3163_v39 = vld [vmem:[%s3404_s6] ss:$8 sps:$4 sm:$0xff]  }
 0x6f0   : > { %v3214_v40 = vpop.eup %3213 }
 0x6f1   : > { %v1692_v41 = vsel %vm1572_vm4, %v3214_v40, 0.0 }
 0x6f2   : > { %1693 = vadd.xlane.f32.xlu0 %v1692_v41  ;;  %v3168_v41 = vld [vmem:[%s3404_s6 + $0x14] ss:$8 sps:$4 sm:$0xff]  }
 0x6f4   : > { %v3216_v42 = vpop.eup %3215 }
 0x6f5   : > { %v1919_v43 = vsel %vm1572_vm4, %v3216_v42, 0.0 }
 0x6f6   : > { %1920 = vadd.xlane.f32.xlu1 %v1919_v43 }
 0x707   : > { %1926 = vrot.lane.b32.xlu1 %v1813_v44, %s3252_s21 }
 0x708   : > { %1699 = vrot.lane.b32.xlu0 %v3674_v36, %s3252_s21 }
 0x77f   : > { %v1694_v46 = vpop.xlane.xlu0 %1693 }
 0x780   : > { %3217 = vrcp.f32 %v1694_v46 }
 0x781   : > { %3219 = vrcp.f32 %v1809_v45 }
 0x783   : > { %v1700_v47 = vpop.permute.xlu0 %1699  ;;  %v1921_v50 = vpop.xlane.xlu1 %1920 }
 0x784   : > { %v1705_v49 = vsel %vm1589_vm3, %v1700_v47, 0  ;;  %3221 = vrcp.f32 %v1921_v50  ;;  %v3171_v50 = vld [vmem:[%s3404_s6 + $0x24] ss:$8 sps:$4 sm:$0xff]  }
 0x785   : > { %3013 = vmatpush3.bf16.msra.mxu1 %v1705_v49 }
 0x786   : > { %3024 = vmatprep.subr.bf16.mxu1 %v3249_v22 }
 0x787   : > { %v1927_v55 = vpop.permute.xlu1 %1926 }
 0x788   : > { %v1932_v58 = vsel %vm1589_vm3, %v1927_v55, 0  ;;  %v3178_v55 = vld [vmem:[%s3404_s6 + $0x50] ss:$8 sps:$4 sm:$0xff]  }
 0x78a   : > { %v3218_v51 = vpop.eup %3217 }
 0x78b   : > { %v1696_v52 = vmul.f32 %v3218_v51, %v3214_v40  ;;  %v3220_v53 = vpop.eup %3219  ;;  %v3165_v40 = vld [vmem:[%s3404_s6 + $0x4] ss:$8 sps:$4 sm:$0xff]   ;;  %v3169_v51 = vld [vmem:[%s3404_s6 + $0x20] ss:$8 sps:$4 sm:$0xff]  }
 0x78c   : > { %v1811_v36 = vmul.f32 %v3220_v53, %v3212_v31  ;;  %v2798_v31 = vld [vmem:[%s3885_s30] ss:$0 sm:$0xff]  ;;  %v3177_v53 = vld [vmem:[%s3404_s6 + $0x44] ss:$8 sps:$4 sm:$0xff]  }
 0x78d   : > { %v1697_v25 = vpack.c.bf16 %v1696_v52, %v1696_v52  ;;  %v3174_v52 = vld [vmem:[%s3404_s6 + $0x34] ss:$8 sps:$4 sm:$0xff]  }
 0x78e   : > { %v1812_v56 = vpack.c.bf16 %v1811_v36, %v1811_v36  ;;  %v3222_v57 = vpop.eup %3221  ;;  %v3180_v36 = vld [vmem:[%s3404_s6 + $0x54] ss:$8 sps:$4 sm:$0xff]  }
 0x78f   : > { %3015 = vmatmul.mubr.msk.bf16.vlgmr.msra.gmra.mrb[16].mxu1 %vm1572_vm4, %v1697_v25  ;;  %v1923_v59 = vmul.f32 %v3222_v57, %v3216_v42  ;;  %v3172_v25 = vld [vmem:[%s3404_s6 + $0x30] ss:$8 sps:$4 sm:$0xff]   ;;  %v3181_v57 = vld [vmem:[%s3404_s6 + $0x60] ss:$8 sps:$4 sm:$0xff]  }
 0x790   : > { %3025 = vmatpush3.bf16.msra.mxu1 %v1818_v54  ;;  %3026 = vmatprep.mubr.msk.bf16.mxu1 %vm3251_vm1, %v3249_v22  ;;  %v3175_v54 = vld [vmem:[%s3404_s6 + $0x40] ss:$8 sps:$4 sm:$0xff]  }
 0x791   : > { %3036 = vmatprep.subr.bf16.mxu1 %v3249_v22  ;;  %v1924_v60 = vpack.c.bf16 %v1923_v59, %v1923_v59  ;;  %v3184_v59 = vld [vmem:[%s3404_s6 + $0x70] ss:$8 sps:$4 sm:$0xff]  }
 0x797   : > { %3027 = vmatmul.mubr.msk.bf16.vlgmr.msra.gmra.mrb[20].mxu1 %vm1572_vm4, %v1812_v56  ;;  %v3183_v56 = vld [vmem:[%s3404_s6 + $0x64] ss:$8 sps:$4 sm:$0xff]  }
 0x798   : > { %3037 = vmatpush3.bf16.msra.mxu1 %v1932_v58  ;;  %3038 = vmatprep.mubr.msk.bf16.mxu1 %vm3251_vm1, %v3249_v22  ;;  %v3186_v58 = vld [vmem:[%s3404_s6 + $0x74] ss:$8 sps:$4 sm:$0xff]  }
 0x799   : > { %2245 = vmatprep.subr.bf16.mxu1 %v3165_v40 }
 0x79f   : > { %3039 = vmatmul.mubr.msk.bf16.vlgmr.msra.gmra.mrb[24].mxu1 %vm1572_vm4, %v1924_v60 }
 0x7a0   : > { %2277 = vmatprep.mubr.bf16.mxu1 %v3250_v48  ;;  %v3160_v48 = vld [vmem:[%s3376_s26 + $0x28] sm:$0xff]   ;;  %2246 = vmatpush1.bf16.msra.mxu1 %v3163_v39 }
 0x7a1   : > { %3053 = vmatpush3.bf16.msra.mxu0 %v3160_v48  ;;  %2247 = vmatprep.subr.bf16.mxu1 %v3168_v41 }
 0x7a2   : > { %3054 = vmatprep.subr.bf16.mxu0 %v3249_v22 }
 0x7a5   : > { %3055 = vmatpush3.bf16.msra.mxu0 %v3161_v2 }
 0x7a6   : > { %3056 = vmatprep.subr.bf16.mxu0 %v3249_v22 }
 0x7a9   : > { %3057 = vmatpush3.bf16.msra.mxu0 %v3162_v10  ;;  %v2800_v10 = vld [vmem:[%s3887_s22] ss:$0 sm:$0xff] }
 0x862   : > { %v1741_v3 = vpop.f32.mrb[16].mxu1 }
 0x863   : > { %v3016_v4 = vpop.f32.mrb[17].mxu1 }
 0x864   : > { %v1744_v5 = vpop.f32.mrb[18].mxu1 }
 0x865   : > { %v3017_v6 = vpop.f32.mrb[19].mxu1 }
 0x86a   : > { %v1854_v11 = vpop.f32.mrb[20].mxu1 }
 0x86b   : > { %v3028_v12 = vpop.f32.mrb[21].mxu1 }
 0x86c   : > { %v1857_v14 = vpop.f32.mrb[22].mxu1 }
 0x86d   : > { %v3029_v15 = vpop.f32.mrb[23].mxu1 }
 0x872   : > { %v1968_v16 = vpop.f32.mrb[24].mxu1 }
 0x873   : > { %v3118_v17 = vpack.i.bf16 %v1968_v16, %v1741_v3  ;;  %v3040_v20 = vpop.f32.mrb[25].mxu1  ;;  %v3187_v16 = vld [vmem:[%s3415_s4 + $0x40] sm:$0xff]  }
 0x874   : > { %v1971_v21 = vpop.f32.mrb[26].mxu1  ;;  %2932 = vmatprep.subr.bf16.mxu0 %v3187_v16  ;;  %v3189_v20 = vld [vmem:[%s3415_s4 + $0x48] sm:$0xff]  }
 0x875   : > { %3119 = vrot.lane.b32.xlu1 %v3118_v17, %s3252_s21  ;;  %v3041_v23 = vpop.f32.mrb[27].mxu1  ;;  %v3188_v17 = vld [vmem:[%s3415_s4] sm:$0xff]   ;;  %v3190_v21 = vld [vmem:[%s3415_s4 + $0x8] sm:$0xff]  }
 0x876   : > { %v3191_v23 = vld [vmem:[%s3415_s4 + $0x50] sm:$0xff]  }
 0x8e7   : > { %v3120_v24 = vpop.permute.xlu1 %3119 }
 0x8e8   : > { %v3122_v22 = vunpack.i.h.bf16 %v3120_v24  ;;  %v3121_v26 = vunpack.i.l.bf16 %v3120_v24  ;;  %v3192_v24 = vld [vmem:[%s3415_s4 + $0x10] sm:$0xff]  }
 0x8ea   : > { %v1978_v27 = vsel %vm1524_vm2, %v1854_v11, %v3122_v22  ;;  %v1751_v28 = vsel %vm1524_vm2, %v3706_v7, %v3121_v26  ;;  %v3193_v22 = vld [vmem:[%s3415_s4 + $0x58] sm:$0xff]  }
 0x8eb   : > { %v1995_v29 = vpack.c.bf16 %v1978_v27, %v1751_v28  ;;  %v3194_v26 = vld [vmem:[%s3415_s4 + $0x18] sm:$0xff]   ;;  %v3195_v27 = vld [vmem:[%s3415_s4 + $0x60] sm:$0xff]  }
 0x8ec   : > { %v3196_v28 = vld [vmem:[%s3415_s4 + $0x20] sm:$0xff]  }
 0x8ed   : > { %3059 = vmatmul.mubr.bf16.vlgmr.msra.gmra.mrb[12].mxu0 %v1995_v29  ;;  %v3197_v29 = vld [vmem:[%s3415_s4 + $0x68] sm:$0xff]  }
 0x8ee   : > { %2933 = vmatpush3.bf16.msra.mxu0 %v3188_v17 }
 0x8ef   : > { %2934 = vmatprep.subr.bf16.mxu0 %v3189_v20 }
 0x8f2   : > { %2935 = vmatpush3.bf16.msra.mxu0 %v3190_v21 }
 0x8f3   : > { %2936 = vmatprep.subr.bf16.mxu0 %v3191_v23 }
 0x8f6   : > { %2937 = vmatpush3.bf16.msra.mxu0 %v3192_v24 }
 0x8f7   : > { %2938 = vmatprep.subr.bf16.mxu0 %v3193_v22 }
 0x8fa   : > { %2939 = vmatpush3.bf16.msra.mxu0 %v3194_v26  ;;  %v2833_v26 = vld [vmem:[%s738_s25] ss:$0 sm:$0xff] }
 0x8fb   : > { %2940 = vmatprep.subr.bf16.mxu0 %v3195_v27 }
 0x8fe   : > { %2941 = vmatpush3.bf16.msra.mxu0 %v3196_v28 }
 0x8ff   : > { %2942 = vmatprep.subr.bf16.mxu0 %v3197_v29 }
 0x9c0   : > { %v2078_v30 = vpop.f32.mrb[12].mxu0 }
 0x9c1   : > { %v2085_v32 = vadd.f32 %v2078_v30, %v3587_v18  ;;  %v3060_v33 = vpop.f32.mrb[13].mxu0  ;;  %v3166_v18 = vld [vmem:[%s3404_s6 + $0x10] ss:$8 sps:$4 sm:$0xff]   ;;  %s3886_s6 = scalar_lea.vmem %s3852_s10, %s3360_s29  ;;  %v3198_v30 = vld [vmem:[%s3415_s4 + $0x28] sm:$0xff]  }
 0x9c2   : > { %v2081_v34 = vpop.f32.mrb[14].mxu0  ;;  %2248 = vmatpush1.bf16.msra.mxu1 %v3166_v18  ;;  %v2799_v3 = vld [vmem:[%s3886_s6] ss:$0 sm:$0xff]  ;;  %2943 = vmatpush3.bf16.msra.mxu0 %v3198_v30  ;;  %v3201_v33 = vld [vmem:[%s3415_s4 + $0x78] sm:$0xff]  }
 0x9c3   : > { %v3756_v35 = vadd.f32 %v2798_v31, %v2085_v32  ;;  %v2086_v37 = vadd.f32 %v3592_v19, %v2081_v34  ;;  %v3061_v38 = vpop.f32.mrb[15].mxu0  ;;  %2249 = vmatprep.subr.bf16.mxu1 %v3171_v50  ;;  %v3200_v32 = vld [vmem:[%s3415_s4 + $0x30] sm:$0xff]   ;;  %v3202_v34 = vld [vmem:[%s3415_s4 + $0x38] sm:$0xff]  }
 0x9c5   : > { %v3759_v7 = vadd.f32 %v2798_v31, %v2086_v37  ;;  %2098 = vadd.xlane.f32.xlu1 %v3756_v35  ;;  %v3199_v31 = vld [vmem:[%s3415_s4 + $0x70] sm:$0xff]   ;;  %v2153_v37 = vld [vmem:[%s3410_s23] sm:$0x3] }
 0x9c6   : > { %2250 = vmatpush1.bf16.msra.mxu1 %v3169_v51  ;;  %2944 = vmatprep.subr.bf16.mxu0 %v3199_v31  ;;  %v2158_v38 = vrot.slane %v2153_v37, %v1297_v13  ;;  %v2162_v39 = vrot.slane %v2153_v37, %v1301_v9 }
 0x9c7   : > { %2100 = vadd.xlane.f32.xlu0 %v3759_v7  ;;  %2251 = vmatprep.subr.bf16.mxu1 %v3174_v52 }
 0x9c8   : > { %2945 = vmatpush3.bf16.msra.mxu0 %v3200_v32 }
 0x9c9   : > { %2946 = vmatprep.subr.bf16.mxu0 %v3201_v33 }
 0x9ca   : > { %2252 = vmatpush1.bf16.msra.mxu1 %v3172_v25 }
 0x9cb   : > { %2253 = vmatprep.subr.bf16.mxu1 %v3177_v53 }
 0x9cc   : > { %2947 = vmatpush3.bf16.msra.mxu0 %v3202_v34 }
 0x9ce   : > { %2254 = vmatpush1.bf16.msra.mxu1 %v3175_v54 }
 0x9cf   : > { %2255 = vmatprep.subr.bf16.mxu1 %v3180_v36 }
 0x9d2   : > { %2256 = vmatpush1.bf16.msra.mxu1 %v3178_v55 }
 0x9d3   : > { %2257 = vmatprep.subr.bf16.mxu1 %v3183_v56 }
 0x9d6   : > { %2258 = vmatpush1.bf16.msra.mxu1 %v3181_v57 }
 0x9d7   : > { %2259 = vmatprep.subr.bf16.mxu1 %v3186_v58 }
 0x9da   : > { %2260 = vmatpush1.bf16.msra.mxu1 %v3184_v59 }
 0xa52   : > { %v2099_v19 = vpop.xlane.xlu1 %2098 }
 0xa53   : > { %v2102_v42 = vmul.f32 0.0078125, %v2099_v19 }
 0xa54   : > { %v2101_v43 = vpop.xlane.xlu0 %2100 }
 0xa55   : > { %v2104_v44 = vsub.f32 %v3756_v35, %v2102_v42  ;;  %v2103_v45 = vmul.f32 0.0078125, %v2101_v43 }
 0xa57   : > { %v2105_v46 = vsub.f32 %v3759_v7, %v2103_v45  ;;  %v2106_v47 = vmul.f32 %v2104_v44, %v2104_v44 }
 0xa59   : > { %2108 = vadd.xlane.f32.xlu0 %v2106_v47  ;;  %v2107_v49 = vmul.f32 %v2105_v46, %v2105_v46 }
 0xa5d   : > { %2110 = vadd.xlane.f32.xlu0 %v2107_v49 }
 0xae6   : > { %v2109_v60 = vpop.xlane.xlu0 %2108 }
 0xae7   : > { %v2112_v61 = vmul.f32 0.0078125, %v2109_v60 }
 0xae9   : > { %v2114_v62 = vadd.f32 1e-05, %v2112_v61 }
 0xaea   : > { %v2111_v63 = vpop.xlane.xlu0 %2110 }
 0xaeb   : > { %3223 = vrsqrt.f32 %v2114_v62  ;;  %v2113_v0 = vmul.f32 0.0078125, %v2111_v63 }
 0xaed   : > { %v2115_v1 = vadd.f32 1e-05, %v2113_v0 }
 0xaef   : > { %3225 = vrsqrt.f32 %v2115_v1 }
 0xaf5   : > { %v3224_v48 = vpop.eup %3223 }
 0xaf6   : > { %v2118_v2 = vmul.f32 %v3224_v48, %v2104_v44 }
 0xaf8   : > { %v2126_v6 = vmul.f32 %v2799_v3, %v2118_v2 }
 0xaf9   : > { %v3226_v4 = vpop.eup %3225 }
 0xafa   : > { %v2119_v5 = vmul.f32 %v3226_v4, %v2105_v46  ;;  %v2134_v12 = vadd.f32 %v2800_v10, %v2126_v6 }
 0xafc   : > { %v2127_v11 = vmul.f32 %v2799_v3, %v2119_v5 }
 0xafe   : > { %v2135_v14 = vadd.f32 %v2800_v10, %v2127_v11 }
 0xb00   : > { %v2152_v15 = vpack.c.bf16 %v2135_v14, %v2134_v12 }
 0xb02   : > { %2278 = vmatmul.mubr.bf16.vlgmr.msra.gmra.mrb[28].mxu1 %v2152_v15 }
 0xbd5   : > { %v2279_v40 = vpop.f32.mrb[28].mxu1 }
 0xbd6   : > { %v2280_v41 = vadd.f32 %v2279_v40, %v2158_v38  ;;  %v2281_v18 = vpop.f32.mrb[29].mxu1 }
 0xbd7   : > { %v2282_v19 = vadd.f32 %v2281_v18, %v2162_v39  ;;  %v2283_v42 = vpop.f32.mrb[30].mxu1 }
 0xbd8   : > { %v2288_v43 = vmul.f32 %v2280_v41, %v2280_v41  ;;  %v2284_v44 = vadd.f32 %v2283_v42, %v2158_v38  ;;  %v2285_v45 = vpop.f32.mrb[31].mxu1 }
 0xbd9   : > { %v2289_v46 = vmul.f32 %v2282_v19, %v2282_v19  ;;  %v2286_v47 = vadd.f32 %v2285_v45, %v2162_v39 }
 0xbda   : > { %v2292_v49 = vmul.f32 %v2288_v43, %v2280_v41  ;;  %v2290_v50 = vmul.f32 %v2284_v44, %v2284_v44 }
 0xbdb   : > { %v2293_v51 = vmul.f32 %v2289_v46, %v2282_v19  ;;  %v2291_v52 = vmul.f32 %v2286_v47, %v2286_v47  ;;  %v2835_v46 = vld [vmem:[%s3888_s24] ss:$0 sm:$0xff] (!%p2834_p5) }
 0xbdc   : > { %v2296_v25 = vmul.f32 0.044715, %v2292_v49  ;;  %v2294_v53 = vmul.f32 %v2290_v50, %v2284_v44  ;;  %v2836_v49 = vld [vmem:[%s3889_s17] ss:$0 sm:$0xff] (!%p2834_p5) }
 0xbdd   : > { %v2297_v13 = vmul.f32 0.044715, %v2293_v51  ;;  %v2295_v54 = vmul.f32 %v2291_v52, %v2286_v47 }
 0xbde   : > { %v2300_v8 = vadd.f32 %v2296_v25, %v2280_v41  ;;  %v2298_v9 = vmul.f32 0.044715, %v2294_v53 }
 0xbdf   : > { %v2301_v36 = vadd.f32 %v2297_v13, %v2282_v19  ;;  %v2299_v55 = vmul.f32 0.044715, %v2295_v54 }
 0xbe0   : > { %v2304_v56 = vmul.f32 0.7978846, %v2300_v8  ;;  %v2302_v57 = vadd.f32 %v2298_v9, %v2284_v44 }
 0xbe1   : > { %v2305_v58 = vmul.f32 0.7978846, %v2301_v36  ;;  %v2303_v59 = vadd.f32 %v2299_v55, %v2286_v47 }
 0xbe2   : > { %3227 = vtanh.f32 %v2304_v56  ;;  %v2306_v60 = vmul.f32 0.7978846, %v2302_v57 }
 0xbe3   : > { %3229 = vtanh.f32 %v2305_v58  ;;  %v2307_v61 = vmul.f32 0.7978846, %v2303_v59 }
 0xbe4   : > { %3231 = vtanh.f32 %v2306_v60 }
 0xbe5   : > { %3233 = vtanh.f32 %v2307_v61 }
 0xbec   : > { %v3228_v62 = vpop.eup %3227 }
 0xbed   : > { %v3230_v63 = vpop.eup %3229  ;;  %v2312_v0 = vadd.f32 1.0, %v3228_v62 }
 0xbee   : > { %v3232_v1 = vpop.eup %3231  ;;  %v2313_v48 = vadd.f32 1.0, %v3230_v63 }
 0xbef   : > { %v3234_v2 = vpop.eup %3233  ;;  %v2316_v3 = vmul.f32 0.5, %v2312_v0  ;;  %v2314_v4 = vadd.f32 1.0, %v3232_v1 }
 0xbf0   : > { %v2315_v5 = vadd.f32 1.0, %v3234_v2  ;;  %v2317_v6 = vmul.f32 0.5, %v2313_v48 }
 0xbf1   : > { %v2318_v10 = vmul.f32 0.5, %v2314_v4  ;;  %v2320_v12 = vmul.f32 %v2316_v3, %v2280_v41 }
 0xbf2   : > { %v2319_v11 = vmul.f32 0.5, %v2315_v5  ;;  %v2321_v15 = vmul.f32 %v2317_v6, %v2282_v19 }
 0xbf3   : > { %v2322_v14 = vmul.f32 %v2318_v10, %v2284_v44 }
 0xbf4   : > { %v2323_v16 = vmul.f32 %v2319_v11, %v2286_v47 }
 0xbf5   : > { %v2356_v17 = vpack.c.bf16 %v2322_v14, %v2320_v12 }
 0xbf6   : > { %v2357_v20 = vpack.c.bf16 %v2323_v16, %v2321_v15 }
 0xbf8   : > { %2486 = vmatprep.mubr.bf16.mxu0 %v2357_v20 }
 0xbf9   : > { %2487 = vmatmul.mubr.bf16.vlgmr.msra.gmra.mrb[16].mxu0 %v2356_v17 }
 0xccc   : > { %v2948_v21 = vpop.f32.mrb[16].mxu0 }
 0xccd   : > { %v2949_v23 = vpop.f32.mrb[17].mxu0 }
 0xcce   : > { %v2950_v24 = vadd.f32 %v2949_v23, %v2948_v21  ;;  %v2951_v22 = vpop.f32.mrb[18].mxu0  ;;  %2509 = sbr.rel (%p2834_p5) target bundleno = 3600 (0xe10), region = 100 }
 0xccf   : > { %v2952_v27 = vpop.f32.mrb[19].mxu0 }
 0xcd0   : > { %v2495_v28 = vadd.f32 %v2950_v24, %v3756_v35  ;;  %v2953_v29 = vadd.f32 %v2952_v27, %v2951_v22 }
 0xcd2   : > { %v2504_v30 = vadd.f32 %v2833_v26, %v2495_v28  ;;  %v2496_v31 = vadd.f32 %v2953_v29, %v3759_v7 }
 0xcd4   : > { %v2505_v32 = vadd.f32 %v2833_v26, %v2496_v31  ;;  %2512 = vadd.xlane.f32.xlu0 (!%p2834_p5), %v2504_v30 }
 0xcd8   : > { %2514 = vadd.xlane.f32.xlu0 %v2505_v32 }
 0xd61   : > { %v2513_v33 = vpop.xlane.xlu0 %2512 }
 0xd62   : > { %v2516_v34 = vmul.f32 0.0078125, %v2513_v33 }
 0xd64   : > { %v2518_v37 = vsub.f32 %v2504_v30, %v2516_v34 }
 0xd65   : > { %v2515_v38 = vpop.xlane.xlu0 %2514 }
 0xd66   : > { %v2517_v39 = vmul.f32 0.0078125, %v2515_v38  ;;  %v2520_v40 = vmul.f32 %v2518_v37, %v2518_v37 }
 0xd68   : > { %v2519_v41 = vsub.f32 %v2505_v32, %v2517_v39  ;;  %2522 = vadd.xlane.f32.xlu1 %v2520_v40 }
 0xd6a   : > { %v2521_v18 = vmul.f32 %v2519_v41, %v2519_v41 }
 0xd6c   : > { %2524 = vadd.xlane.f32.xlu1 %v2521_v18 }
 0xdf5   : > { %v2523_v35 = vpop.xlane.xlu1 %2522 }
 0xdf6   : > { %v2526_v19 = vmul.f32 0.0078125, %v2523_v35 }
 0xdf8   : > { %v2528_v42 = vadd.f32 1e-05, %v2526_v19 }
 0xdf9   : > { %v2525_v7 = vpop.xlane.xlu1 %2524 }
 0xdfa   : > { %3235 = vrsqrt.f32 %v2528_v42  ;;  %v2527_v43 = vmul.f32 0.0078125, %v2525_v7 }
 0xdfc   : > { %v2529_v44 = vadd.f32 1e-05, %v2527_v43 }
 0xdfe   : > { %3237 = vrsqrt.f32 %v2529_v44 }
 0xe04   : > { %v3236_v45 = vpop.eup %3235 }
 0xe05   : > { %v2532_v47 = vmul.f32 %v3236_v45, %v2518_v37 }
 0xe07   : > { %v2540_v50 = vmul.f32 %v2835_v46, %v2532_v47 }
 0xe08   : > { %v3238_v51 = vpop.eup %3237 }
 0xe09   : > { %v2548_v52 = vadd.f32 %v2836_v49, %v2540_v50  ;;  %v2533_v25 = vmul.f32 %v3238_v51, %v2519_v41 }
 0xe0b   : > { %2550 = vst [vmem:[%s3860_s18] sm:$0xff] %v2548_v52  ;;  %v2541_v53 = vmul.f32 %v2835_v46, %v2533_v25 }
 0xe0d   : > { %v2549_v13 = vadd.f32 %v2836_v49, %v2541_v53 }
 0xe0f   : > { %2837 = vst [vmem:[%s3860_s18 + $0x8] sm:$0xff] %v2549_v13 }
 0xe10 PF: > { %p2838_p6 = scmp.ge.s32.totalorder %s3354_s28, 1 }
 0xe11   : > { %2556 = vst [vmem:[%s3860_s18] sm:$0xff] (!%p2838_p6), %v2504_v30  ;;  %2839 = vst [vmem:[%s3860_s18 + $0x8] sm:$0xff] (!%p2838_p6), %v2505_v32 }
 0xe12   : > { %2555 = sbr.rel (%p2838_p6) target bundleno = 3609 (0xe19), region = 104 }
 0xe19 PF: > { %s3890_s2 = sld [smem:[#allocation2_spill]] }
 0xe1f   : > { %s28_s27 = sadd.s32 1, %s3890_s2  }
 0xe20   : > { %p25_p7 = scmp.ge.s32.totalorder %s28_s27, 4  }
 0xe22   :  { %27 = sbr.rel (!%p25_p7) target bundleno = 10 (0xa), region = 165 }

// kernel: _lambda_.4
= control target key start
LH: loop header
LB: loop body
LE: loop exit
PB: predicated region body
PF: predicated region fallthrough
CT: control target
= control target key end

     0   :  { %s3259_s0 = inlined_call_operand.vmem [shape: f32[8,6], index: 0, kind: input, shape index: {}]   ;;  %s3260_s1 = inlined_call_operand.vmem [shape: bf16[6,128], index: 1, kind: input, shape index: {}]   ;;  %s3261_s2 = inlined_call_operand.vmem [shape: f32[1,128], index: 2, kind: input, shape index: {}]   ;;  %s3262_s3 = inlined_call_operand.vmem [shape: f32[1,4,128], index: 3, kind: input, shape index: {}]   ;;  %s3263_s4 = inlined_call_operand.vmem [shape: f32[2,1,128], index: 4, kind: input, shape index: {}]   ;;  %s3264_s5 = inlined_call_operand.vmem [shape: f32[2,1,128], index: 5, kind: input, shape index: {}]   ;;  %s3265_s6 = inlined_call_operand.vmem [shape: bf16[2,128,384], index: 6, kind: input, shape index: {}]   ;;  %s3266_s7 = inlined_call_operand.vmem [shape: f32[2,1,384], index: 7, kind: input, shape index: {}]   ;;  %s3267_s8 = inlined_call_operand.vmem [shape: bf16[2,128,128], index: 8, kind: input, shape index: {}]   ;;  %s3268_s9 = inlined_call_operand.vmem [shape: f32[2,1,128], index: 9, kind: input, shape index: {}]   ;;  %s3269_s10 = inlined_call_operand.vmem [shape: f32[2,1,128], index: 10, kind: input, shape index: {}]   ;;  %s3270_s11 = inlined_call_operand.vmem [shape: f32[2,1,128], index: 11, kind: input, shape index: {}]   ;;  %s3271_s12 = inlined_call_operand.vmem [shape: bf16[2,128,256], index: 12, kind: input, shape index: {}]   ;;  %s3272_s13 = inlined_call_operand.vmem [shape: f32[2,1,256], index: 13, kind: input, shape index: {}]   ;;  %s3273_s14 = inlined_call_operand.vmem [shape: bf16[2,256,128], index: 14, kind: input, shape index: {}]   ;;  %s3274_s15 = inlined_call_operand.vmem [shape: f32[2,1,128], index: 15, kind: input, shape index: {}]   ;;  %s3275_s16 = inlined_call_operand.hbm [shape: f32[1,128], index: 16, kind: input, shape index: {}]   ;;  %s3276_s17 = inlined_call_operand.hbm [shape: f32[1,128], index: 17, kind: input, shape index: {}]   ;;  %s3277_s18 = inlined_call_operand.vmem [shape: f32[2,4,128], index: 18, kind: output, shape index: {}]  }
   0x1   :  { %3281 = sst [smem:[#allocation9_spill]] %s3259_s0 }
   0x2   :  { %3282 = sst [smem:[#allocation10_spill]] %s3260_s1 }
   0x3   :  { %3283 = sst [smem:[#allocation11_spill]] %s3261_s2 }
   0x4   :  { %3284 = sst [smem:[#allocation12_spill]] %s3263_s4 }
   0x5   :  { %3285 = sst [smem:[#allocation13_spill]] %s3264_s5 }
   0x6   :  { %3286 = sst [smem:[#allocation14_spill]] %s3265_s6 }
   0x7   :  { %3287 = sst [smem:[#allocation15_spill]] %s3267_s8 }
   0x8   :  { %3288 = sst [smem:[#allocation16_spill]] %s3275_s16 }
   0x9   :  { %3289 = sst [smem:[#allocation17_spill]] %s3276_s17 }
   0xa   :  { %23 = vsyncpa [#allocation3], 0 }
   0xb   :  { %24 = vsyncpa [#allocation5], 0  ;;  %s2863_s27 = smov 0  }
   0xc LB: > { %3290 = sst [smem:[#allocation8_spill]] %s2758_s27  ;;  %s2869_s28 = sadd.s32 4294967295, %s2758_s27   ;;  %s2758_s27 = sphi %s2863_s27, %s30_s27  }
   0xd   : > { %p2284_p0 = scmp.ge.s32.totalorder %s2758_s27, 1  ;;  %p494_p1 = scmp.lt.s32.totalorder %s2758_s27, 3 }
   0xe   : > { %p3278_p3 = scmp.eq.s32.totalorder %s2869_s28, 0  ;;  %s2760_s30 = smov [#allocation2]  }
   0xf   : > { %p2875_p4 = pnand %p2284_p0, %p494_p1  ;;  %s519_s0 = sshll.u32 %s2760_s30, 4  ;;  %s520_s0 = int_to_ptr.vmem [resolvable:$true] %s519_s0 }
  0x10   : > { %s2761_s19 = smov [#allocation4]   ;;  %s3293_s16 = sld [smem:[#allocation16_spill]] }
  0x11   : > { %s3291_s29 = scalar_select %p2875_p4, 1, 0 }
  0x12   : > { %p2555_p5 = pneg %p2875_p4  ;;  %s530_s1 = sshll.u32 %s2761_s19, 4  ;;  %s2887_s1 = int_to_ptr.vmem [resolvable:$true] %s530_s1 }
  0x14   : > { %p2883_p6 = pnand %p3278_p3, %p2555_p5 }
  0x16   : > { %s2688_s2 = scalar_lea.hbm %s3293_s16, 16  ;;  %p2690_p8 = pneg %p2883_p6 }
  0x17   : > { %p2689_p7 = scmp.ne.s32.totalorder %s3293_s16, %s2688_s2  ;;  %p2695_p11 = scmp.lt.u32.totalorder %s2688_s2, %s3293_s16 }
  0x19   : > { %p2691_p9 = pnand %p2690_p8, %p2689_p7 }
  0x1b   : > { %p2692_p10 = pneg %p2691_p9 }
  0x1d   : > { %p2697_p12 = pnand %p2695_p11, %p2692_p10 }
  0x1f   : > { %2700 = shalt.err (!%p2697_p12)
}
  0x20   : > { %s2701_s30 = scalar_lea.vmem %s520_s0, 16  ;;  %s2708_s19 = scalar_lea.vmem %s520_s0, 32 }
  0x21   : > { %p2702_p13 = scmp.ne.s32.totalorder %s520_s0, %s2701_s30  ;;  %p2709_p5 = scmp.lt.s32.totalorder %s520_s0, %s520_s0 }
  0x22   : > { %p2710_p2 = scmp.lt.s32.totalorder %s2708_s19, %s2701_s30 }
  0x23   : > { %p2704_p0 = pnand %p2702_p13, %p2690_p8 }
  0x24   : > { %p2711_p3 = por %p2710_p2, %p2709_p5 }
  0x25   : > { %p2705_p1 = pneg %p2704_p0 }
  0x27   : > { %p2712_p4 = pnand %p2711_p3, %p2705_p1 }
  0x29   : > { %2715 = shalt.err (!%p2712_p4)
}
  0x2a   : > { %2558 = dma.hbm_to_vmem [thread:$0]  (!%p2883_p6), %s3293_s16, 16, %s520_s0, [#allocation3]  }
  0x2b   : > { %s3294_s17 = sld [smem:[#allocation17_spill]] }
  0x31   : > { %s2716_s24 = scalar_lea.hbm %s3294_s17, 16 }
  0x32   : > { %p2717_p7 = scmp.ne.s32.totalorder %s3294_s17, %s2716_s24  ;;  %p2723_p4 = scmp.lt.u32.totalorder %s2716_s24, %s3294_s17 }
  0x34   : > { %p2719_p2 = pnand %p2717_p7, %p2690_p8 }
  0x36   : > { %p2720_p3 = pneg %p2719_p2 }
  0x38   : > { %p2725_p9 = pnand %p2723_p4, %p2720_p3 }
  0x3a   : > { %2728 = shalt.err (!%p2725_p9)
}
  0x3b   : > { %s2729_s0 = scalar_lea.vmem %s2887_s1, 16  ;;  %s2736_s21 = scalar_lea.vmem %s2887_s1, 32 }
  0x3c   : > { %p2730_p10 = scmp.ne.s32.totalorder %s2887_s1, %s2729_s0  ;;  %p2737_p13 = scmp.lt.s32.totalorder %s2887_s1, %s2887_s1 }
  0x3d   : > { %p2738_p0 = scmp.lt.s32.totalorder %s2736_s21, %s2729_s0 }
  0x3e   : > { %p2732_p11 = pnand %p2730_p10, %p2690_p8 }
  0x3f   : > { %p2739_p1 = por %p2738_p0, %p2737_p13 }
  0x40   : > { %p2733_p12 = pneg %p2732_p11 }
  0x42   : > { %p2740_p5 = pnand %p2739_p1, %p2733_p12 }
  0x44   : > { %2743 = shalt.err (!%p2740_p5)
}
  0x45   : > { %2561 = dma.hbm_to_vmem [thread:$0]  (!%p2883_p6), %s3294_s17, 16, %s2887_s1, [#allocation5]  }
  0x46   : > { %p3295_p7 = scmp.ne.s32.totalorder %s3291_s29, 0 }
  0x47   : > { %p3296_p8 = scmp.eq.s32.totalorder (!%p3295_p7), %s2869_s28, 0 }
  0x48   : > { %625 = sbr.rel (%p3295_p7) target bundleno = 3604 (0xe14), region = 92 }
  0x4f   : > { %2749 = dma.done.wait (%p3296_p8), [#allocation3], 16   ;;  %p3297_p2 = pmov %p3296_p8 }
  0x51   : > { %2751 = vsyncadd (%p3297_p2), [#allocation3], 4294967280  ;;  %p3298_p3 = pmov %p3297_p2 }
  0x52   : > { %p3299_p4 = pmov %p3297_p2 }
  0x53   : > { %2753 = dma.done.wait (%p3298_p3), [#allocation5], 16  }
  0x54   : > { %2755 = vsyncadd (%p3299_p4), [#allocation5], 4294967280  ;;  %p719_p9 = scmp.lt.s32.totalorder %s2869_s28, 1  ;;  %s3302_s8 = sld [smem:[#allocation15_spill]] }
  0x55   : > { %s3303_s6 = sld [smem:[#allocation14_spill]]  ;;  %p3304_p6 = scmp.ne.s32.totalorder %s2869_s28, 0 }
  0x56   : > { %s2949_s20 = scalar_select %p719_p9, %s2869_s28, 1 }
  0x57   : > { %vm784_vm0 = vcmask (!%p3304_p6), 1042432   ;;  %s3306_s23 = sld [smem:[#allocation9_spill]] (!%p3304_p6)  ;;  %v2762_v2 = vmov (!%p3304_p6), 0.0   ;;  %vm2763_vm1 = vmmov (!%p3304_p6), 0   ;;  %vm780_vm2 = vcmask (!%p3304_p6), 48128   ;;  %s3307_s5 = sld [smem:[#allocation11_spill]] (!%p3304_p6) }
  0x58   : > { %s2545_s30 = smul.u32 192, %s2949_s20  ;;  %s2390_s19 = sshll.u32 %s2949_s20, 6  ;;  %2451 = vmatprep.subr.bf16.mxu0 (!%p3304_p6), %v2762_v2  ;;  %2453 = vmatprep.mubr.msk.bf16.mxu0 (!%p3304_p6), %vm2763_vm1, %v2762_v2  ;;  %v831_v5 = vld [vmem:[%s3262_s3] sm:$0xf] (!%p3304_p6) }
  0x59   : > { %s2546_s0 = smul.u32 3, %s2949_s20  ;;  %s744_s21 = scalar_lea.vmem %s3269_s10, %s2949_s20  ;;  %v833_v7 = vrot.slane (!%p3304_p6), %v831_v5, 4  ;;  %v828_v9 = vld [vmem:[%s3262_s3] sm:$0xf] (!%p3304_p6) }
  0x5a   : > { %s2965_s2 = scalar_lea.vmem %s3302_s8, %s2390_s19  ;;  %s2391_s29 = sshll.u32 %s2949_s20, 7 }
  0x5b   : > { %s2970_s16 = scalar_lea.vmem %s3303_s6, %s2545_s30  ;;  %s2979_s26 = scalar_lea.vmem %s3266_s7, %s2546_s0 }
  0x5c   : > { %s2993_s6 = scalar_lea.vmem %s3271_s12, %s2391_s29  ;;  %s2296_s17 = sshll.u32 %s2949_s20, 1 }
  0x5d   : > { %s2999_s0 = scalar_lea.vmem %s3272_s13, %s2296_s17  ;;  %s3004_s4 = scalar_lea.vmem %s3273_s14, %s2391_s29  ;;  %v770_v1 = vld [vmem:[%s3306_s23] sm:$0xff] (!%p3304_p6) }
  0x5e   : > { %s764_s22 = scalar_lea.vmem %s3274_s15, %s2949_s20  ;;  %769 = sbr.rel (%p3304_p6) target bundleno = 323 (0x143), region = 104  ;;  %v772_v4 = vpack.c.bf16 (!%p3304_p6), %v770_v1, %v770_v1  ;;  %v2300_v6 = vld [vmem:[%s3307_s5] ss:$0 sm:$0xff] (!%p3304_p6) }
  0x5f   : > { %s3305_s8 = sld [smem:[#allocation10_spill]] (!%p3304_p6) }
  0x65   : > { %v771_v0 = vld [vmem:[%s3305_s8] sm:$0x7] }
  0x66   : > { %v786_v3 = vsel %vm784_vm0, %v771_v0, 0 }
  0x67   : > { %2452 = vmatpush3.bf16.msra.mxu0 %v786_v3 }
  0x6a   : > { %2454 = vmatmul.mubr.msk.bf16.vlgmr.msra.gmra.mrb[0].mxu0 %vm780_vm2, %v772_v4 }
 0x13d   : > { %v822_v8 = vpop.f32.mrb[0].mxu0 }
 0x13e   : > { %v823_v10 = vadd.f32 %v2300_v6, %v822_v8  ;;  %v2455_v11 = vpop.f32.mrb[1].mxu0 }
 0x13f   : > { %v825_v12 = vpop.f32.mrb[2].mxu0 }
 0x140   : > { %v829_v13 = vadd.f32 %v828_v9, %v823_v10  ;;  %v835_v14 = vadd.f32 %v833_v7, %v823_v10  ;;  %v2456_v15 = vpop.f32.mrb[3].mxu0 }
 0x142   : > { %830 = vst [vmem:[%s3277_s18] sm:$0xf] %v829_v13  ;;  %2302 = vst [vmem:[%s3277_s18] sm:$0xf0] %v835_v14 }
 0x143 PF: > { %vm844_vm3 = vcmask 1043456   ;;  %v2582_v20 = vld [vmem:[%s2970_s16 + $0x4] ss:$12 sps:$4 sm:$0xff]   ;;  %v2584_v21 = vld [vmem:[%s2970_s16] ss:$12 sps:$4 sm:$0xff]   ;;  %v2764_v22 = vmov 0.0   ;;  %v909_v60 = vlaneseq  ;;  %s3312_s24 = scalar_lea.vmem %s3268_s9, %s2949_s20  ;;  %s3313_s19 = scalar_lea.vmem %s3270_s11, %s2949_s20 }
 0x144   : > { %2457 = vmatprep.subr.bf16.mxu1 %v2764_v22  ;;  %v2585_v23 = vld [vmem:[%s2970_s16 + $0x8] ss:$12 sps:$4 sm:$0xff]   ;;  %v2588_v25 = vld [vmem:[%s2970_s16 + $0x18] ss:$12 sps:$4 sm:$0xff]   ;;  %1052 = vmatprep.subr.bf16.mxu0 %v2582_v20  ;;  %v2589_v26 = vld [vmem:[%s2970_s16 + $0x20] ss:$12 sps:$4 sm:$0xff]  }
 0x145   : > { %v2586_v24 = vld [vmem:[%s2970_s16 + $0x1c] ss:$12 sps:$4 sm:$0xff]   ;;  %v2590_v27 = vld [vmem:[%s2970_s16 + $0x34] ss:$12 sps:$4 sm:$0xff]   ;;  %1053 = vmatpush1.bf16.msra.mxu0 %v2584_v21  ;;  %2458 = vmatpush3.bf16.msra.mxu1 %v2585_v23  ;;  %v2593_v33 = vld [vmem:[%s2970_s16 + $0x38] ss:$12 sps:$4 sm:$0xff]  }
 0x146   : > { %1054 = vmatprep.subr.bf16.mxu0 %v2586_v24  ;;  %2459 = vmatprep.subr.bf16.mxu1 %v2764_v22  ;;  %v2592_v32 = vld [vmem:[%s2970_s16 + $0x30] ss:$12 sps:$4 sm:$0xff]   ;;  %v2594_v34 = vld [vmem:[%s2970_s16 + $0x4c] ss:$12 sps:$4 sm:$0xff]   ;;  %v2596_v35 = vld [vmem:[%s2970_s16 + $0x48] ss:$12 sps:$4 sm:$0xff]  }
 0x147   : > { %v2597_v36 = vld [vmem:[%s2970_s16 + $0x50] ss:$12 sps:$4 sm:$0xff]   ;;  %v2600_v38 = vld [vmem:[%s2970_s16 + $0x60] ss:$12 sps:$4 sm:$0xff]   ;;  %v2601_v39 = vld [vmem:[%s2970_s16 + $0x68] ss:$12 sps:$4 sm:$0xff]  }
 0x148   : > { %v2598_v37 = vld [vmem:[%s2970_s16 + $0x64] ss:$12 sps:$4 sm:$0xff]   ;;  %v2602_v40 = vld [vmem:[%s2970_s16 + $0x7c] ss:$12 sps:$4 sm:$0xff]   ;;  %v2605_v42 = vld [vmem:[%s2970_s16 + $0x80] ss:$12 sps:$4 sm:$0xff]  }
 0x149   : > { %v838_v16 = vld [vmem:[%s3277_s18] sm:$0xf]  ;;  %v2303_v17 = vld [vmem:[%s3277_s18 + $0x4] sm:$0xf]  ;;  %1055 = vmatpush1.bf16.msra.mxu0 %v2588_v25  ;;  %2460 = vmatpush3.bf16.msra.mxu1 %v2589_v26  ;;  %v2765_v44 = vmov 0   ;;  %vm2766_vm4 = vmmov 0  }
 0x14a   : > { %v842_v18 = vrot.slane %v2303_v17, 4  ;;  %1056 = vmatprep.subr.bf16.mxu0 %v2590_v27  ;;  %2461 = vmatprep.subr.bf16.mxu1 %v2764_v22  ;;  %v2604_v41 = vld [vmem:[%s2970_s16 + $0x78] ss:$12 sps:$4 sm:$0xff]   ;;  %v2606_v43 = vld [vmem:[%s2970_s16 + $0x94] ss:$12 sps:$4 sm:$0xff]   ;;  %s3308_s30 = sld [smem:[#allocation12_spill]] }
 0x14b   : > { %1084 = vmatprep.mubr.bf16.mxu0 %v2765_v44  ;;  %2473 = vmatprep.mubr.msk.bf16.mxu1 %vm2766_vm4, %v2764_v22  ;;  %v2608_v45 = vld [vmem:[%s2970_s16 + $0x90] ss:$12 sps:$4 sm:$0xff]   ;;  %v2609_v46 = vld [vmem:[%s2970_s16 + $0x98] ss:$12 sps:$4 sm:$0xff]   ;;  %v2612_v48 = vld [vmem:[%s2970_s16 + $0xa8] ss:$12 sps:$4 sm:$0xff]  }
 0x14c   : > { %v3040_v19 = vsel %vm844_vm3, %v838_v16, %v842_v18  ;;  %v2610_v47 = vld [vmem:[%s2970_s16 + $0xac] ss:$12 sps:$4 sm:$0xff]   ;;  %v2613_v49 = vld [vmem:[%s2970_s16 + $0xb0] ss:$12 sps:$4 sm:$0xff]   ;;  %s3310_s17 = sld [smem:[#allocation13_spill]]  ;;  %v3095_v61 = vshrl.u32 %v909_v60, 7 }
 0x14d   : > { %848 = vadd.xlane.f32.xlu0 %v3040_v19  ;;  %1057 = vmatpush1.bf16.msra.mxu0 %v2592_v32  ;;  %v907_v63 = vld [vmem:[%s2979_s26] sm:$0x7]  ;;  %vm1135_vm5 = vcmask 523264   ;;  %s2767_s26 = smov 64   ;;  %vm1201_vm6 = vcmask 1041408   ;;  %vm1183_vm7 = vcmask 27648  }
 0x14e   : > { %2462 = vmatpush3.bf16.msra.mxu1 %v2593_v33  ;;  %1058 = vmatprep.subr.bf16.mxu0 %v2594_v34  ;;  %v915_v62 = vsub.s32 1, %v3095_v61  ;;  %v911_v0 = vsub.s32 0, %v3095_v61  ;;  %v919_v1 = vsub.s32 2, %v3095_v61  ;;  %vm1197_vm8 = vcmask 31744   ;;  %p2382_p10 = scmp.ne.s32.totalorder %s2869_s28, 1 }
 0x14f   : > { %2463 = vmatprep.subr.bf16.mxu1 %v2764_v22 }
 0x150   : > { %s3309_s1 = scalar_lea.vmem %s3308_s30, %s2949_s20  ;;  %v916_v2 = vrot.slane %v907_v63, %v915_v62  ;;  %v912_v7 = vrot.slane %v907_v63, %v911_v0  ;;  %v920_v8 = vrot.slane %v907_v63, %v919_v1 }
 0x151   : > { %1059 = vmatpush1.bf16.msra.mxu0 %v2596_v35  ;;  %v2304_v54 = vld [vmem:[%s3309_s1] ss:$0 sm:$0xff] }
 0x152   : > { %2464 = vmatpush3.bf16.msra.mxu1 %v2597_v36  ;;  %1060 = vmatprep.subr.bf16.mxu0 %v2598_v37  ;;  %s3311_s23 = scalar_lea.vmem %s3310_s17, %s2949_s20 }
 0x153   : > { %2465 = vmatprep.subr.bf16.mxu1 %v2764_v22  ;;  %v2305_v56 = vld [vmem:[%s3311_s23] ss:$0 sm:$0xff] }
 0x155   : > { %1061 = vmatpush1.bf16.msra.mxu0 %v2600_v38 }
 0x156   : > { %2466 = vmatpush3.bf16.msra.mxu1 %v2601_v39  ;;  %1062 = vmatprep.subr.bf16.mxu0 %v2602_v40 }
 0x157   : > { %2467 = vmatprep.subr.bf16.mxu1 %v2764_v22 }
 0x159   : > { %1063 = vmatpush1.bf16.msra.mxu0 %v2604_v41 }
 0x15a   : > { %2468 = vmatpush3.bf16.msra.mxu1 %v2605_v42  ;;  %1064 = vmatprep.subr.bf16.mxu0 %v2606_v43 }
 0x15b   : > { %2469 = vmatprep.subr.bf16.mxu1 %v2764_v22 }
 0x15d   : > { %1065 = vmatpush1.bf16.msra.mxu0 %v2608_v45 }
 0x15e   : > { %2470 = vmatpush3.bf16.msra.mxu1 %v2609_v46  ;;  %1066 = vmatprep.subr.bf16.mxu0 %v2610_v47 }
 0x15f   : > { %2471 = vmatprep.subr.bf16.mxu1 %v2764_v22 }
 0x161   : > { %1067 = vmatpush1.bf16.msra.mxu0 %v2612_v48 }
 0x162   : > { %2472 = vmatpush3.bf16.msra.mxu1 %v2613_v49  ;;  %2501 = vmatprep.subr.bf16.mxu0 %v2764_v22 }
 0x163   : > { %2477 = vmatprep.subr.bf16.mxu1 %v2764_v22 }
 0x1da   : > { %v849_v28 = vpop.xlane.xlu0 %848 }
 0x1db   : > { %v851_v29 = vmul.f32 0.0078125, %v849_v28 }
 0x1dd   : > { %v852_v30 = vsub.f32 %v3040_v19, %v851_v29 }
 0x1df   : > { %v853_v31 = vmul.f32 %v852_v30, %v852_v30 }
 0x1e1   : > { %854 = vadd.xlane.f32.xlu0 %v853_v31 }
 0x26e   : > { %v855_v50 = vpop.xlane.xlu0 %854 }
 0x26f   : > { %v856_v51 = vmul.f32 0.0078125, %v855_v50 }
 0x271   : > { %v857_v52 = vadd.f32 1e-05, %v856_v51 }
 0x273   : > { %2662 = vrsqrt.f32 %v857_v52 }
 0x27d   : > { %v2663_v53 = vpop.eup %2662 }
 0x27e   : > { %v859_v55 = vmul.f32 %v2663_v53, %v852_v30 }
 0x280   : > { %v866_v57 = vmul.f32 %v2304_v54, %v859_v55 }
 0x282   : > { %v873_v58 = vadd.f32 %v2305_v56, %v866_v57 }
 0x284   : > { %v906_v59 = vpack.c.bf16 %v873_v58, %v873_v58 }
 0x286   : > { %1085 = vmatmul.mubr.bf16.vlgmr.msra.gmra.mrb[0].mxu0 %v906_v59  ;;  %2474 = vmatmul.mubr.bf16.vlgmr.msra.gmra.mrb[0].mxu1 %v906_v59 }
 0x287   : > { %2479 = vmatprep.mubr.msk.bf16.mxu1 %vm2766_vm4, %v2764_v22  ;;  %2503 = vmatprep.mubr.msk.bf16.mxu0 %vm2766_vm4, %v2764_v22 }
 0x359   : > { %v1086_v3 = vpop.f32.mrb[0].mxu0  ;;  %v1127_v4 = vpop.f32.mrb[0].mxu1 }
 0x35a   : > { %v1088_v5 = vpop.f32.mrb[1].mxu0  ;;  %v2475_v6 = vpop.f32.mrb[1].mxu1  ;;  %v1087_v15 = vadd.f32 %v1086_v3, %v912_v7  ;;  %v1128_v16 = vadd.f32 %v1127_v4, %v920_v8 }
 0x35b   : > { %v1089_v9 = vadd.f32 %v1088_v5, %v916_v2  ;;  %v1090_v10 = vpop.f32.mrb[2].mxu0  ;;  %v1130_v11 = vpop.f32.mrb[2].mxu1 }
 0x35c   : > { %v1091_v12 = vpop.f32.mrb[3].mxu0  ;;  %v2476_v13 = vpop.f32.mrb[3].mxu1  ;;  %v1133_v21 = vpack.c.bf16 %v1087_v15, %v1087_v15  ;;  %v3109_v23 = vpack.c.bf16 %v1128_v16, %v1128_v16 }
 0x35d   : > { %v1134_v14 = vpack.c.bf16 %v1089_v9, %v1089_v9 }
 0x35e   : > { %v1364_v24 = vrot.slane %v1133_v21, 2  ;;  %v1203_v25 = vsel %vm1201_vm6, %v3109_v23, 0 }
 0x35f   : > { %1249 = vrot.lane.b32.xlu0 %v1134_v14, %s2767_s26  ;;  %v1140_v17 = vsel %vm1135_vm5, %v1134_v14, 0  ;;  %v1365_v18 = vrot.slane %v1134_v14, 2 }
 0x360   : > { %2478 = vmatpush3.bf16.xpose.msra.mxu1 %v1140_v17 }
 0x361   : > { %v1370_v20 = vsel %vm1135_vm5, %v1365_v18, 0  ;;  %2483 = vmatprep.subr.bf16.mxu1 %v2764_v22 }
 0x362   : > { %2502 = vmatpush3.bf16.xpose.msra.mxu0 %v1370_v20 }
 0x363   : > { %2513 = vmatprep.subr.bf16.mxu0 %v2764_v22 }
 0x367   : > { %2480 = vmatmul.mubr.msk.bf16.vlgmr.msra.gmra.mrb[4].mxu1 %vm1135_vm5, %v1133_v21 }
 0x368   : > { %2484 = vmatpush3.bf16.msra.mxu1 %v1203_v25  ;;  %2485 = vmatprep.mubr.msk.bf16.mxu1 %vm2766_vm4, %v2764_v22 }
 0x369   : > { %2504 = vmatmul.mubr.msk.bf16.vlgmr.msra.gmra.mrb[4].mxu0 %vm1135_vm5, %v1364_v24  ;;  %2489 = vmatprep.subr.bf16.mxu1 %v2764_v22 }
 0x36a   : > { %2515 = vmatprep.mubr.msk.bf16.mxu0 %vm2766_vm4, %v2764_v22 }
 0x3d1   : > { %v1250_v50 = vpop.permute.xlu0 %1249 }
 0x3d2   : > { %v1255_v52 = vsel %vm1135_vm5, %v1250_v50, 0 }
 0x43a   : > { %v1176_v26 = vpop.f32.mrb[4].mxu1 }
 0x43b   : > { %v1182_v27 = vmul.f32 0.125, %v1176_v26  ;;  %v2481_v28 = vpop.f32.mrb[5].mxu1 }
 0x43c   : > { %v1179_v29 = vpop.f32.mrb[6].mxu1  ;;  %v1406_v30 = vpop.f32.mrb[4].mxu0 }
 0x43d   : > { %v2482_v31 = vpop.f32.mrb[7].mxu1  ;;  %v2505_v32 = vpop.f32.mrb[5].mxu0  ;;  %v1184_v33 = vsel %vm1183_vm7, %v1182_v27, -inf  ;;  %v1412_v41 = vmul.f32 0.125, %v1406_v30 }
 0x43e   : > { %v1409_v34 = vpop.f32.mrb[6].mxu0  ;;  %1185 = vmax.xlane.f32.xlu1 %v1184_v33 }
 0x43f   : > { %v2506_v35 = vpop.f32.mrb[7].mxu0  ;;  %v1413_v42 = vsel %vm1183_vm7, %v1412_v41, -inf }
 0x4cb   : > { %v1186_v36 = vpop.xlane.xlu1 %1185 }
 0x4cc   : > { %v1187_v37 = vsub.f32 %v1182_v27, %v1186_v36  ;;  %v1425_v27 = vrot.slane %v3109_v23, 2 }
 0x4ce   : > { %v1188_v38 = vmul.f32 1.442695, %v1187_v37 }
 0x4d0   : > { %2664 = vpow2.f32 %v1188_v38 }
 0x4da   : > { %v2665_v39 = vpop.eup %2664 }
 0x4db   : > { %v1190_v40 = vsel %vm1183_vm7, %v2665_v39, 0.0 }
 0x4dc   : > { %1191 = vadd.xlane.f32.xlu1 %v1190_v40 }
 0x4ed   : > { %1246 = vrot.lane.b32.xlu1 %v1133_v21, %s2767_s26 }
 0x4f1   : > { %1474 = vrot.lane.b32.xlu1 %v1365_v18, %s2767_s26 }
 0x4f5   : > { %1472 = vrot.lane.b32.xlu1 %v1364_v24, %s2767_s26 }
 0x519   : > { %1414 = vmax.xlane.f32.xlu1 %v1413_v42 }
 0x569   : > { %v1192_v43 = vpop.xlane.xlu1 %1191 }
 0x56a   : > { %2666 = vrcp.f32 %v1192_v43 }
 0x56d   : > { %v1247_v45 = vpop.permute.xlu1 %1246 }
 0x571   : > { %v1475_v46 = vpop.permute.xlu1 %1474 }
 0x572   : > { %v1480_v47 = vsel %vm1135_vm5, %v1475_v46, 0  ;;  %v2615_v46 = vld [vmem:[%s2965_s2 + $0x8] sm:$0xff]  }
 0x573   : > { %2514 = vmatpush3.bf16.xpose.msra.mxu0 %v1480_v47  ;;  %v2616_v47 = vld [vmem:[%s2965_s2 + $0x10] sm:$0xff]  }
 0x574   : > { %v2667_v48 = vpop.eup %2666  ;;  %2525 = vmatprep.subr.bf16.mxu0 %v2764_v22 }
 0x575   : > { %v1194_v49 = vmul.f32 %v2667_v48, %v2665_v39  ;;  %v1473_v53 = vpop.permute.xlu1 %1472  ;;  %v2617_v48 = vld [vmem:[%s2965_s2 + $0x18] sm:$0xff]  }
 0x577   : > { %v1195_v51 = vpack.c.bf16 %v1194_v49, %v1194_v49  ;;  %v2618_v49 = vld [vmem:[%s2965_s2 + $0x20] sm:$0xff]  }
 0x579   : > { %2486 = vmatmul.mubr.msk.bf16.vlgmr.msra.gmra.mrb[8].mxu1 %vm1197_vm8, %v1195_v51 }
 0x57a   : > { %2490 = vmatpush3.bf16.xpose.msra.mxu1 %v1255_v52  ;;  %2516 = vmatmul.mubr.msk.bf16.vlgmr.msra.gmra.mrb[8].mxu0 %vm1135_vm5, %v1473_v53 }
 0x57b   : > { %2491 = vmatprep.mubr.msk.bf16.mxu1 %vm2766_vm4, %v2764_v22  ;;  %2495 = vmatprep.subr.bf16.mxu1 %v2764_v22 }
 0x57c   : > { %2541 = vmatprep.mubr.msk.bf16.mxu0 %vm2766_vm4, %v2764_v22 }
 0x581   : > { %2492 = vmatmul.mubr.msk.bf16.vlgmr.msra.gmra.mrb[12].mxu1 %vm1135_vm5, %v1247_v45  ;;  %v2614_v45 = vld [vmem:[%s2965_s2] sm:$0xff]  }
 0x582   : > { %2497 = vmatprep.mubr.msk.bf16.mxu1 %vm2766_vm4, %v2764_v22  ;;  %2526 = vmatpush3.bf16.msra.mxu0 %v2614_v45 }
 0x583   : > { %2527 = vmatprep.subr.bf16.mxu0 %v2764_v22 }
 0x586   : > { %2528 = vmatpush3.bf16.msra.mxu0 %v2615_v46 }
 0x587   : > { %2529 = vmatprep.subr.bf16.mxu0 %v2764_v22 }
 0x58a   : > { %2530 = vmatpush3.bf16.msra.mxu0 %v2616_v47 }
 0x58b   : > { %2531 = vmatprep.subr.bf16.mxu0 %v2764_v22 }
 0x58e   : > { %2532 = vmatpush3.bf16.msra.mxu0 %v2617_v48  ;;  %v2646_v48 = vld [vmem:[%s3004_s4 + $0x40] sm:$0xff]  }
 0x58f   : > { %2533 = vmatprep.subr.bf16.mxu0 %v2764_v22 }
 0x592   : > { %2534 = vmatpush3.bf16.msra.mxu0 %v2618_v49  ;;  %v2647_v49 = vld [vmem:[%s3004_s4] sm:$0xff]  }
 0x593   : > { %2535 = vmatprep.subr.bf16.mxu0 %v2764_v22 }
 0x5a6   : > { %v1415_v54 = vpop.xlane.xlu1 %1414 }
 0x5a7   : > { %v1416_v55 = vsub.f32 %v1412_v41, %v1415_v54  ;;  %v2620_v54 = vld [vmem:[%s2965_s2 + $0x30] sm:$0xff]  }
 0x5a9   : > { %v1417_v59 = vmul.f32 1.442695, %v1416_v55 }
 0x5ab   : > { %2668 = vpow2.f32 %v1417_v59 }
 0x5b5   : > { %v2669_v12 = vpop.eup %2668 }
 0x5b6   : > { %v1419_v13 = vsel %vm1183_vm7, %v2669_v12, 0.0 }
 0x64c   : > { %v3140_v56 = vpop.f32.mrb[8].mxu1 }
 0x64d   : > { %v2487_v57 = vpop.f32.mrb[9].mxu1  ;;  %v1516_v58 = vpop.f32.mrb[8].mxu0 }
 0x64e   : > { %v1242_v60 = vpop.f32.mrb[10].mxu1  ;;  %v2517_v63 = vpop.f32.mrb[9].mxu0  ;;  %v1522_v8 = vmul.f32 0.125, %v1516_v58  ;;  %v2621_v57 = vld [vmem:[%s2965_s2 + $0x38] sm:$0xff]  }
 0x64f   : > { %v2488_v1 = vpop.f32.mrb[11].mxu1  ;;  %v1519_v2 = vpop.f32.mrb[10].mxu0 }
 0x650   : > { %v2518_v3 = vpop.f32.mrb[11].mxu0  ;;  %v1523_v11 = vsel %vm1183_vm7, %v1522_v8, -inf }
 0x654   : > { %v1291_v4 = vpop.f32.mrb[12].mxu1 }
 0x655   : > { %v1297_v5 = vmul.f32 0.125, %v1291_v4  ;;  %v2493_v6 = vpop.f32.mrb[13].mxu1 }
 0x656   : > { %v1294_v7 = vpop.f32.mrb[14].mxu1 }
 0x657   : > { %v2494_v9 = vpop.f32.mrb[15].mxu1  ;;  %v1298_v10 = vsel %vm1183_vm7, %v1297_v5, -inf }
 0x658   : > { %1299 = vmax.xlane.f32.xlu0 %v1298_v10 }
 0x65c   : > { %1524 = vmax.xlane.f32.xlu0 %v1523_v11  ;;  %v2346_v11 = vld [vmem:[%s3312_s24] ss:$0 sm:$0xff] }
 0x660   : > { %1420 = vadd.xlane.f32.xlu0 %v1419_v13 }
 0x6e5   : > { %v1300_v14 = vpop.xlane.xlu0 %1299 }
 0x6e6   : > { %v1301_v15 = vsub.f32 %v1297_v5, %v1300_v14 }
 0x6e8   : > { %v1302_v16 = vmul.f32 1.442695, %v1301_v15 }
 0x6e9   : > { %v1525_v17 = vpop.xlane.xlu0 %1524 }
 0x6ea   : > { %2670 = vpow2.f32 %v1302_v16  ;;  %v1526_v18 = vsub.f32 %v1522_v8, %v1525_v17  ;;  %v2622_v16 = vld [vmem:[%s2993_s6] ss:$8 sps:$4 sm:$0xff]   ;;  %v2624_v17 = vld [vmem:[%s2993_s6 + $0x4] ss:$8 sps:$4 sm:$0xff]  }
 0x6ec   : > { %v1527_v20 = vmul.f32 1.442695, %v1526_v18  ;;  %v2627_v18 = vld [vmem:[%s2993_s6 + $0x14] ss:$8 sps:$4 sm:$0xff]  }
 0x6ed   : > { %v1421_v28 = vpop.xlane.xlu0 %1420 }
 0x6ee   : > { %2672 = vpow2.f32 %v1527_v20  ;;  %v2625_v20 = vld [vmem:[%s2993_s6 + $0x10] ss:$8 sps:$4 sm:$0xff]  }
 0x6f4   : > { %v2671_v21 = vpop.eup %2670 }
 0x6f5   : > { %v1304_v24 = vsel %vm1183_vm7, %v2671_v21, 0.0 }
 0x6f6   : > { %1305 = vadd.xlane.f32.xlu0 %v1304_v24 }
 0x6f8   : > { %v2673_v25 = vpop.eup %2672 }
 0x6f9   : > { %v1529_v26 = vsel %vm1183_vm7, %v2673_v25, 0.0 }
 0x6fa   : > { %1530 = vadd.xlane.f32.xlu1 %v1529_v26 }
 0x70b   : > { %1535 = vrot.lane.b32.xlu1 %v1425_v27, %s2767_s26 }
 0x70c   : > { %1311 = vrot.lane.b32.xlu0 %v3109_v23, %s2767_s26  ;;  %v1430_v23 = vsel %vm1201_vm6, %v1425_v27, 0 }
 0x783   : > { %v1306_v29 = vpop.xlane.xlu0 %1305 }
 0x784   : > { %2674 = vrcp.f32 %v1306_v29  ;;  %v2631_v29 = vld [vmem:[%s2993_s6 + $0x30] ss:$8 sps:$4 sm:$0xff]  }
 0x785   : > { %2676 = vrcp.f32 %v1421_v28  ;;  %v2633_v28 = vld [vmem:[%s2993_s6 + $0x34] ss:$8 sps:$4 sm:$0xff]  }
 0x787   : > { %v1312_v30 = vpop.permute.xlu0 %1311  ;;  %v1531_v32 = vpop.xlane.xlu1 %1530 }
 0x788   : > { %v1317_v31 = vsel %vm1201_vm6, %v1312_v30, 0  ;;  %2678 = vrcp.f32 %v1531_v32  ;;  %v2636_v30 = vld [vmem:[%s2993_s6 + $0x44] ss:$8 sps:$4 sm:$0xff]   ;;  %v2639_v32 = vld [vmem:[%s2993_s6 + $0x54] ss:$8 sps:$4 sm:$0xff]  }
 0x789   : > { %2496 = vmatpush3.bf16.msra.mxu1 %v1317_v31  ;;  %v2634_v31 = vld [vmem:[%s2993_s6 + $0x40] ss:$8 sps:$4 sm:$0xff]  }
 0x78a   : > { %2507 = vmatprep.subr.bf16.mxu1 %v2764_v22 }
 0x78b   : > { %v1536_v38 = vpop.permute.xlu1 %1535 }
 0x78c   : > { %v1541_v41 = vsel %vm1201_vm6, %v1536_v38, 0 }
 0x78e   : > { %v2675_v33 = vpop.eup %2674 }
 0x78f   : > { %v1308_v34 = vmul.f32 %v2675_v33, %v2671_v21  ;;  %v2677_v36 = vpop.eup %2676  ;;  %v2630_v21 = vld [vmem:[%s2993_s6 + $0x24] ss:$8 sps:$4 sm:$0xff]   ;;  %v2637_v33 = vld [vmem:[%s2993_s6 + $0x50] ss:$8 sps:$4 sm:$0xff]  }
 0x790   : > { %v1423_v37 = vmul.f32 %v2677_v36, %v2669_v12  ;;  %v2645_v36 = vld [vmem:[%s2993_s6 + $0x74] ss:$8 sps:$4 sm:$0xff]  }
 0x791   : > { %v1309_v35 = vpack.c.bf16 %v1308_v34, %v1308_v34  ;;  %v2642_v34 = vld [vmem:[%s2993_s6 + $0x64] ss:$8 sps:$4 sm:$0xff]  }
 0x792   : > { %v1424_v39 = vpack.c.bf16 %v1423_v37, %v1423_v37  ;;  %v2679_v40 = vpop.eup %2678 }
 0x793   : > { %2498 = vmatmul.mubr.msk.bf16.vlgmr.msra.gmra.mrb[16].mxu1 %vm1197_vm8, %v1309_v35  ;;  %v1533_v42 = vmul.f32 %v2679_v40, %v2673_v25  ;;  %v2640_v35 = vld [vmem:[%s2993_s6 + $0x60] ss:$8 sps:$4 sm:$0xff]  }
 0x794   : > { %2508 = vmatpush3.bf16.msra.mxu1 %v1430_v23  ;;  %2509 = vmatprep.mubr.msk.bf16.mxu1 %vm2766_vm4, %v2764_v22  ;;  %v2643_v23 = vld [vmem:[%s2993_s6 + $0x70] ss:$8 sps:$4 sm:$0xff]  }
 0x795   : > { %2519 = vmatprep.subr.bf16.mxu1 %v2764_v22  ;;  %v1534_v43 = vpack.c.bf16 %v1533_v42, %v1533_v42 }
 0x79b   : > { %2510 = vmatmul.mubr.msk.bf16.vlgmr.msra.gmra.mrb[20].mxu1 %vm1197_vm8, %v1424_v39 }
 0x79c   : > { %2520 = vmatpush3.bf16.msra.mxu1 %v1541_v41  ;;  %2521 = vmatprep.mubr.msk.bf16.mxu1 %vm2766_vm4, %v2764_v22  ;;  %v2347_v41 = vld [vmem:[%s744_s21] ss:$0 sm:$0xff] }
 0x79d   : > { %1842 = vmatprep.subr.bf16.mxu1 %v2624_v17 }
 0x7a3   : > { %2522 = vmatmul.mubr.msk.bf16.vlgmr.msra.gmra.mrb[24].mxu1 %vm1197_vm8, %v1534_v43  ;;  %v2348_v43 = vld [vmem:[%s3313_s19] ss:$0 sm:$0xff] }
 0x7a4   : > { %1874 = vmatprep.mubr.bf16.mxu1 %v2765_v44  ;;  %v2619_v44 = vld [vmem:[%s2965_s2 + $0x28] sm:$0xff]   ;;  %1843 = vmatpush1.bf16.msra.mxu1 %v2622_v16 }
 0x7a5   : > { %2536 = vmatpush3.bf16.msra.mxu0 %v2619_v44  ;;  %1844 = vmatprep.subr.bf16.mxu1 %v2627_v18  ;;  %v2648_v44 = vld [vmem:[%s3004_s4 + $0x48] sm:$0xff]  }
 0x7a6   : > { %2537 = vmatprep.subr.bf16.mxu0 %v2764_v22 }
 0x7a8   : > { %1845 = vmatpush1.bf16.msra.mxu1 %v2625_v20 }
 0x7a9   : > { %2538 = vmatpush3.bf16.msra.mxu0 %v2620_v54  ;;  %1846 = vmatprep.subr.bf16.mxu1 %v2630_v21  ;;  %v2653_v54 = vld [vmem:[%s3004_s4 + $0x18] sm:$0xff]  }
 0x7aa   : > { %2539 = vmatprep.subr.bf16.mxu0 %v2764_v22 }
 0x7ad   : > { %2540 = vmatpush3.bf16.msra.mxu0 %v2621_v57  ;;  %v2655_v57 = vld [vmem:[%s3004_s4 + $0x20] sm:$0xff]  }
 0x7ae   : > { %2429 = vmatprep.subr.bf16.mxu0 %v2646_v48  ;;  %v2384_v48 = vld [vmem:[#allocation4] ss:$0 sm:$0xff] (!%p2382_p10) }
 0x866   : > { %v1353_v50 = vpop.f32.mrb[16].mxu1 }
 0x867   : > { %v2499_v51 = vpop.f32.mrb[17].mxu1 }
 0x868   : > { %v1356_v52 = vpop.f32.mrb[18].mxu1  ;;  %v2650_v51 = vld [vmem:[%s3004_s4 + $0x50] sm:$0xff]  }
 0x869   : > { %v2500_v53 = vpop.f32.mrb[19].mxu1  ;;  %v2651_v52 = vld [vmem:[%s3004_s4 + $0x10] sm:$0xff]  }
 0x86a   : > { %v2652_v53 = vld [vmem:[%s3004_s4 + $0x58] sm:$0xff]  }
 0x86e   : > { %v1466_v55 = vpop.f32.mrb[20].mxu1 }
 0x86f   : > { %v2511_v58 = vpop.f32.mrb[21].mxu1 }
 0x870   : > { %v1469_v59 = vpop.f32.mrb[22].mxu1  ;;  %v2656_v58 = vld [vmem:[%s3004_s4 + $0x68] sm:$0xff]  }
 0x871   : > { %v2512_v60 = vpop.f32.mrb[23].mxu1  ;;  %v2657_v59 = vld [vmem:[%s3004_s4 + $0x28] sm:$0xff]  }
 0x872   : > { %v2658_v60 = vld [vmem:[%s3004_s4 + $0x70] sm:$0xff]  }
 0x876   : > { %v1577_v63 = vpop.f32.mrb[24].mxu1 }
 0x877   : > { %1584 = vrot.lane.b32.xlu1 %v1577_v63, %s2767_s26  ;;  %v2523_v1 = vpop.f32.mrb[25].mxu1  ;;  %v2659_v63 = vld [vmem:[%s3004_s4 + $0x30] sm:$0xff]  }
 0x878   : > { %v1580_v2 = vpop.f32.mrb[26].mxu1  ;;  %v2660_v1 = vld [vmem:[%s3004_s4 + $0x78] sm:$0xff]  }
 0x879   : > { %v2524_v3 = vpop.f32.mrb[27].mxu1  ;;  %v2661_v2 = vld [vmem:[%s3004_s4 + $0x38] sm:$0xff]  }
 0x87a   : > { %v1750_v3 = vld [vmem:[%s2999_s0] sm:$0x3] }
 0x87b   : > { %1360 = vrot.lane.b32.xlu1 %v1353_v50, %s2767_s26  ;;  %v2649_v50 = vld [vmem:[%s3004_s4 + $0x8] sm:$0xff]  }
 0x8e9   : > { %v1585_v4 = vpop.permute.xlu1 %1584 }
 0x8ea   : > { %v1587_v5 = vsel %vm1135_vm5, %v1466_v55, %v1585_v4  ;;  %v2654_v55 = vld [vmem:[%s3004_s4 + $0x60] sm:$0xff]   ;;  %v1755_v4 = vrot.slane %v1750_v3, %v911_v0 }
 0x8eb   : > { %v1589_v22 = vrot.slane %v1587_v5, 4  ;;  %v1759_v5 = vrot.slane %v1750_v3, %v915_v62 }
 0x8ed   : > { %v1361_v6 = vpop.permute.xlu1 %1360 }
 0x8ee   : > { %v1363_v7 = vsel %vm1135_vm5, %v3140_v56, %v1361_v6 }
 0x8ef   : > { %v1591_v8 = vsel %vm844_vm3, %v1363_v7, %v1589_v22 }
 0x8f0   : > { %v1608_v9 = vpack.c.bf16 %v1591_v8, %v1591_v8 }
 0x8f2   : > { %2542 = vmatmul.mubr.bf16.vlgmr.msra.gmra.mrb[12].mxu0 %v1608_v9 }
 0x8f3   : > { %2430 = vmatpush3.bf16.msra.mxu0 %v2647_v49 }
 0x8f4   : > { %2431 = vmatprep.subr.bf16.mxu0 %v2648_v44 }
 0x8f7   : > { %2432 = vmatpush3.bf16.msra.mxu0 %v2649_v50 }
 0x8f8   : > { %2433 = vmatprep.subr.bf16.mxu0 %v2650_v51 }
 0x8fb   : > { %2434 = vmatpush3.bf16.msra.mxu0 %v2651_v52 }
 0x8fc   : > { %2435 = vmatprep.subr.bf16.mxu0 %v2652_v53 }
 0x8ff   : > { %2436 = vmatpush3.bf16.msra.mxu0 %v2653_v54 }
 0x900   : > { %2437 = vmatprep.subr.bf16.mxu0 %v2654_v55 }
 0x903   : > { %2438 = vmatpush3.bf16.msra.mxu0 %v2655_v57 }
 0x904   : > { %2439 = vmatprep.subr.bf16.mxu0 %v2656_v58 }
 0x907   : > { %2440 = vmatpush3.bf16.msra.mxu0 %v2657_v59 }
 0x908   : > { %2441 = vmatprep.subr.bf16.mxu0 %v2658_v60 }
 0x90b   : > { %2442 = vmatpush3.bf16.msra.mxu0 %v2659_v63 }
 0x90c   : > { %2443 = vmatprep.subr.bf16.mxu0 %v2660_v1 }
 0x90f   : > { %2444 = vmatpush3.bf16.msra.mxu0 %v2661_v2 }
 0x9c5   : > { %v1691_v10 = vpop.f32.mrb[12].mxu0 }
 0x9c6   : > { %v1697_v12 = vadd.f32 %v1691_v10, %v3040_v19  ;;  %v2543_v13 = vpop.f32.mrb[13].mxu0  ;;  %v2628_v19 = vld [vmem:[%s2993_s6 + $0x20] ss:$8 sps:$4 sm:$0xff]  }
 0x9c7   : > { %v1694_v14 = vpop.f32.mrb[14].mxu0  ;;  %1847 = vmatpush1.bf16.msra.mxu1 %v2628_v19 }
 0x9c8   : > { %v3191_v15 = vadd.f32 %v2346_v11, %v1697_v12  ;;  %v2544_v56 = vpop.f32.mrb[15].mxu0  ;;  %1848 = vmatprep.subr.bf16.mxu1 %v2633_v28 }
 0x9ca   : > { %1708 = vadd.xlane.f32.xlu0 %v3191_v15 }
 0x9cb   : > { %1849 = vmatpush1.bf16.msra.mxu1 %v2631_v29 }
 0x9cc   : > { %1850 = vmatprep.subr.bf16.mxu1 %v2636_v30 }
 0x9cf   : > { %1851 = vmatpush1.bf16.msra.mxu1 %v2634_v31 }
 0x9d0   : > { %1852 = vmatprep.subr.bf16.mxu1 %v2639_v32 }
 0x9d3   : > { %1853 = vmatpush1.bf16.msra.mxu1 %v2637_v33 }
 0x9d4   : > { %1854 = vmatprep.subr.bf16.mxu1 %v2642_v34  ;;  %v2381_v34 = vld [vmem:[%s764_s22] ss:$0 sm:$0xff] }
 0x9d7   : > { %1855 = vmatpush1.bf16.msra.mxu1 %v2640_v35 }
 0x9d8   : > { %1856 = vmatprep.subr.bf16.mxu1 %v2645_v36 }
 0x9db   : > { %1857 = vmatpush1.bf16.msra.mxu1 %v2643_v23 }
 0xa57   : > { %v1709_v24 = vpop.xlane.xlu0 %1708 }
 0xa58   : > { %v1710_v25 = vmul.f32 0.0078125, %v1709_v24 }
 0xa5a   : > { %v1711_v26 = vsub.f32 %v3191_v15, %v1710_v25 }
 0xa5c   : > { %v1712_v27 = vmul.f32 %v1711_v26, %v1711_v26 }
 0xa5e   : > { %1713 = vadd.xlane.f32.xlu1 %v1712_v27 }
 0xaeb   : > { %v1714_v37 = vpop.xlane.xlu1 %1713 }
 0xaec   : > { %v1715_v38 = vmul.f32 0.0078125, %v1714_v37 }
 0xaee   : > { %v1716_v39 = vadd.f32 1e-05, %v1715_v38 }
 0xaf0   : > { %2680 = vrsqrt.f32 %v1716_v39 }
 0xafa   : > { %v2681_v40 = vpop.eup %2680 }
 0xafb   : > { %v1718_v42 = vmul.f32 %v2681_v40, %v1711_v26 }
 0xafd   : > { %v1725_v45 = vmul.f32 %v2347_v41, %v1718_v42 }
 0xaff   : > { %v1732_v46 = vadd.f32 %v2348_v43, %v1725_v45 }
 0xb01   : > { %v1749_v47 = vpack.c.bf16 %v1732_v46, %v1732_v46  ;;  %v2383_v46 = vld [vmem:[#allocation2] ss:$0 sm:$0xff] (!%p2382_p10) }
 0xb03   : > { %1875 = vmatmul.mubr.bf16.vlgmr.msra.gmra.mrb[28].mxu1 %v1749_v47 }
 0xbd6   : > { %v1876_v22 = vpop.f32.mrb[28].mxu1 }
 0xbd7   : > { %v1877_v6 = vadd.f32 %v1876_v22, %v1755_v4  ;;  %v1878_v7 = vpop.f32.mrb[29].mxu1 }
 0xbd8   : > { %v1879_v8 = vadd.f32 %v1878_v7, %v1759_v5  ;;  %v1880_v9 = vpop.f32.mrb[30].mxu1 }
 0xbd9   : > { %v1883_v10 = vmul.f32 %v1877_v6, %v1877_v6  ;;  %v1881_v11 = vpop.f32.mrb[31].mxu1 }
 0xbda   : > { %v1884_v12 = vmul.f32 %v1879_v8, %v1879_v8 }
 0xbdb   : > { %v1885_v13 = vmul.f32 %v1883_v10, %v1877_v6 }
 0xbdc   : > { %v1886_v14 = vmul.f32 %v1884_v12, %v1879_v8 }
 0xbdd   : > { %v1887_v56 = vmul.f32 0.044715, %v1885_v13 }
 0xbde   : > { %v1888_v16 = vmul.f32 0.044715, %v1886_v14 }
 0xbdf   : > { %v1889_v17 = vadd.f32 %v1887_v56, %v1877_v6 }
 0xbe0   : > { %v1890_v18 = vadd.f32 %v1888_v16, %v1879_v8 }
 0xbe1   : > { %v1891_v20 = vmul.f32 0.7978846, %v1889_v17 }
 0xbe2   : > { %v1892_v21 = vmul.f32 0.7978846, %v1890_v18 }
 0xbe3   : > { %2682 = vtanh.f32 %v1891_v20 }
 0xbe4   : > { %2684 = vtanh.f32 %v1892_v21 }
 0xbed   : > { %v2683_v61 = vpop.eup %2682 }
 0xbee   : > { %v2685_v62 = vpop.eup %2684  ;;  %v1895_v0 = vadd.f32 1.0, %v2683_v61 }
 0xbef   : > { %v1896_v19 = vadd.f32 1.0, %v2685_v62 }
 0xbf0   : > { %v1897_v24 = vmul.f32 0.5, %v1895_v0 }
 0xbf1   : > { %v1898_v25 = vmul.f32 0.5, %v1896_v19 }
 0xbf2   : > { %v1899_v26 = vmul.f32 %v1897_v24, %v1877_v6 }
 0xbf3   : > { %v1900_v27 = vmul.f32 %v1898_v25, %v1879_v8 }
 0xbf4   : > { %v1933_v29 = vpack.c.bf16 %v1899_v26, %v1899_v26 }
 0xbf5   : > { %v1934_v28 = vpack.c.bf16 %v1900_v27, %v1900_v27 }
 0xbf7   : > { %2063 = vmatprep.mubr.bf16.mxu0 %v1934_v28 }
 0xbf8   : > { %2064 = vmatmul.mubr.bf16.vlgmr.msra.gmra.mrb[16].mxu0 %v1933_v29 }
 0xccb   : > { %v2445_v30 = vpop.f32.mrb[16].mxu0  ;;  %2083 = sbr.rel (%p2382_p10) target bundleno = 3595 (0xe0b), region = 108 }
 0xccc   : > { %v2446_v31 = vpop.f32.mrb[17].mxu0 }
 0xccd   : > { %v2447_v32 = vadd.f32 %v2446_v31, %v2445_v30  ;;  %v2448_v33 = vpop.f32.mrb[18].mxu0 }
 0xcce   : > { %v2449_v35 = vpop.f32.mrb[19].mxu0 }
 0xccf   : > { %v2071_v36 = vadd.f32 %v2447_v32, %v3191_v15 }
 0xcd1   : > { %v2079_v23 = vadd.f32 %v2381_v34, %v2071_v36 }
 0xcd3   : > { %2086 = vadd.xlane.f32.xlu0 %v2079_v23 }
 0xd60   : > { %v2087_v37 = vpop.xlane.xlu0 %2086 }
 0xd61   : > { %v2088_v38 = vmul.f32 0.0078125, %v2087_v37 }
 0xd63   : > { %v2089_v39 = vsub.f32 %v2079_v23, %v2088_v38 }
 0xd65   : > { %v2090_v40 = vmul.f32 %v2089_v39, %v2089_v39 }
 0xd67   : > { %2091 = vadd.xlane.f32.xlu0 %v2090_v40 }
 0xdf4   : > { %v2092_v41 = vpop.xlane.xlu0 %2091 }
 0xdf5   : > { %v2093_v42 = vmul.f32 0.0078125, %v2092_v41 }
 0xdf7   : > { %v2094_v43 = vadd.f32 1e-05, %v2093_v42 }
 0xdf9   : > { %2686 = vrsqrt.f32 %v2094_v43 }
 0xe03   : > { %v2687_v45 = vpop.eup %2686 }
 0xe04   : > { %v2096_v47 = vmul.f32 %v2687_v45, %v2089_v39 }
 0xe06   : > { %v2103_v49 = vmul.f32 %v2383_v46, %v2096_v47 }
 0xe08   : > { %v2110_v15 = vadd.f32 %v2384_v48, %v2103_v49 }
 0xe0a   : > { %2111 = vst [vmem:[%s3277_s18] sm:$0xff] %v2110_v15  }
 0xe0b PF: > { %p2386_p11 = scmp.ge.s32.totalorder %s2869_s28, 1 }
 0xe0c   : > { %2117 = vst [vmem:[%s3277_s18] sm:$0xff] (!%p2386_p11), %v2079_v23  }
 0xe0d   : > { %2116 = sbr.rel (%p2386_p11) target bundleno = 3604 (0xe14), region = 112 }
 0xe14 PF: > { %s3314_s1 = sld [smem:[#allocation8_spill]] }
 0xe1a   : > { %s30_s27 = sadd.s32 1, %s3314_s1  }
 0xe1b   : > { %p27_p12 = scmp.ge.s32.totalorder %s30_s27, 4  }
 0xe1d   :  { %29 = sbr.rel (!%p27_p12) target bundleno = 12 (0xc), region = 174 }
 0xe24   :  { %2130 = vsyncpa [#allocation3], 1 }
 0xe25   :  { %2132 = vsyncpa [#allocation3 + $0x1], 1 }
 0xe26   :  { %2133 = vsyncpa [#allocation5], 1 }

// kernel: _lambda_.5
= control target key start
LH: loop header
LB: loop body
LE: loop exit
PB: predicated region body
PF: predicated region fallthrough
CT: control target
= control target key end

     0   :  { %s3618_s0 = inlined_call_operand.vmem [shape: f32[2,4,128], index: 0, kind: input, shape index: {}]   ;;  %s3619_s1 = inlined_call_operand.vmem [shape: f32[2,8,128], index: 1, kind: input, shape index: {}]   ;;  %s3620_s2 = inlined_call_operand.vmem [shape: f32[2,1,128], index: 2, kind: input, shape index: {}]   ;;  %s3621_s3 = inlined_call_operand.vmem [shape: f32[2,1,128], index: 3, kind: input, shape index: {}]   ;;  %s3622_s4 = inlined_call_operand.vmem [shape: f32[2,1,128], index: 4, kind: input, shape index: {}]   ;;  %s3623_s5 = inlined_call_operand.vmem [shape: f32[2,1,128], index: 5, kind: input, shape index: {}]   ;;  %s3624_s6 = inlined_call_operand.vmem [shape: bf16[2,128,128], index: 6, kind: input, shape index: {}]   ;;  %s3625_s7 = inlined_call_operand.vmem [shape: f32[2,1,128], index: 7, kind: input, shape index: {}]   ;;  %s3626_s8 = inlined_call_operand.vmem [shape: bf16[2,128,256], index: 8, kind: input, shape index: {}]   ;;  %s3627_s9 = inlined_call_operand.vmem [shape: f32[2,1,256], index: 9, kind: input, shape index: {}]   ;;  %s3628_s10 = inlined_call_operand.vmem [shape: bf16[2,128,128], index: 10, kind: input, shape index: {}]   ;;  %s3629_s11 = inlined_call_operand.vmem [shape: f32[2,1,128], index: 11, kind: input, shape index: {}]   ;;  %s3630_s12 = inlined_call_operand.vmem [shape: f32[2,1,128], index: 12, kind: input, shape index: {}]   ;;  %s3631_s13 = inlined_call_operand.vmem [shape: f32[2,1,128], index: 13, kind: input, shape index: {}]   ;;  %s3632_s14 = inlined_call_operand.vmem [shape: bf16[2,128,256], index: 14, kind: input, shape index: {}]   ;;  %s3633_s15 = inlined_call_operand.vmem [shape: f32[2,1,256], index: 15, kind: input, shape index: {}]   ;;  %s3634_s16 = inlined_call_operand.vmem [shape: bf16[2,256,128], index: 16, kind: input, shape index: {}]   ;;  %s3635_s17 = inlined_call_operand.vmem [shape: f32[2,1,128], index: 17, kind: input, shape index: {}]   ;;  %s3636_s18 = inlined_call_operand.vmem [shape: bf16[128,8], index: 18, kind: input, shape index: {}]   ;;  %s3637_s19 = inlined_call_operand.vmem [shape: f32[1,8], index: 19, kind: input, shape index: {}]   ;;  %s3638_s20 = inlined_call_operand.hbm [shape: f32[2,8], index: 20, kind: output, shape index: {0}]   ;;  %s3639_s21 = inlined_call_operand.hbm [shape: f32[2,2,4,8], index: 21, kind: output, shape index: {1}]  }
   0x1   :  { %3649 = sst [smem:[#allocation11_spill]] %s3618_s0 }
   0x2   :  { %3650 = sst [smem:[#allocation12_spill]] %s3619_s1 }
   0x3   :  { %3651 = sst [smem:[#allocation13_spill]] %s3620_s2 }
   0x4   :  { %3652 = sst [smem:[#allocation14_spill]] %s3621_s3 }
   0x5   :  { %3653 = sst [smem:[#allocation15_spill]] %s3622_s4 }
   0x6   :  { %3654 = sst [smem:[#allocation16_spill]] %s3623_s5 }
   0x7   :  { %3655 = sst [smem:[#allocation17_spill]] %s3624_s6 }
   0x8   :  { %3656 = sst [smem:[#allocation18_spill]] %s3626_s8 }
   0x9   :  { %3657 = sst [smem:[#allocation19_spill]] %s3627_s9 }
   0xa   :  { %3658 = sst [smem:[#allocation20_spill]] %s3635_s17 }
   0xb   :  { %3659 = sst [smem:[#allocation21_spill]] %s3636_s18 }
   0xc   :  { %3660 = sst [smem:[#allocation22_spill]] %s3637_s19 }
   0xd   :  { %3661 = sst [smem:[#allocation23_spill]] %s3638_s20 }
   0xe   :  { %3662 = sst [smem:[#allocation24_spill]] %s3639_s21 }
   0xf   :  { %27 = vsyncpa [#allocation4], 0 }
  0x10   :  { %28 = vsyncpa [#allocation6], 0  ;;  %s3177_s2 = smov 0  }
  0x11 LB: > { %3663 = sst [smem:[#allocation9_spill]] %s3056_s2  ;;  %s3183_s25 = sadd.s32 4294967295, %s3056_s2   ;;  %s3056_s2 = sphi %s3177_s2, %s34_s2  }
  0x12   : > { %3664 = sst [smem:[#allocation10_spill]] %s3183_s25  ;;  %p2550_p0 = scmp.ge.s32.totalorder %s3056_s2, 1 }
  0x13   : > { %p712_p1 = scmp.lt.s32.totalorder %s3056_s2, 3 }
  0x15   : > { %p713_p2 = pnand %p2550_p0, %p712_p1 }
  0x16   : > { %p822_p3 = scmp.lt.s32.totalorder (!%p713_p2), %s3183_s25, 1  ;;  %s3669_s6 = sld [smem:[#allocation17_spill]] (!%p713_p2) }
  0x17   : > { %716 = sbr.rel (%p713_p2) target bundleno = 4714 (0x126a), region = 100  ;;  %s3670_s8 = sld [smem:[#allocation18_spill]] (!%p713_p2) }
  0x18   : > { %s3671_s9 = sld [smem:[#allocation19_spill]] (!%p713_p2)  ;;  %s3672_s4 = sld [smem:[#allocation20_spill]] (!%p713_p2) }
  0x19   : > { %s3673_s30 = sld [smem:[#allocation10_spill]] (!%p713_p2) }
  0x1e   : > { %s3189_s26 = scalar_select %p822_p3, %s3183_s25, 1 }
  0x1f   : > { %p2563_p4 = scmp.ne.s32.totalorder %s3673_s30, 0 }
  0x20   : > { %s2667_s20 = sshll.u32 %s3189_s26, 6  ;;  %s2668_s0 = sshll.u32 %s3189_s26, 7  ;;  %vm893_vm0 = vcmask (!%p2563_p4), 1043456  }
  0x21   : > { %s3215_s29 = scalar_lea.vmem %s3669_s6, %s2667_s20  ;;  %s3221_s22 = scalar_lea.vmem %s3670_s8, %s2668_s0 }
  0x22   : > { %s2555_s23 = sshll.u32 %s3189_s26, 1  ;;  %s3232_s19 = scalar_lea.vmem %s3628_s10, %s2667_s20 }
  0x23   : > { %s3227_s2 = scalar_lea.vmem %s3671_s9, %s2555_s23  ;;  %s3249_s8 = scalar_lea.vmem %s3632_s14, %s2668_s0 }
  0x24   : > { %s3254_s18 = scalar_lea.vmem %s3633_s15, %s2555_s23  ;;  %s3259_s25 = scalar_lea.vmem %s3634_s16, %s2668_s0 }
  0x25   : > { %s881_s24 = scalar_lea.vmem %s3672_s4, %s3189_s26  ;;  %886 = sbr.rel (%p2563_p4) target bundleno = 49 (0x31), region = 104 }
  0x26   : > { %s3674_s6 = sld [smem:[#allocation11_spill]] (!%p2563_p4) }
  0x2c   : > { %v887_v0 = vld [vmem:[%s3674_s6] sm:$0xf]  ;;  %v2564_v1 = vld [vmem:[%s3674_s6 + $0x4] sm:$0xf] }
  0x2d   : > { %v891_v2 = vrot.slane %v2564_v1, 4 }
  0x2f   : > { %v894_v3 = vsel %vm893_vm0, %v887_v0, %v891_v2 }
  0x30   : > { %895 = vst [vmem:[#allocation2] sm:$0xff] %v894_v3 }
  0x31 PF: > { %s3675_s20 = sld [smem:[#allocation12_spill]]  ;;  %v2874_v7 = vld [vmem:[%s3221_s22 + $0x4] ss:$8 sps:$4 sm:$0xff]   ;;  %v2877_v9 = vld [vmem:[%s3221_s22] ss:$8 sps:$4 sm:$0xff]   ;;  %v3058_v10 = vmov 0.0  }
  0x32   : > { %v2876_v8 = vld [vmem:[%s3215_s29] sm:$0xff]   ;;  %2737 = vmatprep.subr.bf16.mxu0 %v3058_v10  ;;  %v2878_v11 = vld [vmem:[%s3221_s22 + $0x14] ss:$8 sps:$4 sm:$0xff]   ;;  %1189 = vmatprep.subr.bf16.mxu1 %v2874_v7  ;;  %v2880_v24 = vld [vmem:[%s3215_s29 + $0x8] sm:$0xff]   ;;  %vm3059_vm1 = vmmov 0   ;;  %v3060_v36 = vmov 0  }
  0x33   : > { %2738 = vmatpush3.bf16.msra.mxu0 %v2876_v8  ;;  %1190 = vmatpush1.bf16.msra.mxu1 %v2877_v9  ;;  %v2881_v25 = vld [vmem:[%s3221_s22 + $0x10] ss:$8 sps:$4 sm:$0xff]   ;;  %v2882_v26 = vld [vmem:[%s3221_s22 + $0x24] ss:$8 sps:$4 sm:$0xff]   ;;  %v2885_v28 = vld [vmem:[%s3221_s22 + $0x20] ss:$8 sps:$4 sm:$0xff]   ;;  %v1099_v9 = vlaneseq }
  0x34   : > { %2739 = vmatprep.subr.bf16.mxu0 %v3058_v10  ;;  %1191 = vmatprep.subr.bf16.mxu1 %v2878_v11  ;;  %v2884_v27 = vld [vmem:[%s3215_s29 + $0x10] sm:$0xff]   ;;  %v2888_v30 = vld [vmem:[%s3215_s29 + $0x18] sm:$0xff]   ;;  %v2890_v32 = vld [vmem:[%s3221_s22 + $0x44] ss:$8 sps:$4 sm:$0xff]   ;;  %s3678_s30 = sld [smem:[#allocation13_spill]]  ;;  %s3680_s0 = sld [smem:[#allocation16_spill]] }
  0x35   : > { %v2886_v29 = vld [vmem:[%s3221_s22 + $0x34] ss:$8 sps:$4 sm:$0xff]   ;;  %v2889_v31 = vld [vmem:[%s3221_s22 + $0x30] ss:$8 sps:$4 sm:$0xff]   ;;  %v2892_v33 = vld [vmem:[%s3215_s29 + $0x20] sm:$0xff]   ;;  %2753 = vmatprep.mubr.msk.bf16.mxu0 %vm3059_vm1, %v3058_v10  ;;  %1221 = vmatprep.mubr.bf16.mxu1 %v3060_v36  ;;  %s3682_s9 = sld [smem:[#allocation14_spill]] }
  0x36   : > { %v2893_v34 = vld [vmem:[%s3221_s22 + $0x40] ss:$8 sps:$4 sm:$0xff]   ;;  %v2894_v35 = vld [vmem:[%s3221_s22 + $0x54] ss:$8 sps:$4 sm:$0xff]   ;;  %v2897_v38 = vld [vmem:[%s3221_s22 + $0x50] ss:$8 sps:$4 sm:$0xff]  }
  0x37   : > { %v897_v4 = vld [vmem:[%s3675_s20] sm:$0xff]  ;;  %v2565_v5 = vld [vmem:[%s3675_s20 + $0x8] sm:$0xff]  ;;  %2740 = vmatpush3.bf16.msra.mxu0 %v2880_v24  ;;  %1192 = vmatpush1.bf16.msra.mxu1 %v2881_v25  ;;  %v2900_v40 = vld [vmem:[%s3215_s29 + $0x30] sm:$0xff]   ;;  %v3355_v11 = vshrl.u32 %v1099_v9, 7  ;;  %vm1234_vm2 = vcmask 523264   ;;  %vm1282_vm3 = vcmask 60416  }
  0x38   : > { %v3278_v6 = vld [vmem:[#allocation2] sm:$0xff]  ;;  %930 = vadd.xlane.f32.xlu0 %v897_v4  ;;  %2741 = vmatprep.subr.bf16.mxu0 %v3058_v10  ;;  %v2896_v37 = vld [vmem:[%s3215_s29 + $0x28] sm:$0xff]   ;;  %v2902_v42 = vld [vmem:[%s3221_s22 + $0x74] ss:$8 sps:$4 sm:$0xff]   ;;  %s3685_s21 = sld [smem:[#allocation10_spill]] }
  0x39   : > { %902 = vadd.xlane.f32.xlu1 %v3278_v6  ;;  %1193 = vmatprep.subr.bf16.mxu1 %v2882_v26  ;;  %v2898_v39 = vld [vmem:[%s3221_s22 + $0x64] ss:$8 sps:$4 sm:$0xff]   ;;  %v2901_v41 = vld [vmem:[%s3221_s22 + $0x60] ss:$8 sps:$4 sm:$0xff]   ;;  %v2904_v43 = vld [vmem:[%s3215_s29 + $0x38] sm:$0xff]  }
  0x3a   : > { %v2905_v44 = vld [vmem:[%s3221_s22 + $0x70] ss:$8 sps:$4 sm:$0xff]   ;;  %s3676_s22 = sld [smem:[#allocation15_spill]]  ;;  %s3679_s1 = scalar_lea.vmem %s3678_s30, %s3189_s26 }
  0x3b   : > { %2742 = vmatpush3.bf16.msra.mxu0 %v2884_v27  ;;  %1194 = vmatpush1.bf16.msra.mxu1 %v2885_v28  ;;  %v2566_v59 = vld [vmem:[%s3679_s1] ss:$0 sm:$0xff]  ;;  %s3681_s23 = scalar_lea.vmem %s3680_s0, %s3189_s26  ;;  %s3683_s29 = scalar_lea.vmem %s3682_s9, %s3189_s26 }
  0x3c   : > { %932 = vadd.xlane.f32.xlu0 %v2565_v5  ;;  %2743 = vmatprep.subr.bf16.mxu0 %v3058_v10  ;;  %v2569_v63 = vld [vmem:[%s3681_s23] ss:$0 sm:$0xff] }
  0x3d   : > { %1195 = vmatprep.subr.bf16.mxu1 %v2886_v29  ;;  %v2567_v0 = vld [vmem:[%s3683_s29] ss:$0 sm:$0xff] }
  0x3e   : > { %p2596_p5 = scmp.ne.s32.totalorder %s3685_s21, 1 }
  0x3f   : > { %2744 = vmatpush3.bf16.msra.mxu0 %v2888_v30  ;;  %1196 = vmatpush1.bf16.msra.mxu1 %v2889_v31 }
  0x40   : > { %2745 = vmatprep.subr.bf16.mxu0 %v3058_v10  ;;  %1197 = vmatprep.subr.bf16.mxu1 %v2890_v32  ;;  %s3677_s28 = scalar_lea.vmem %s3676_s22, %s3189_s26 }
  0x41   : > { %v2568_v56 = vld [vmem:[%s3677_s28] ss:$0 sm:$0xff]  ;;  %s3684_s28 = scalar_lea.vmem %s3625_s7, %s3189_s26 }
  0x42   : > { %v2570_v28 = vld [vmem:[%s3684_s28] ss:$0 sm:$0xff] }
  0x43   : > { %2746 = vmatpush3.bf16.msra.mxu0 %v2892_v33  ;;  %1198 = vmatpush1.bf16.msra.mxu1 %v2893_v34 }
  0x44   : > { %2747 = vmatprep.subr.bf16.mxu0 %v3058_v10  ;;  %1199 = vmatprep.subr.bf16.mxu1 %v2894_v35 }
  0x47   : > { %2748 = vmatpush3.bf16.msra.mxu0 %v2896_v37  ;;  %1200 = vmatpush1.bf16.msra.mxu1 %v2897_v38 }
  0x48   : > { %2749 = vmatprep.subr.bf16.mxu0 %v3058_v10  ;;  %1201 = vmatprep.subr.bf16.mxu1 %v2898_v39 }
  0x4b   : > { %2750 = vmatpush3.bf16.msra.mxu0 %v2900_v40  ;;  %1202 = vmatpush1.bf16.msra.mxu1 %v2901_v41 }
  0x4c   : > { %2751 = vmatprep.subr.bf16.mxu0 %v3058_v10  ;;  %1203 = vmatprep.subr.bf16.mxu1 %v2902_v42 }
  0x4f   : > { %2752 = vmatpush3.bf16.msra.mxu0 %v2904_v43  ;;  %1204 = vmatpush1.bf16.msra.mxu1 %v2905_v44 }
  0x50   : > { %2757 = vmatprep.subr.bf16.mxu1 %v3058_v10 }
  0xc5   : > { %v931_v12 = vpop.xlane.xlu0 %930 }
  0xc6   : > { %v903_v13 = vpop.xlane.xlu1 %902  ;;  %v934_v14 = vmul.f32 0.0078125, %v931_v12  ;;  %v1097_v12 = vld [vmem:[%s3227_s2] sm:$0x3] }
  0xc7   : > { %v905_v15 = vmul.f32 0.0078125, %v903_v13  ;;  %v1105_v13 = vsub.s32 1, %v3355_v11 }
  0xc8   : > { %v3287_v16 = vsub.f32 %v897_v4, %v934_v14 }
  0xc9   : > { %v3290_v17 = vsub.f32 %v3278_v6, %v905_v15  ;;  %v933_v18 = vpop.xlane.xlu0 %932  ;;  %v1106_v14 = vrot.slane %v1097_v12, %v1105_v13  ;;  %v1101_v15 = vsub.s32 0, %v3355_v11 }
  0xca   : > { %v935_v19 = vmul.f32 0.0078125, %v933_v18  ;;  %v938_v20 = vmul.f32 %v3287_v16, %v3287_v16 }
  0xcb   : > { %v907_v22 = vmul.f32 %v3290_v17, %v3290_v17 }
  0xcc   : > { %v3294_v21 = vsub.f32 %v2565_v5, %v935_v19  ;;  %940 = vadd.xlane.f32.xlu1 %v938_v20 }
  0xce   : > { %v939_v23 = vmul.f32 %v3294_v21, %v3294_v21 }
  0xd0   : > { %942 = vadd.xlane.f32.xlu0 %v939_v23  ;;  %908 = vadd.xlane.f32.xlu1 %v907_v22 }
 0x159   : > { %v941_v45 = vpop.xlane.xlu1 %940 }
 0x15a   : > { %v944_v46 = vmul.f32 0.0078125, %v941_v45 }
 0x15c   : > { %v946_v47 = vadd.f32 1e-05, %v944_v46 }
 0x15d   : > { %v943_v48 = vpop.xlane.xlu0 %942  ;;  %v909_v49 = vpop.xlane.xlu1 %908 }
 0x15e   : > { %2906 = vrsqrt.f32 %v946_v47  ;;  %v945_v50 = vmul.f32 0.0078125, %v943_v48  ;;  %v910_v51 = vmul.f32 0.0078125, %v909_v49 }
 0x160   : > { %v947_v52 = vadd.f32 1e-05, %v945_v50  ;;  %v911_v53 = vadd.f32 1e-05, %v910_v51 }
 0x162   : > { %2908 = vrsqrt.f32 %v947_v52 }
 0x163   : > { %2910 = vrsqrt.f32 %v911_v53 }
 0x168   : > { %v2907_v54 = vpop.eup %2906 }
 0x169   : > { %v950_v55 = vmul.f32 %v2907_v54, %v3287_v16  ;;  %v1102_v16 = vrot.slane %v1097_v12, %v1101_v15 }
 0x16b   : > { %v958_v61 = vmul.f32 %v2568_v56, %v950_v55 }
 0x16c   : > { %v2909_v57 = vpop.eup %2908 }
 0x16d   : > { %v2911_v58 = vpop.eup %2910  ;;  %v951_v60 = vmul.f32 %v2909_v57, %v3294_v21  ;;  %v966_v3 = vadd.f32 %v2569_v63, %v958_v61 }
 0x16e   : > { %v913_v62 = vmul.f32 %v2911_v58, %v3290_v17 }
 0x16f   : > { %v959_v1 = vmul.f32 %v2568_v56, %v951_v60 }
 0x170   : > { %v920_v2 = vmul.f32 %v2566_v59, %v913_v62 }
 0x171   : > { %v967_v4 = vadd.f32 %v2569_v63, %v959_v1 }
 0x172   : > { %v927_v5 = vadd.f32 %v2567_v0, %v920_v2 }
 0x173   : > { %v1096_v7 = vpack.c.bf16 %v967_v4, %v966_v3 }
 0x174   : > { %v984_v8 = vpack.c.bf16 %v927_v5, %v927_v5 }
 0x175   : > { %1222 = vmatmul.mubr.bf16.vlgmr.msra.gmra.mrb[0].mxu1 %v1096_v7 }
 0x176   : > { %2754 = vmatmul.mubr.bf16.vlgmr.msra.gmra.mrb[0].mxu0 %v984_v8  ;;  %2759 = vmatprep.mubr.msk.bf16.mxu1 %vm3059_vm1, %v3058_v10 }
 0x248   : > { %v1223_v17 = vpop.f32.mrb[0].mxu1 }
 0x249   : > { %v1074_v18 = vpop.f32.mrb[0].mxu0  ;;  %v1224_v19 = vadd.f32 %v1223_v17, %v1102_v16  ;;  %v1225_v20 = vpop.f32.mrb[1].mxu1 }
 0x24a   : > { %v2755_v21 = vpop.f32.mrb[1].mxu0  ;;  %v1226_v22 = vadd.f32 %v1225_v20, %v1106_v14  ;;  %v1227_v23 = vpop.f32.mrb[2].mxu1  ;;  %v1075_v32 = vadd.f32 %v2570_v28, %v1074_v18 }
 0x24b   : > { %v1233_v24 = vpack.c.bf16 %v1224_v19, %v1224_v19  ;;  %v1077_v25 = vpop.f32.mrb[2].mxu0  ;;  %v3364_v26 = vadd.f32 %v1227_v23, %v1102_v16  ;;  %v1229_v27 = vpop.f32.mrb[3].mxu1 }
 0x24c   : > { %v2756_v29 = vpop.f32.mrb[3].mxu0  ;;  %v3371_v30 = vadd.f32 %v1229_v27, %v1106_v14  ;;  %v3374_v33 = vpack.c.bf16 %v1075_v32, %v1075_v32 }
 0x24d   : > { %v1239_v31 = vsel %vm1234_vm2, %v1233_v24, 0 }
 0x24e   : > { %2758 = vmatpush3.bf16.xpose.msra.mxu1 %v1239_v31 }
 0x255   : > { %2760 = vmatmul.mubr.msk.bf16.vlgmr.msra.gmra.mrb[4].mxu1 %vm1234_vm2, %v3374_v33 }
 0x328   : > { %v1275_v34 = vpop.f32.mrb[4].mxu1 }
 0x329   : > { %v1281_v35 = vmul.f32 0.125, %v1275_v34  ;;  %v2761_v37 = vpop.f32.mrb[5].mxu1 }
 0x32a   : > { %v1278_v38 = vpop.f32.mrb[6].mxu1 }
 0x32b   : > { %v2762_v39 = vpop.f32.mrb[7].mxu1  ;;  %v1283_v40 = vsel %vm1282_vm3, %v1281_v35, -inf }
 0x32c   : > { %1284 = vmax.xlane.f32.xlu0 %v1283_v40 }
 0x3b9   : > { %v1285_v41 = vpop.xlane.xlu0 %1284 }
 0x3ba   : > { %v1286_v42 = vsub.f32 %v1281_v35, %v1285_v41 }
 0x3bc   : > { %v1287_v43 = vmul.f32 1.442695, %v1286_v42 }
 0x3be   : > { %2912 = vpow2.f32 %v1287_v43 }
 0x3c8   : > { %v2913_v44 = vpop.eup %2912 }
 0x3c9   : > { %v1289_v45 = vsel %vm1282_vm3, %v2913_v44, 0.0 }
 0x3ca   : > { %1290 = vadd.xlane.f32.xlu1 %v1289_v45 }
 0x457   : > { %v1291_v46 = vpop.xlane.xlu1 %1290 }
 0x458   : > { %2914 = vrcp.f32 %v1291_v46 }
 0x45d   : > { %1297 = sbr.rel (%p2596_p5) target bundleno = 1126 (0x466), region = 108 }
 0x462   : > { %v2915_v47 = vpop.eup %2914 }
 0x463   : > { %v1293_v48 = vmul.f32 %v2915_v47, %v2913_v44 }
 0x465   : > { %1298 = vst.msk [vmem:[#allocation5] sm:$0xf] %vm1282_vm3, %v1293_v48 }
 0x466 PF: > { %2763 = vmatprep.subr.bf16.mxu1 %v3058_v10  ;;  %v1300_v49 = vpack.c.bf16 %v1226_v22, %v1226_v22  ;;  %vm1305_vm4 = vcmask 1043456   ;;  %2765 = vmatprep.mubr.msk.bf16.mxu1 %vm3059_vm1, %v3058_v10  ;;  %s3061_s5 = smov 64   ;;  %v1299_v51 = vpack.c.bf16 %v1293_v48, %v1293_v48  ;;  %vm1301_vm5 = vcmask 64512  }
 0x467   : > { %1353 = vrot.lane.b32.xlu0 %v1233_v24, %s3061_s5 }
 0x468   : > { %v1307_v50 = vsel %vm1305_vm4, %v1300_v49, 0 }
 0x469   : > { %2764 = vmatpush3.bf16.msra.mxu1 %v1307_v50 }
 0x46a   : > { %2769 = vmatprep.subr.bf16.mxu1 %v3058_v10 }
 0x46b   : > { %1350 = vrot.lane.b32.xlu0 %v3374_v33, %s3061_s5 }
 0x46c   : > { %2766 = vmatmul.mubr.msk.bf16.vlgmr.msra.gmra.mrb[8].mxu1 %vm1301_vm5, %v1299_v51 }
 0x46d   : > { %2771 = vmatprep.mubr.msk.bf16.mxu1 %vm3059_vm1, %v3058_v10 }
 0x4d9   : > { %v1354_v52 = vpop.permute.xlu0 %1353 }
 0x4da   : > { %v1359_v53 = vsel %vm1234_vm2, %v1354_v52, 0 }
 0x4db   : > { %2770 = vmatpush3.bf16.xpose.msra.mxu1 %v1359_v53 }
 0x4dd   : > { %v1351_v54 = vpop.permute.xlu0 %1350 }
 0x4e2   : > { %2772 = vmatmul.mubr.msk.bf16.vlgmr.msra.gmra.mrb[12].mxu1 %vm1234_vm2, %v1351_v54 }
 0x53f   : > { %v3397_v55 = vpop.f32.mrb[8].mxu1 }
 0x540   : > { %v2767_v56 = vpop.f32.mrb[9].mxu1 }
 0x541   : > { %v1346_v57 = vpop.f32.mrb[10].mxu1 }
 0x542   : > { %v2768_v58 = vpop.f32.mrb[11].mxu1 }
 0x5b5   : > { %v1395_v59 = vpop.f32.mrb[12].mxu1 }
 0x5b6   : > { %v1401_v60 = vmul.f32 0.125, %v1395_v59  ;;  %v2773_v61 = vpop.f32.mrb[13].mxu1 }
 0x5b7   : > { %v1398_v62 = vpop.f32.mrb[14].mxu1 }
 0x5b8   : > { %v2774_v63 = vpop.f32.mrb[15].mxu1  ;;  %v1402_v0 = vsel %vm1282_vm3, %v1401_v60, -inf }
 0x5b9   : > { %1403 = vmax.xlane.f32.xlu1 %v1402_v0 }
 0x646   : > { %v1404_v1 = vpop.xlane.xlu1 %1403 }
 0x647   : > { %v1405_v2 = vsub.f32 %v1401_v60, %v1404_v1 }
 0x649   : > { %v1406_v3 = vmul.f32 1.442695, %v1405_v2 }
 0x64b   : > { %2916 = vpow2.f32 %v1406_v3 }
 0x655   : > { %v2917_v4 = vpop.eup %2916 }
 0x656   : > { %v1408_v5 = vsel %vm1282_vm3, %v2917_v4, 0.0 }
 0x657   : > { %1409 = vadd.xlane.f32.xlu1 %v1408_v5 }
 0x6e4   : > { %v1410_v7 = vpop.xlane.xlu1 %1409 }
 0x6e5   : > { %2918 = vrcp.f32 %v1410_v7 }
 0x6ea   : > { %1415 = sbr.rel (%p2596_p5) target bundleno = 1779 (0x6f3), region = 112 }
 0x6ef   : > { %v2919_v8 = vpop.eup %2918 }
 0x6f0   : > { %v1412_v9 = vmul.f32 %v2919_v8, %v2917_v4 }
 0x6f2   : > { %1417 = vst.msk [vmem:[#allocation5 + $0x4] sm:$0xf] %vm1282_vm3, %v1412_v9 }
 0x6f3 PF: > { %2781 = vmatprep.subr.bf16.mxu0 %v3058_v10  ;;  %v1473_v12 = vpack.c.bf16 %v3364_v26, %v3364_v26  ;;  %2783 = vmatprep.mubr.msk.bf16.mxu0 %vm3059_vm1, %v3058_v10  ;;  %v1474_v16 = vrot.slane %v3374_v33, 2  ;;  %v1418_v19 = vpack.c.bf16 %v1412_v9, %v1412_v9 }
 0x6f4   : > { %1420 = vrot.lane.b32.xlu0 %v1300_v49, %s3061_s5  ;;  %2775 = vmatprep.subr.bf16.mxu1 %v3058_v10 }
 0x6f5   : > { %v1479_v14 = vsel %vm1234_vm2, %v1473_v12, 0  ;;  %2777 = vmatprep.mubr.msk.bf16.mxu1 %vm3059_vm1, %v3058_v10 }
 0x6f6   : > { %2782 = vmatpush3.bf16.xpose.msra.mxu0 %v1479_v14 }
 0x6fd   : > { %2784 = vmatmul.mubr.msk.bf16.vlgmr.msra.gmra.mrb[4].mxu0 %vm1234_vm2, %v1474_v16 }
 0x766   : > { %v1421_v17 = vpop.permute.xlu0 %1420 }
 0x767   : > { %v1426_v18 = vsel %vm1305_vm4, %v1421_v17, 0 }
 0x768   : > { %2776 = vmatpush3.bf16.msra.mxu1 %v1426_v18 }
 0x76b   : > { %2778 = vmatmul.mubr.msk.bf16.vlgmr.msra.gmra.mrb[16].mxu1 %vm1301_vm5, %v1418_v19 }
 0x7d0   : > { %v1515_v20 = vpop.f32.mrb[4].mxu0 }
 0x7d1   : > { %v1521_v21 = vmul.f32 0.125, %v1515_v20  ;;  %v2785_v22 = vpop.f32.mrb[5].mxu0 }
 0x7d2   : > { %v1518_v23 = vpop.f32.mrb[6].mxu0 }
 0x7d3   : > { %v2786_v24 = vpop.f32.mrb[7].mxu0  ;;  %v1522_v25 = vsel %vm1282_vm3, %v1521_v21, -inf }
 0x7d4   : > { %1523 = vmax.xlane.f32.xlu0 %v1522_v25 }
 0x83e   : > { %v1462_v26 = vpop.f32.mrb[16].mxu1 }
 0x83f   : > { %v2779_v27 = vpop.f32.mrb[17].mxu1 }
 0x840   : > { %v1465_v28 = vpop.f32.mrb[18].mxu1 }
 0x841   : > { %v2780_v29 = vpop.f32.mrb[19].mxu1 }
 0x861   : > { %v1524_v31 = vpop.xlane.xlu0 %1523 }
 0x862   : > { %v1525_v32 = vsub.f32 %v1521_v21, %v1524_v31 }
 0x864   : > { %v1526_v33 = vmul.f32 1.442695, %v1525_v32 }
 0x866   : > { %2920 = vpow2.f32 %v1526_v33 }
 0x870   : > { %v2921_v34 = vpop.eup %2920 }
 0x871   : > { %v1528_v35 = vsel %vm1282_vm3, %v2921_v34, 0.0 }
 0x872   : > { %1529 = vadd.xlane.f32.xlu1 %v1528_v35 }
 0x883   : > { %1469 = vrot.lane.b32.xlu1 %v1462_v26, %s3061_s5 }
 0x8ff   : > { %v1530_v37 = vpop.xlane.xlu1 %1529 }
 0x900   : > { %2922 = vrcp.f32 %v1530_v37 }
 0x903   : > { %v1470_v38 = vpop.permute.xlu1 %1469 }
 0x904   : > { %v3423_v39 = vsel %vm1234_vm2, %v3397_v55, %v1470_v38 }
 0x905   : > { %1535 = sbr.rel (%p2596_p5) target bundleno = 2318 (0x90e), region = 116 }
 0x90a   : > { %v2923_v40 = vpop.eup %2922 }
 0x90b   : > { %v1532_v41 = vmul.f32 %v2923_v40, %v2921_v34 }
 0x90d   : > { %1537 = vst.msk [vmem:[#allocation5 + $0x8] sm:$0xf] %vm1282_vm3, %v1532_v41 }
 0x90e PF: > { %1589 = vrot.lane.b32.xlu0 %v1473_v12, %s3061_s5  ;;  %2793 = vmatprep.subr.bf16.mxu0 %v3058_v10  ;;  %v1539_v45 = vpack.c.bf16 %v3371_v30, %v3371_v30  ;;  %v1538_v47 = vpack.c.bf16 %v1532_v41, %v1532_v41 }
 0x90f   : > { %2795 = vmatprep.mubr.msk.bf16.mxu0 %vm3059_vm1, %v3058_v10  ;;  %2787 = vmatprep.subr.bf16.mxu1 %v3058_v10 }
 0x910   : > { %2789 = vmatprep.mubr.msk.bf16.mxu1 %vm3059_vm1, %v3058_v10  ;;  %v1544_v46 = vsel %vm1305_vm4, %v1539_v45, 0 }
 0x911   : > { %2788 = vmatpush3.bf16.msra.mxu1 %v1544_v46 }
 0x912   : > { %1586 = vrot.lane.b32.xlu0 %v1474_v16, %s3061_s5 }
 0x914   : > { %2790 = vmatmul.mubr.msk.bf16.vlgmr.msra.gmra.mrb[20].mxu1 %vm1301_vm5, %v1538_v47 }
 0x980   : > { %v1590_v42 = vpop.permute.xlu0 %1589 }
 0x981   : > { %v1595_v43 = vsel %vm1234_vm2, %v1590_v42, 0 }
 0x982   : > { %2794 = vmatpush3.bf16.xpose.msra.mxu0 %v1595_v43 }
 0x984   : > { %v1587_v44 = vpop.permute.xlu0 %1586 }
 0x989   : > { %2796 = vmatmul.mubr.msk.bf16.vlgmr.msra.gmra.mrb[8].mxu0 %vm1234_vm2, %v1587_v44 }
 0x9e7   : > { %v1580_v58 = vpop.f32.mrb[20].mxu1 }
 0x9e8   : > { %v2791_v59 = vpop.f32.mrb[21].mxu1 }
 0x9e9   : > { %v1583_v60 = vpop.f32.mrb[22].mxu1 }
 0x9ea   : > { %v2792_v61 = vpop.f32.mrb[23].mxu1 }
 0xa5c   : > { %v1631_v48 = vpop.f32.mrb[8].mxu0 }
 0xa5d   : > { %v1637_v49 = vmul.f32 0.125, %v1631_v48  ;;  %v2797_v50 = vpop.f32.mrb[9].mxu0 }
 0xa5e   : > { %v1634_v51 = vpop.f32.mrb[10].mxu0 }
 0xa5f   : > { %v2798_v52 = vpop.f32.mrb[11].mxu0  ;;  %v1638_v53 = vsel %vm1282_vm3, %v1637_v49, -inf }
 0xa60   : > { %1639 = vmax.xlane.f32.xlu1 %v1638_v53 }
 0xaed   : > { %v1640_v54 = vpop.xlane.xlu1 %1639 }
 0xaee   : > { %v1641_v55 = vsub.f32 %v1637_v49, %v1640_v54 }
 0xaf0   : > { %v1642_v56 = vmul.f32 1.442695, %v1641_v55 }
 0xaf2   : > { %2924 = vpow2.f32 %v1642_v56 }
 0xafc   : > { %v2925_v57 = vpop.eup %2924 }
 0xafd   : > { %v1644_v30 = vsel %vm1282_vm3, %v2925_v57, 0.0 }
 0xafe   : > { %1645 = vadd.xlane.f32.xlu1 %v1644_v30 }
 0xb8b   : > { %v1646_v62 = vpop.xlane.xlu1 %1645 }
 0xb8c   : > { %2926 = vrcp.f32 %v1646_v62 }
 0xb91   : > { %1651 = sbr.rel (%p2596_p5) target bundleno = 2970 (0xb9a), region = 120 }
 0xb96   : > { %v2927_v63 = vpop.eup %2926 }
 0xb97   : > { %v1648_v0 = vmul.f32 %v2927_v63, %v2925_v57 }
 0xb99   : > { %1653 = vst.msk [vmem:[#allocation5 + $0xc] sm:$0xf] %vm1282_vm3, %v1648_v0 }
 0xb9a PF: > { %1656 = vrot.lane.b32.xlu0 %v1539_v45, %s3061_s5  ;;  %2799 = vmatprep.subr.bf16.mxu1 %v3058_v10  ;;  %v1654_v3 = vpack.c.bf16 %v1648_v0, %v1648_v0  ;;  %v2928_v4 = vld [vmem:[%s3232_s19] sm:$0xff]   ;;  %v2929_v5 = vld [vmem:[%s3232_s19 + $0x8] sm:$0xff]   ;;  %v2930_v7 = vld [vmem:[%s3232_s19 + $0x10] sm:$0xff]   ;;  %s3689_s0 = scalar_lea.vmem %s3629_s11, %s3189_s26  ;;  %s3690_s17 = scalar_lea.vmem %s3630_s12, %s3189_s26  ;;  %vm3063_vm6 = vmmov (!%p2596_p5), 0   ;;  %vm2208_vm7 = vcmask (!%p2596_p5), 1040384   ;;  %vm2322_vm8 = vcmask (!%p2596_p5), 58368  }
 0xb9b   : > { %2801 = vmatprep.mubr.msk.bf16.mxu1 %vm3059_vm1, %v3058_v10  ;;  %2805 = vmatprep.subr.bf16.mxu0 %v3058_v10  ;;  %v2931_v8 = vld [vmem:[%s3232_s19 + $0x18] sm:$0xff]   ;;  %v2932_v9 = vld [vmem:[%s3232_s19 + $0x20] sm:$0xff]   ;;  %v2934_v12 = vld [vmem:[%s3232_s19 + $0x30] sm:$0xff]   ;;  %s3691_s29 = scalar_lea.vmem %s3631_s13, %s3189_s26  ;;  %s3694_s30 = sld [smem:[#allocation21_spill]] (!%p2596_p5) }
 0xb9c   : > { %2821 = vmatprep.mubr.msk.bf16.mxu0 %vm3059_vm1, %v3058_v10  ;;  %2806 = vmatpush3.bf16.msra.mxu0 %v2928_v4  ;;  %v2935_v14 = vld [vmem:[%s3232_s19 + $0x38] sm:$0xff]   ;;  %v2615_v25 = vld [vmem:[%s3689_s0] ss:$0 sm:$0xff]  ;;  %v2938_v33 = vld [vmem:[%s3249_s8 + $0x4] ss:$8 sps:$4 sm:$0xff]   ;;  %s3695_s22 = sld [smem:[#allocation22_spill]] (!%p2596_p5) }
 0xb9d   : > { %2807 = vmatprep.subr.bf16.mxu0 %v3058_v10  ;;  %v2936_v32 = vld [vmem:[%s3249_s8] ss:$8 sps:$4 sm:$0xff]   ;;  %v2941_v34 = vld [vmem:[%s3249_s8 + $0x14] ss:$8 sps:$4 sm:$0xff]   ;;  %v2939_v35 = vld [vmem:[%s3249_s8 + $0x10] ss:$8 sps:$4 sm:$0xff]  }
 0xb9e   : > { %v2944_v37 = vld [vmem:[%s3249_s8 + $0x24] ss:$8 sps:$4 sm:$0xff]   ;;  %v2947_v42 = vld [vmem:[%s3249_s8 + $0x34] ss:$8 sps:$4 sm:$0xff]   ;;  %v2945_v43 = vld [vmem:[%s3249_s8 + $0x30] ss:$8 sps:$4 sm:$0xff]  }
 0xb9f   : > { %v2950_v44 = vld [vmem:[%s3249_s8 + $0x44] ss:$8 sps:$4 sm:$0xff]   ;;  %v2948_v45 = vld [vmem:[%s3249_s8 + $0x40] ss:$8 sps:$4 sm:$0xff]   ;;  %v2953_v46 = vld [vmem:[%s3249_s8 + $0x54] ss:$8 sps:$4 sm:$0xff]  }
 0xba0   : > { %2808 = vmatpush3.bf16.msra.mxu0 %v2929_v5  ;;  %v2951_v47 = vld [vmem:[%s3249_s8 + $0x50] ss:$8 sps:$4 sm:$0xff]   ;;  %v2956_v48 = vld [vmem:[%s3249_s8 + $0x64] ss:$8 sps:$4 sm:$0xff]   ;;  %v2954_v49 = vld [vmem:[%s3249_s8 + $0x60] ss:$8 sps:$4 sm:$0xff]  }
 0xba1   : > { %2809 = vmatprep.subr.bf16.mxu0 %v3058_v10  ;;  %v2959_v50 = vld [vmem:[%s3249_s8 + $0x74] ss:$8 sps:$4 sm:$0xff]   ;;  %v2957_v51 = vld [vmem:[%s3249_s8 + $0x70] ss:$8 sps:$4 sm:$0xff]   ;;  %v2616_v56 = vld [vmem:[%s3690_s17] ss:$0 sm:$0xff] }
 0xba2   : > { %v2617_v30 = vld [vmem:[%s3691_s29] ss:$0 sm:$0xff]  ;;  %v2962_v63 = vld [vmem:[%s3259_s25 + $0x48] sm:$0xff]   ;;  %v2967_v4 = vld [vmem:[%s3259_s25 + $0x18] sm:$0xff]  }
 0xba3   : > { %v2960_v61 = vld [vmem:[%s3259_s25 + $0x40] sm:$0xff]   ;;  %v2963_v0 = vld [vmem:[%s3259_s25 + $0x8] sm:$0xff]  }
 0xba4   : > { %2810 = vmatpush3.bf16.msra.mxu0 %v2930_v7  ;;  %v2961_v62 = vld [vmem:[%s3259_s25] sm:$0xff]  }
 0xba5   : > { %2811 = vmatprep.subr.bf16.mxu0 %v3058_v10  ;;  %v2968_v5 = vld [vmem:[%s3259_s25 + $0x60] sm:$0xff]  }
 0xba6   : > { %v2969_v7 = vld [vmem:[%s3259_s25 + $0x20] sm:$0xff]  }
 0xba8   : > { %2812 = vmatpush3.bf16.msra.mxu0 %v2931_v8  ;;  %v2970_v8 = vld [vmem:[%s3259_s25 + $0x68] sm:$0xff]  }
 0xba9   : > { %2813 = vmatprep.subr.bf16.mxu0 %v3058_v10 }
 0xbac   : > { %2814 = vmatpush3.bf16.msra.mxu0 %v2932_v9  ;;  %v2971_v9 = vld [vmem:[%s3259_s25 + $0x28] sm:$0xff]  }
 0xbad   : > { %2815 = vmatprep.subr.bf16.mxu0 %v3058_v10 }
 0xc0c   : > { %v1657_v1 = vpop.permute.xlu0 %1656 }
 0xc0d   : > { %v1662_v2 = vsel %vm1305_vm4, %v1657_v1, 0  ;;  %v2964_v1 = vld [vmem:[%s3259_s25 + $0x50] sm:$0xff]  }
 0xc0e   : > { %2800 = vmatpush3.bf16.msra.mxu1 %v1662_v2  ;;  %v2965_v2 = vld [vmem:[%s3259_s25 + $0x10] sm:$0xff]  }
 0xc0f   : > { %1963 = vmatprep.subr.bf16.mxu1 %v2938_v33 }
 0xc11   : > { %2802 = vmatmul.mubr.msk.bf16.vlgmr.msra.gmra.mrb[24].mxu1 %vm1301_vm5, %v1654_v3  ;;  %v2966_v3 = vld [vmem:[%s3259_s25 + $0x58] sm:$0xff]  }
 0xc12   : > { %1995 = vmatprep.mubr.bf16.mxu1 %v3060_v36  ;;  %v2933_v36 = vld [vmem:[%s3232_s19 + $0x28] sm:$0xff]   ;;  %1964 = vmatpush1.bf16.msra.mxu1 %v2936_v32 }
 0xc13   : > { %2816 = vmatpush3.bf16.msra.mxu0 %v2933_v36  ;;  %1965 = vmatprep.subr.bf16.mxu1 %v2941_v34  ;;  %v2972_v36 = vld [vmem:[%s3259_s25 + $0x70] sm:$0xff]  }
 0xc14   : > { %2817 = vmatprep.subr.bf16.mxu0 %v3058_v10 }
 0xc16   : > { %1966 = vmatpush1.bf16.msra.mxu1 %v2939_v35 }
 0xc17   : > { %2818 = vmatpush3.bf16.msra.mxu0 %v2934_v12  ;;  %1967 = vmatprep.subr.bf16.mxu1 %v2944_v37  ;;  %v2973_v12 = vld [vmem:[%s3259_s25 + $0x30] sm:$0xff]  }
 0xc18   : > { %2819 = vmatprep.subr.bf16.mxu0 %v3058_v10 }
 0xc1b   : > { %2820 = vmatpush3.bf16.msra.mxu0 %v2935_v14  ;;  %v2974_v14 = vld [vmem:[%s3259_s25 + $0x78] sm:$0xff]  }
 0xc1c   : > { %2706 = vmatprep.subr.bf16.mxu0 %v2960_v61 }
 0xce4   : > { %v1698_v16 = vpop.f32.mrb[24].mxu1 }
 0xce5   : > { %1705 = vrot.lane.b32.xlu0 %v1698_v16, %s3061_s5  ;;  %v2803_v17 = vpop.f32.mrb[25].mxu1  ;;  %v2975_v16 = vld [vmem:[%s3259_s25 + $0x38] sm:$0xff]  }
 0xce6   : > { %v1701_v18 = vpop.f32.mrb[26].mxu1  ;;  %v1871_v17 = vld [vmem:[%s3254_s18] sm:$0x3] }
 0xce7   : > { %v2804_v19 = vpop.f32.mrb[27].mxu1  ;;  %v1876_v18 = vrot.slane %v1871_v17, %v1101_v15 }
 0xce8   : > { %v1880_v19 = vrot.slane %v1871_v17, %v1105_v13 }
 0xd57   : > { %v1706_v20 = vpop.permute.xlu0 %1705 }
 0xd58   : > { %v1708_v21 = vsel %vm1234_vm2, %v1580_v58, %v1706_v20 }
 0xd59   : > { %v1710_v22 = vrot.slane %v1708_v21, 4 }
 0xd5b   : > { %v1712_v23 = vsel %vm1305_vm4, %v3423_v39, %v1710_v22 }
 0xd5c   : > { %v1729_v10 = vpack.c.bf16 %v1712_v23, %v1712_v23 }
 0xd5e   : > { %2822 = vmatmul.mubr.bf16.vlgmr.msra.gmra.mrb[12].mxu0 %v1729_v10 }
 0xd5f   : > { %2707 = vmatpush3.bf16.msra.mxu0 %v2961_v62  ;;  %v2652_v62 = vld [vmem:[%s3695_s22] ss:$0 sm:$0xff] (!%p2596_p5) }
 0xd60   : > { %2708 = vmatprep.subr.bf16.mxu0 %v2962_v63 }
 0xd63   : > { %2709 = vmatpush3.bf16.msra.mxu0 %v2963_v0 }
 0xd64   : > { %2710 = vmatprep.subr.bf16.mxu0 %v2964_v1 }
 0xd67   : > { %2711 = vmatpush3.bf16.msra.mxu0 %v2965_v2 }
 0xd68   : > { %2712 = vmatprep.subr.bf16.mxu0 %v2966_v3 }
 0xd6b   : > { %2713 = vmatpush3.bf16.msra.mxu0 %v2967_v4 }
 0xd6c   : > { %2714 = vmatprep.subr.bf16.mxu0 %v2968_v5 }
 0xd6f   : > { %2715 = vmatpush3.bf16.msra.mxu0 %v2969_v7 }
 0xd70   : > { %2716 = vmatprep.subr.bf16.mxu0 %v2970_v8 }
 0xd73   : > { %2717 = vmatpush3.bf16.msra.mxu0 %v2971_v9 }
 0xd74   : > { %2718 = vmatprep.subr.bf16.mxu0 %v2972_v36 }
 0xd77   : > { %2719 = vmatpush3.bf16.msra.mxu0 %v2973_v12 }
 0xd78   : > { %2720 = vmatprep.subr.bf16.mxu0 %v2974_v14 }
 0xd7b   : > { %2721 = vmatpush3.bf16.msra.mxu0 %v2975_v16 }
 0xe31   : > { %v1812_v24 = vpop.f32.mrb[12].mxu0 }
 0xe32   : > { %v1818_v26 = vadd.f32 %v1812_v24, %v3278_v6  ;;  %v2823_v27 = vpop.f32.mrb[13].mxu0  ;;  %v2942_v6 = vld [vmem:[%s3249_s8 + $0x20] ss:$8 sps:$4 sm:$0xff]  }
 0xe33   : > { %v1815_v28 = vpop.f32.mrb[14].mxu0  ;;  %1968 = vmatpush1.bf16.msra.mxu1 %v2942_v6 }
 0xe34   : > { %v3482_v29 = vadd.f32 %v2615_v25, %v1818_v26  ;;  %v2824_v31 = vpop.f32.mrb[15].mxu0  ;;  %1969 = vmatprep.subr.bf16.mxu1 %v2947_v42 }
 0xe36   : > { %1829 = vadd.xlane.f32.xlu1 %v3482_v29 }
 0xe37   : > { %1970 = vmatpush1.bf16.msra.mxu1 %v2945_v43 }
 0xe38   : > { %1971 = vmatprep.subr.bf16.mxu1 %v2950_v44 }
 0xe3b   : > { %1972 = vmatpush1.bf16.msra.mxu1 %v2948_v45 }
 0xe3c   : > { %1973 = vmatprep.subr.bf16.mxu1 %v2953_v46 }
 0xe3f   : > { %1974 = vmatpush1.bf16.msra.mxu1 %v2951_v47 }
 0xe40   : > { %1975 = vmatprep.subr.bf16.mxu1 %v2956_v48  ;;  %v2650_v48 = vld [vmem:[%s881_s24] ss:$0 sm:$0xff] }
 0xe43   : > { %1976 = vmatpush1.bf16.msra.mxu1 %v2954_v49 }
 0xe44   : > { %1977 = vmatprep.subr.bf16.mxu1 %v2959_v50 }
 0xe47   : > { %1978 = vmatpush1.bf16.msra.mxu1 %v2957_v51 }
 0xec3   : > { %v1830_v38 = vpop.xlane.xlu1 %1829 }
 0xec4   : > { %v1831_v39 = vmul.f32 0.0078125, %v1830_v38 }
 0xec6   : > { %v1832_v40 = vsub.f32 %v3482_v29, %v1831_v39 }
 0xec8   : > { %v1833_v41 = vmul.f32 %v1832_v40, %v1832_v40 }
 0xeca   : > { %1834 = vadd.xlane.f32.xlu1 %v1833_v41 }
 0xf57   : > { %v1835_v52 = vpop.xlane.xlu1 %1834 }
 0xf58   : > { %v1836_v53 = vmul.f32 0.0078125, %v1835_v52  ;;  %v2982_v52 = vld [vmem:[%s3694_s30] sm:$0xff] (!%p2596_p5)  }
 0xf5a   : > { %v1837_v54 = vadd.f32 1e-05, %v1836_v53  ;;  %v3062_v53 = vmov (!%p2596_p5), 0.0  }
 0xf5b   : > { %2825 = vmatprep.subr.bf16.mxu0 (!%p2596_p5), %v3062_v53 }
 0xf5c   : > { %2976 = vrsqrt.f32 %v1837_v54  ;;  %v2983_v54 = vld [vmem:[%s3694_s30 + $0x8] sm:$0xff] (!%p2596_p5)  }
 0xf66   : > { %v2977_v55 = vpop.eup %2976 }
 0xf67   : > { %v1839_v57 = vmul.f32 %v2977_v55, %v1832_v40  ;;  %v2985_v55 = vld [vmem:[%s3694_s30 + $0x18] sm:$0xff] (!%p2596_p5)  }
 0xf69   : > { %v1846_v58 = vmul.f32 %v2616_v56, %v1839_v57  ;;  %v2986_v56 = vld [vmem:[%s3694_s30 + $0x20] sm:$0xff] (!%p2596_p5)   ;;  %v2987_v57 = vld [vmem:[%s3694_s30 + $0x28] sm:$0xff] (!%p2596_p5)  }
 0xf6b   : > { %v1853_v59 = vadd.f32 %v2617_v30, %v1846_v58  ;;  %v2988_v30 = vld [vmem:[%s3694_s30 + $0x30] sm:$0xff] (!%p2596_p5)  }
 0xf6d   : > { %v1870_v60 = vpack.c.bf16 %v1853_v59, %v1853_v59  ;;  %v2989_v59 = vld [vmem:[%s3694_s30 + $0x38] sm:$0xff] (!%p2596_p5)  }
 0xf6f   : > { %1996 = vmatmul.mubr.bf16.vlgmr.msra.gmra.mrb[28].mxu1 %v1870_v60 }
0x1042   : > { %v1997_v20 = vpop.f32.mrb[28].mxu1 }
0x1043   : > { %v1998_v21 = vadd.f32 %v1997_v20, %v1876_v18  ;;  %v1999_v22 = vpop.f32.mrb[29].mxu1 }
0x1044   : > { %v2000_v23 = vadd.f32 %v1999_v22, %v1880_v19  ;;  %v2001_v10 = vpop.f32.mrb[30].mxu1 }
0x1045   : > { %v2004_v24 = vmul.f32 %v1998_v21, %v1998_v21  ;;  %v2002_v25 = vpop.f32.mrb[31].mxu1 }
0x1046   : > { %v2005_v26 = vmul.f32 %v2000_v23, %v2000_v23 }
0x1047   : > { %v2006_v27 = vmul.f32 %v2004_v24, %v1998_v21 }
0x1048   : > { %v2007_v28 = vmul.f32 %v2005_v26, %v2000_v23 }
0x1049   : > { %v2008_v31 = vmul.f32 0.044715, %v2006_v27 }
0x104a   : > { %v2009_v32 = vmul.f32 0.044715, %v2007_v28 }
0x104b   : > { %v2010_v33 = vadd.f32 %v2008_v31, %v1998_v21 }
0x104c   : > { %v2011_v34 = vadd.f32 %v2009_v32, %v2000_v23 }
0x104d   : > { %v2012_v35 = vmul.f32 0.7978846, %v2010_v33 }
0x104e   : > { %v2013_v37 = vmul.f32 0.7978846, %v2011_v34 }
0x104f   : > { %2978 = vtanh.f32 %v2012_v35 }
0x1050   : > { %2980 = vtanh.f32 %v2013_v37 }
0x1059   : > { %v2979_v11 = vpop.eup %2978 }
0x105a   : > { %v2981_v13 = vpop.eup %2980  ;;  %v2016_v15 = vadd.f32 1.0, %v2979_v11 }
0x105b   : > { %v2017_v6 = vadd.f32 1.0, %v2981_v13 }
0x105c   : > { %v2018_v38 = vmul.f32 0.5, %v2016_v15 }
0x105d   : > { %v2019_v39 = vmul.f32 0.5, %v2017_v6 }
0x105e   : > { %v2020_v40 = vmul.f32 %v2018_v38, %v1998_v21 }
0x105f   : > { %v2021_v41 = vmul.f32 %v2019_v39, %v2000_v23 }
0x1060   : > { %v2054_v43 = vpack.c.bf16 %v2020_v40, %v2020_v40 }
0x1061   : > { %v2055_v42 = vpack.c.bf16 %v2021_v41, %v2021_v41 }
0x1063   : > { %2184 = vmatprep.mubr.bf16.mxu0 %v2055_v42 }
0x1064   : > { %2185 = vmatmul.mubr.bf16.vlgmr.msra.gmra.mrb[16].mxu0 %v2054_v43 }
0x1065   : > { %2826 = vmatpush3.bf16.msra.mxu0 (!%p2596_p5), %v2982_v52  ;;  %2841 = vmatprep.mubr.msk.bf16.mxu0 (!%p2596_p5), %vm3063_vm6, %v3062_v53 }
0x1066   : > { %2827 = vmatprep.subr.bf16.mxu0 (!%p2596_p5), %v3062_v53 }
0x1069   : > { %2828 = vmatpush3.bf16.msra.mxu0 (!%p2596_p5), %v2983_v54 }
0x106a   : > { %2829 = vmatprep.subr.bf16.mxu0 (!%p2596_p5), %v3062_v53 }
0x1137   : > { %v2722_v44 = vpop.f32.mrb[16].mxu0 }
0x1138   : > { %v2723_v45 = vpop.f32.mrb[17].mxu0 }
0x1139   : > { %v2724_v46 = vadd.f32 %v2723_v45, %v2722_v44  ;;  %v2725_v47 = vpop.f32.mrb[18].mxu0  ;;  %2204 = sbr.rel (%p2596_p5) target bundleno = 4650 (0x122a), region = 124 }
0x113a   : > { %v2726_v49 = vpop.f32.mrb[19].mxu0 }
0x113b   : > { %v2192_v50 = vadd.f32 %v2724_v46, %v3482_v29  ;;  %v2984_v29 = vld [vmem:[%s3694_s30 + $0x10] sm:$0xff] (!%p2596_p5)  }
0x113c   : > { %2830 = vmatpush3.bf16.msra.mxu0 (!%p2596_p5), %v2984_v29 }
0x113d   : > { %v2200_v51 = vadd.f32 %v2650_v48, %v2192_v50  ;;  %2831 = vmatprep.subr.bf16.mxu0 (!%p2596_p5), %v3062_v53 }
0x113f   : > { %2201 = vst [vmem:[#allocation2] sm:$0xff] %v2200_v51  ;;  %v2206_v58 = vrot.slane (!%p2596_p5), %v2200_v51, 3 }
0x1140   : > { %2832 = vmatpush3.bf16.msra.mxu0 %v2985_v55 }
0x1141   : > { %2833 = vmatprep.subr.bf16.mxu0 %v3062_v53  ;;  %v2209_v60 = vsel %vm2208_vm7, %v2200_v51, %v2206_v58 }
0x1142   : > { %v2226_v61 = vpack.c.bf16 %v2209_v60, %v2209_v60 }
0x1144   : > { %2834 = vmatpush3.bf16.msra.mxu0 %v2986_v56 }
0x1145   : > { %2835 = vmatprep.subr.bf16.mxu0 %v3062_v53 }
0x1148   : > { %2836 = vmatpush3.bf16.msra.mxu0 %v2987_v57 }
0x1149   : > { %2837 = vmatprep.subr.bf16.mxu0 %v3062_v53 }
0x114c   : > { %2838 = vmatpush3.bf16.msra.mxu0 %v2988_v30 }
0x114d   : > { %2839 = vmatprep.subr.bf16.mxu0 %v3062_v53 }
0x1150   : > { %2840 = vmatpush3.bf16.msra.mxu0 %v2989_v59 }
0x1153   : > { %2842 = vmatmul.mubr.bf16.vlgmr.msra.gmra.mrb[0].mxu0 %v2226_v61 }
0x1226   : > { %v2316_v63 = vpop.f32.mrb[0].mxu0 }
0x1227   : > { %v2317_v0 = vadd.f32 %v2652_v62, %v2316_v63  ;;  %v2843_v1 = vpop.f32.mrb[1].mxu0 }
0x1228   : > { %v2319_v2 = vpop.f32.mrb[2].mxu0 }
0x1229   : > { %2323 = vst.msk [vmem:[#allocation3] sm:$0x3] %vm2322_vm8, %v2317_v0  ;;  %v2844_v3 = vpop.f32.mrb[3].mxu0 }
0x122a PF: > { %s3696_s28 = sld [smem:[#allocation10_spill]]  ;;  %s3064_s21 = smov [#allocation3]  }
0x122b   : > { %s2331_s1 = sshll.u32 %s3064_s21, 4  ;;  %s3065_s27 = smov [#allocation5]   ;;  %s2332_s1 = int_to_ptr.vmem [resolvable:$true] %s2331_s1 }
0x122c   : > { %s2341_s26 = sshll.u32 %s3065_s27, 4  ;;  %s2990_s24 = scalar_lea.vmem %s2332_s1, 32  ;;  %s2342_s26 = int_to_ptr.vmem [resolvable:$true] %s2341_s26 }
0x122d   : > { %p2991_p7 = scmp.ne.s32.totalorder %s2332_s1, %s2990_s24  ;;  %p2997_p10 = scmp.lt.s32.totalorder %s2332_s1, %s2332_s1 }
0x122e   : > { %p2998_p11 = scmp.lt.s32.totalorder %s2990_s24, %s2990_s24 }
0x1230   : > { %p2853_p6 = scmp.eq.s32.totalorder %s3696_s28, 1  ;;  %p2999_p12 = por %p2998_p11, %p2997_p10 }
0x1232   : > { %p2992_p8 = pnand %p2991_p7, %p2853_p6 }
0x1234   : > { %p2993_p9 = pneg %p2992_p8 }
0x1236   : > { %p3000_p13 = pnand %p2999_p12, %p2993_p9 }
0x1238   : > { %3003 = shalt.err (!%p3000_p13)
}
0x1239   : > { %s3697_s0 = sld [smem:[#allocation23_spill]] }
0x123f   : > { %s3004_s23 = scalar_lea.hbm %s3697_s0, 32 }
0x1240   : > { %p3005_p0 = scmp.ne.s32.totalorder %s3697_s0, %s3004_s23  ;;  %p3010_p3 = scmp.lt.u32.totalorder %s3004_s23, %s3697_s0 }
0x1242   : > { %p3006_p1 = pnand %p3005_p0, %p2853_p6 }
0x1244   : > { %p3007_p2 = pneg %p3006_p1 }
0x1246   : > { %p3012_p4 = pnand %p3010_p3, %p3007_p2 }
0x1248   : > { %3015 = shalt.err (!%p3012_p4)
}
0x1249   : > { %2846 = dma.vmem_to_hbm [thread:$0]  (%p2853_p6), %s2332_s1, 32, %s3697_s0, [#allocation4]  }
0x124a   : > { %s3016_s18 = scalar_lea.vmem %s2342_s26, 256  ;;  %p3023_p9 = scmp.lt.s32.totalorder %s2342_s26, %s2342_s26 }
0x124b   : > { %p3017_p5 = scmp.ne.s32.totalorder %s2342_s26, %s3016_s18  ;;  %p3024_p10 = scmp.lt.s32.totalorder %s3016_s18, %s3016_s18 }
0x124d   : > { %p3018_p7 = pnand %p3017_p5, %p2853_p6  ;;  %p3025_p11 = por %p3024_p10, %p3023_p9 }
0x124f   : > { %p3019_p8 = pneg %p3018_p7 }
0x1251   : > { %p3026_p12 = pnand %p3025_p11, %p3019_p8 }
0x1253   : > { %3029 = shalt.err (!%p3026_p12)
}
0x1254   : > { %s3698_s21 = sld [smem:[#allocation24_spill]] }
0x125a   : > { %s3030_s27 = scalar_lea.hbm %s3698_s21, 256 }
0x125b   : > { %p3031_p13 = scmp.ne.s32.totalorder %s3698_s21, %s3030_s27  ;;  %p3036_p2 = scmp.lt.u32.totalorder %s3030_s27, %s3698_s21 }
0x125d   : > { %p3032_p0 = pnand %p3031_p13, %p2853_p6 }
0x125f   : > { %p3033_p1 = pneg %p3032_p0 }
0x1261   : > { %p3038_p3 = pnand %p3036_p2, %p3033_p1 }
0x1263   : > { %3041 = shalt.err (!%p3038_p3)
}
0x1264   : > { %s3066_s23 = smov 4  }
0x1265   : > { %2848 = dma.vmem_to_hbm [thread:$0]  (%p2853_p6), %s2342_s26, 256, %s3698_s21, [#allocation6], %s3061_s5, %s3061_s5, %s3066_s23  }
0x1266   : > { %3047 = dma.done.wait (%p2853_p6), [#allocation4], 32  }
0x1267   : > { %3049 = vsyncadd (%p2853_p6), [#allocation4], 4294967264 }
0x1268   : > { %3051 = dma.done.wait (%p2853_p6), [#allocation6], 256  }
0x1269   : > { %3053 = vsyncadd (%p2853_p6), [#allocation6], 4294967040 }
0x126a PF: > { %s3699_s9 = sld [smem:[#allocation9_spill]] }
0x1270   : > { %s34_s2 = sadd.s32 1, %s3699_s9  }
0x1271   : > { %p31_p4 = scmp.ge.s32.totalorder %s34_s2, 4  }
0x1273   :  { %33 = sbr.rel (!%p31_p4) target bundleno = 17 (0x11), region = 209 }
0x127a   :  { %2361 = vsyncpa [#allocation4], 1 }
0x127b   :  { %2363 = vsyncpa [#allocation4 + $0x1], 1 }
0x127c   :  { %2364 = vsyncpa [#allocation6], 1 }

</bundles_post_ra>
